<compile_context>
chip_gen: v5e
topology: v5e:2x2
jax: 0.10.0
libtpu: 0.0.40
codegen_flags: <defaults>
</compile_context>

<pallas_src>
import functools

import jax
import jax.numpy as jnp
from jax.experimental import pallas as pl
from jax.experimental.pallas import tpu as pltpu

EPS = 1e-5
LANE = 128
VMEM_LIMIT = 32 * 1024 * 1024  # safe scoped budget on v5e/v6e (128 MiB) and v7x (64 MiB)


def _round_up(x, m):
    return (x + m - 1) // m * m


def _pick_tile_h(H, W, max_rows=1024):
    """Largest divisor of H such that the tile has <= max_rows output pixels."""
    th = 1
    for cand in range(1, H + 1):
        if H % cand == 0 and cand * W <= max_rows:
            th = cand
    return th


# --------------------------------------------------------------------------------------
# Kernel A: 3x3 conv on one (1 batch, TH rows) tile via 9 shifted matmuls + partial
# BatchNorm statistics (per-channel sum and sum-of-squares of this tile).
# --------------------------------------------------------------------------------------
def conv_stats_kernel(x_ref, w_ref, z_ref, stats_ref, *, th, w_out, cpad, coutp):
    # x_ref:     (1, th+2, w_out+2, cpad)  bf16   input tile with halo (spatially zero-padded)
    # w_ref:     (9*cpad, coutp)           bf16   weights, (dy,dx,cin)-major, VMEM-resident
    # z_ref:     (1, th*w_out, coutp)      bf16   conv output tile
    # stats_ref: (1, 2, coutp)             f32    row 0 = sum(z), row 1 = sum(z*z) over tile
    x = x_ref[0]                                               # (th+2, w_out+2, cpad)
    acc = jnp.zeros((th * w_out, coutp), jnp.float32)
    for k in range(9):                                         # static unroll: 9 MXU matmuls
        dy, dx = k // 3, k % 3
        patch = x[dy:dy + th, dx:dx + w_out, :].reshape(th * w_out, cpad)
        wk = w_ref[k * cpad:(k + 1) * cpad, :]                 # aligned static slice
        acc = acc + jnp.dot(patch, wk, preferred_element_type=jnp.float32)
    z_ref[0] = acc.astype(z_ref.dtype)                         # bf16 store: half the HBM traffic
    s = jnp.sum(acc, axis=0, keepdims=True)                    # (1, coutp)  (f32, pre-cast)
    ss = jnp.sum(acc * acc, axis=0, keepdims=True)             # (1, coutp)
    stats_ref[0] = jnp.concatenate([s, ss], axis=0)


# --------------------------------------------------------------------------------------
# Kernel B: apply folded BatchNorm (scale/shift) + ReLU per tile.
# --------------------------------------------------------------------------------------
def bn_relu_kernel(z_ref, scale_ref, shift_ref, y_ref):
    # z_ref: (1, rows, coutp) bf16 ; scale/shift: (1, coutp) f32 ; y_ref: (1, rows, coutp)
    y = z_ref[0].astype(jnp.float32) * scale_ref[...] + shift_ref[...]
    y_ref[0] = jnp.maximum(y, 0.0).astype(y_ref.dtype)


# --------------------------------------------------------------------------------------
# One (conv 3x3 pad=1) + BN(train) + ReLU stage.  Input/output are NHWC with the channel
# axis already (or newly) zero-padded to a multiple of 128; padded output channels are
# exactly zero so they can feed the next stage directly.
# --------------------------------------------------------------------------------------
def conv_bn_relu(x_nhwc, w_oihw, gamma, beta, *, out_dtype=jnp.float32):
    N, H, W, cin_x = x_nhwc.shape
    cout, cin_w = w_oihw.shape[0], w_oihw.shape[1]
    cpad = _round_up(max(cin_x, cin_w), LANE)
    coutp = _round_up(cout, LANE)

    th = _pick_tile_h(H, W)
    ht = H // th
    g = N * ht
    rows = th * W

    # --- plain-JAX glue: channel pad + bf16 cast, spatial pad, per-tile halo gather ----
    x = jnp.pad(x_nhwc, ((0, 0), (0, 0), (0, 0), (0, cpad - cin_x))).astype(jnp.bfloat16)
    xp = jnp.pad(x, ((0, 0), (1, 1), (1, 1), (0, 0)))          # (N, H+2, W+2, cpad)
    if ht == 1:
        halos = xp                                             # no halo copy needed
    else:
        halos = jnp.stack([xp[:, t * th:t * th + th + 2, :, :] for t in range(ht)], axis=1)
        halos = halos.reshape(g, th + 2, W + 2, cpad)          # (G, th+2, W+2, cpad)

    # PyTorch (Cout, Cin, kh, kw) -> (kh, kw, cpad, coutp) -> (9*cpad, coutp), bf16.
    # Conv bias intentionally dropped: cancelled exactly by BN's mean subtraction.
    w = jnp.transpose(w_oihw, (2, 3, 1, 0))
    w = jnp.pad(w, ((0, 0), (0, 0), (0, cpad - cin_w), (0, coutp - cout)))
    w_mat = w.reshape(9 * cpad, coutp).astype(jnp.bfloat16)

    # --- pass 1: conv + per-tile stats --------------------------------------------------
    kernel_a = functools.partial(conv_stats_kernel, th=th, w_out=W, cpad=cpad, coutp=coutp)
    z, stats = pl.pallas_call(
        kernel_a,
        grid=(g,),
        in_specs=[
            pl.BlockSpec((1, th + 2, W + 2, cpad), lambda i: (i, 0, 0, 0)),
            pl.BlockSpec((9 * cpad, coutp), lambda i: (0, 0)),   # resident weights
        ],
        out_specs=(
            pl.BlockSpec((1, rows, coutp), lambda i: (i, 0, 0)),
            pl.BlockSpec((1, 2, coutp), lambda i: (i, 0, 0)),
        ),
        out_shape=(
            jax.ShapeDtypeStruct((g, rows, coutp), jnp.bfloat16),
            jax.ShapeDtypeStruct((g, 2, coutp), jnp.float32),
        ),
        compiler_params=pltpu.CompilerParams(
            dimension_semantics=("parallel",),
            vmem_limit_bytes=VMEM_LIMIT,
        ),
    )(halos, w_mat)

    # --- finalize BN statistics (tiny per-channel math, plain JAX) ----------------------
    m = N * H * W
    total = jnp.sum(stats, axis=0)                              # (2, coutp)
    mean = total[0] / m
    var = jnp.maximum(total[1] / m - mean * mean, 0.0)          # biased var; guard cancellation
    inv_std = jax.lax.rsqrt(var + EPS)
    gamma_p = jnp.pad(gamma, (0, coutp - cout))                 # padded channels -> 0 output
    beta_p = jnp.pad(beta, (0, coutp - cout))
    scale = (gamma_p * inv_std).astype(jnp.float32).reshape(1, coutp)
    shift = (beta_p - mean * gamma_p * inv_std).astype(jnp.float32).reshape(1, coutp)

    # --- pass 2: normalize + ReLU -------------------------------------------------------
    y = pl.pallas_call(
        bn_relu_kernel,
        grid=(g,),
        in_specs=[
            pl.BlockSpec((1, rows, coutp), lambda i: (i, 0, 0)),
            pl.BlockSpec((1, coutp), lambda i: (0, 0)),
            pl.BlockSpec((1, coutp), lambda i: (0, 0)),
        ],
        out_specs=pl.BlockSpec((1, rows, coutp), lambda i: (i, 0, 0)),
        out_shape=jax.ShapeDtypeStruct((g, rows, coutp), out_dtype),
        compiler_params=pltpu.CompilerParams(
            dimension_semantics=("parallel",),
            vmem_limit_bytes=VMEM_LIMIT,
        ),
    )(z, scale, shift)

    # (G, th*W, coutp) == (N, ht, th, W, coutp) -> (N, H, W, coutp); pure reshape, no transpose.
    return y.reshape(N, H, W, coutp)


def double_conv_forward(x_nchw, params):
    """Equivalent of double_conv.forward; input/output are NCHW like PyTorch."""
    out_ch = params["w2"].shape[0]
    x = jnp.transpose(x_nchw, (0, 2, 3, 1))                     # NCHW -> NHWC (only here)
    # Stage 1 keeps its (channel-padded) intermediate in bf16 to halve HBM traffic;
    # BN statistics / normalization math is f32 inside the kernels on every generation.
    y = conv_bn_relu(x, params["w1"], params["g1"], params["beta1"], out_dtype=jnp.bfloat16)
    y = conv_bn_relu(y, params["w2"], params["g2"], params["beta2"], out_dtype=jnp.float32)
    y = y[..., :out_ch]                                         # drop channel padding
    return jnp.transpose(y, (0, 3, 1, 2))                       # NHWC -> NCHW


def init_params(key, in_ch, out_ch):
    ks = jax.random.split(key, 8)
    return {
        "w1": 0.1 * jax.random.normal(ks[0], (out_ch, in_ch, 3, 3), jnp.float32),
        "b1": 0.1 * jax.random.normal(ks[1], (out_ch,), jnp.float32),   # cancelled by BN
        "g1": 1.0 + 0.1 * jax.random.normal(ks[2], (out_ch,), jnp.float32),
        "beta1": 0.1 * jax.random.normal(ks[3], (out_ch,), jnp.float32),
        "w2": 0.1 * jax.random.normal(ks[4], (out_ch, out_ch, 3, 3), jnp.float32),
        "b2": 0.1 * jax.random.normal(ks[5], (out_ch,), jnp.float32),   # cancelled by BN
        "g2": 1.0 + 0.1 * jax.random.normal(ks[6], (out_ch,), jnp.float32),
        "beta2": 0.1 * jax.random.normal(ks[7], (out_ch,), jnp.float32),
    }


# ---------------------------- pure-JAX f32 reference (for validation) -------------------
def _ref_conv_bn_relu(x_nhwc, w_oihw, b, gamma, beta):
    w_hwio = jnp.transpose(w_oihw, (2, 3, 1, 0))
    z = jax.lax.conv_general_dilated(
        x_nhwc, w_hwio, window_strides=(1, 1), padding="SAME",
        dimension_numbers=("NHWC", "HWIO", "NHWC")) + b
    mean = jnp.mean(z, axis=(0, 1, 2))
    var = jnp.mean((z - mean) ** 2, axis=(0, 1, 2))             # biased (training-mode BN)
    y = (z - mean) * jax.lax.rsqrt(var + EPS) * gamma + beta
    return jnp.maximum(y, 0.0)


if __name__ == "__main__":
    key = jax.random.PRNGKey(0)
    k_x, k_p = jax.random.split(key)

    N, in_ch, H, W = 2, 4, 16, 16
    out_ch = 8

    x = jax.random.normal(k_x, (N, in_ch, H, W), jnp.float32)
    params = init_params(k_p, in_ch, out_ch)

    out = jax.jit(double_conv_forward)(x, params)
    out = jax.block_until_ready(out)

    assert out.shape == (N, out_ch, H, W), out.shape
    assert bool(jnp.all(out >= 0.0)), "ReLU output must be non-negative"

    # f32 reference (conv bias included there — it cancels under training-mode BN).
    xr = jnp.transpose(x, (0, 2, 3, 1))
    r = _ref_conv_bn_relu(xr, params["w1"], params["b1"], params["g1"], params["beta1"])
    r = _ref_conv_bn_relu(r, params["w2"], params["b2"], params["g2"], params["beta2"])
    ref = jnp.transpose(r, (0, 3, 1, 2))
    err = float(jnp.max(jnp.abs(out - ref)))
    assert err < 0.25, f"max abs error vs f32 reference too large: {err}"

    print("KERNEL_OK")
</pallas_src>

<mosaic_0001>
module attributes {stable_mosaic.version = 11 : i64} {
  func.func @conv_stats_kernel(%arg0: i32, %arg1: memref<1x18x18x128xbf16, #tpu.memory_space<vmem>>, %arg2: memref<1152x128xbf16, #tpu.memory_space<vmem>>, %arg3: memref<1x256x128xbf16, #tpu.memory_space<vmem>>, %arg4: memref<1x2x128xf32, #tpu.memory_space<vmem>>) attributes {dimension_semantics = [#tpu.dimension_semantics<parallel>], iteration_bounds = array<i64: 2>, scalar_prefetch = 0 : i64, scratch_operands = 0 : i64, tpu.core_type = #tpu.core_type<tc>, window_params = [{transform_indices = @transform_0, window_bounds = array<i64: 1, 18, 18, 128>}, {pipeline_mode = #tpu.pipeline_mode<synchronous>, transform_indices = @transform_1, window_bounds = array<i64: 1152, 128>}, {transform_indices = @transform_2, window_bounds = array<i64: 1, 256, 128>}, {transform_indices = @transform_3, window_bounds = array<i64: 1, 2, 128>}]} {
    %c0 = arith.constant 0 : index
    %c0_0 = arith.constant 0 : index
    %c0_1 = arith.constant 0 : index
    %c0_2 = arith.constant 0 : index
    %0 = vector.load %arg1[%c0, %c0_0, %c0_1, %c0_2] : memref<1x18x18x128xbf16, #tpu.memory_space<vmem>>, vector<1x18x18x128xbf16>
    %1 = vector.shape_cast %0 : vector<1x18x18x128xbf16> to vector<18x18x128xbf16>
    %cst = arith.constant 0.000000e+00 : f32
    %2 = vector.broadcast %cst : f32 to vector<256x128xf32>
    %3 = vector.extract_strided_slice %1 {offsets = [0, 0, 0], sizes = [16, 16, 128], strides = [1, 1, 1]} : vector<18x18x128xbf16> to vector<16x16x128xbf16>
    %4 = vector.shape_cast %3 : vector<16x16x128xbf16> to vector<256x128xbf16>
    %c0_3 = arith.constant 0 : index
    %c0_4 = arith.constant 0 : index
    %5 = vector.load %arg2[%c0_3, %c0_4] : memref<1152x128xbf16, #tpu.memory_space<vmem>>, vector<128x128xbf16>
    %cst_5 = arith.constant dense<0.000000e+00> : vector<256x128xf32>
    %6 = tpu.matmul %4, %5, %cst_5 {dimension_numbers = #tpu.dot_dimension_numbers<[1], [0], [0], [1], [0, 0, 1, 1], [], []>} : vector<256x128xbf16>, vector<128x128xbf16>, vector<256x128xf32> -> vector<256x128xf32>
    %7 = arith.addf %2, %6 : vector<256x128xf32>
    %8 = vector.extract_strided_slice %1 {offsets = [0, 1, 0], sizes = [16, 16, 128], strides = [1, 1, 1]} : vector<18x18x128xbf16> to vector<16x16x128xbf16>
    %9 = vector.shape_cast %8 : vector<16x16x128xbf16> to vector<256x128xbf16>
    %c128 = arith.constant 128 : index
    %c0_6 = arith.constant 0 : index
    %10 = vector.load %arg2[%c128, %c0_6] : memref<1152x128xbf16, #tpu.memory_space<vmem>>, vector<128x128xbf16>
    %cst_7 = arith.constant dense<0.000000e+00> : vector<256x128xf32>
    %11 = tpu.matmul %9, %10, %cst_7 {dimension_numbers = #tpu.dot_dimension_numbers<[1], [0], [0], [1], [0, 0, 1, 1], [], []>} : vector<256x128xbf16>, vector<128x128xbf16>, vector<256x128xf32> -> vector<256x128xf32>
    %12 = arith.addf %7, %11 : vector<256x128xf32>
    %13 = vector.extract_strided_slice %1 {offsets = [0, 2, 0], sizes = [16, 16, 128], strides = [1, 1, 1]} : vector<18x18x128xbf16> to vector<16x16x128xbf16>
    %14 = vector.shape_cast %13 : vector<16x16x128xbf16> to vector<256x128xbf16>
    %c256 = arith.constant 256 : index
    %c0_8 = arith.constant 0 : index
    %15 = vector.load %arg2[%c256, %c0_8] : memref<1152x128xbf16, #tpu.memory_space<vmem>>, vector<128x128xbf16>
    %cst_9 = arith.constant dense<0.000000e+00> : vector<256x128xf32>
    %16 = tpu.matmul %14, %15, %cst_9 {dimension_numbers = #tpu.dot_dimension_numbers<[1], [0], [0], [1], [0, 0, 1, 1], [], []>} : vector<256x128xbf16>, vector<128x128xbf16>, vector<256x128xf32> -> vector<256x128xf32>
    %17 = arith.addf %12, %16 : vector<256x128xf32>
    %18 = vector.extract_strided_slice %1 {offsets = [1, 0, 0], sizes = [16, 16, 128], strides = [1, 1, 1]} : vector<18x18x128xbf16> to vector<16x16x128xbf16>
    %19 = vector.shape_cast %18 : vector<16x16x128xbf16> to vector<256x128xbf16>
    %c384 = arith.constant 384 : index
    %c0_10 = arith.constant 0 : index
    %20 = vector.load %arg2[%c384, %c0_10] : memref<1152x128xbf16, #tpu.memory_space<vmem>>, vector<128x128xbf16>
    %cst_11 = arith.constant dense<0.000000e+00> : vector<256x128xf32>
    %21 = tpu.matmul %19, %20, %cst_11 {dimension_numbers = #tpu.dot_dimension_numbers<[1], [0], [0], [1], [0, 0, 1, 1], [], []>} : vector<256x128xbf16>, vector<128x128xbf16>, vector<256x128xf32> -> vector<256x128xf32>
    %22 = arith.addf %17, %21 : vector<256x128xf32>
    %23 = vector.extract_strided_slice %1 {offsets = [1, 1, 0], sizes = [16, 16, 128], strides = [1, 1, 1]} : vector<18x18x128xbf16> to vector<16x16x128xbf16>
    %24 = vector.shape_cast %23 : vector<16x16x128xbf16> to vector<256x128xbf16>
    %c512 = arith.constant 512 : index
    %c0_12 = arith.constant 0 : index
    %25 = vector.load %arg2[%c512, %c0_12] : memref<1152x128xbf16, #tpu.memory_space<vmem>>, vector<128x128xbf16>
    %cst_13 = arith.constant dense<0.000000e+00> : vector<256x128xf32>
    %26 = tpu.matmul %24, %25, %cst_13 {dimension_numbers = #tpu.dot_dimension_numbers<[1], [0], [0], [1], [0, 0, 1, 1], [], []>} : vector<256x128xbf16>, vector<128x128xbf16>, vector<256x128xf32> -> vector<256x128xf32>
    %27 = arith.addf %22, %26 : vector<256x128xf32>
    %28 = vector.extract_strided_slice %1 {offsets = [1, 2, 0], sizes = [16, 16, 128], strides = [1, 1, 1]} : vector<18x18x128xbf16> to vector<16x16x128xbf16>
    %29 = vector.shape_cast %28 : vector<16x16x128xbf16> to vector<256x128xbf16>
    %c640 = arith.constant 640 : index
    %c0_14 = arith.constant 0 : index
    %30 = vector.load %arg2[%c640, %c0_14] : memref<1152x128xbf16, #tpu.memory_space<vmem>>, vector<128x128xbf16>
    %cst_15 = arith.constant dense<0.000000e+00> : vector<256x128xf32>
    %31 = tpu.matmul %29, %30, %cst_15 {dimension_numbers = #tpu.dot_dimension_numbers<[1], [0], [0], [1], [0, 0, 1, 1], [], []>} : vector<256x128xbf16>, vector<128x128xbf16>, vector<256x128xf32> -> vector<256x128xf32>
    %32 = arith.addf %27, %31 : vector<256x128xf32>
    %33 = vector.extract_strided_slice %1 {offsets = [2, 0, 0], sizes = [16, 16, 128], strides = [1, 1, 1]} : vector<18x18x128xbf16> to vector<16x16x128xbf16>
    %34 = vector.shape_cast %33 : vector<16x16x128xbf16> to vector<256x128xbf16>
    %c768 = arith.constant 768 : index
    %c0_16 = arith.constant 0 : index
    %35 = vector.load %arg2[%c768, %c0_16] : memref<1152x128xbf16, #tpu.memory_space<vmem>>, vector<128x128xbf16>
    %cst_17 = arith.constant dense<0.000000e+00> : vector<256x128xf32>
    %36 = tpu.matmul %34, %35, %cst_17 {dimension_numbers = #tpu.dot_dimension_numbers<[1], [0], [0], [1], [0, 0, 1, 1], [], []>} : vector<256x128xbf16>, vector<128x128xbf16>, vector<256x128xf32> -> vector<256x128xf32>
    %37 = arith.addf %32, %36 : vector<256x128xf32>
    %38 = vector.extract_strided_slice %1 {offsets = [2, 1, 0], sizes = [16, 16, 128], strides = [1, 1, 1]} : vector<18x18x128xbf16> to vector<16x16x128xbf16>
    %39 = vector.shape_cast %38 : vector<16x16x128xbf16> to vector<256x128xbf16>
    %c896 = arith.constant 896 : index
    %c0_18 = arith.constant 0 : index
    %40 = vector.load %arg2[%c896, %c0_18] : memref<1152x128xbf16, #tpu.memory_space<vmem>>, vector<128x128xbf16>
    %cst_19 = arith.constant dense<0.000000e+00> : vector<256x128xf32>
    %41 = tpu.matmul %39, %40, %cst_19 {dimension_numbers = #tpu.dot_dimension_numbers<[1], [0], [0], [1], [0, 0, 1, 1], [], []>} : vector<256x128xbf16>, vector<128x128xbf16>, vector<256x128xf32> -> vector<256x128xf32>
    %42 = arith.addf %37, %41 : vector<256x128xf32>
    %43 = vector.extract_strided_slice %1 {offsets = [2, 2, 0], sizes = [16, 16, 128], strides = [1, 1, 1]} : vector<18x18x128xbf16> to vector<16x16x128xbf16>
    %44 = vector.shape_cast %43 : vector<16x16x128xbf16> to vector<256x128xbf16>
    %c1024 = arith.constant 1024 : index
    %c0_20 = arith.constant 0 : index
    %45 = vector.load %arg2[%c1024, %c0_20] : memref<1152x128xbf16, #tpu.memory_space<vmem>>, vector<128x128xbf16>
    %cst_21 = arith.constant dense<0.000000e+00> : vector<256x128xf32>
    %46 = tpu.matmul %44, %45, %cst_21 {dimension_numbers = #tpu.dot_dimension_numbers<[1], [0], [0], [1], [0, 0, 1, 1], [], []>} : vector<256x128xbf16>, vector<128x128xbf16>, vector<256x128xf32> -> vector<256x128xf32>
    %47 = arith.addf %42, %46 : vector<256x128xf32>
    %48 = arith.truncf %47 : vector<256x128xf32> to vector<256x128xbf16>
    %c0_22 = arith.constant 0 : index
    %c0_23 = arith.constant 0 : index
    %c0_24 = arith.constant 0 : index
    %49 = vector.load %arg3[%c0_22, %c0_23, %c0_24] : memref<1x256x128xbf16, #tpu.memory_space<vmem>>, vector<1x256x128xbf16>
    %50 = vector.shape_cast %49 : vector<1x256x128xbf16> to vector<256x128xbf16>
    %51 = vector.shape_cast %48 : vector<256x128xbf16> to vector<1x256x128xbf16>
    tpu.vector_store %arg3[%c0_22, %c0_23, %c0_24], %51 {strides = array<i32>} : memref<1x256x128xbf16, #tpu.memory_space<vmem>>, vector<1x256x128xbf16>,
    %cst_25 = arith.constant dense<0.000000e+00> : vector<128xf32>
    %52 = vector.multi_reduction <add>, %47, %cst_25 [0] : vector<256x128xf32> to vector<128xf32>
    %53 = vector.shape_cast %52 : vector<128xf32> to vector<1x128xf32>
    %54 = arith.mulf %47, %47 : vector<256x128xf32>
    %cst_26 = arith.constant dense<0.000000e+00> : vector<128xf32>
    %55 = vector.multi_reduction <add>, %54, %cst_26 [0] : vector<256x128xf32> to vector<128xf32>
    %56 = vector.shape_cast %55 : vector<128xf32> to vector<1x128xf32>
    %57 = tpu.concatenate %53, %56 in 0 : vector<1x128xf32>, vector<1x128xf32> -> vector<2x128xf32>
    %c0_27 = arith.constant 0 : index
    %c0_28 = arith.constant 0 : index
    %c0_29 = arith.constant 0 : index
    %58 = vector.load %arg4[%c0_27, %c0_28, %c0_29] : memref<1x2x128xf32, #tpu.memory_space<vmem>>, vector<1x2x128xf32>
    %59 = vector.shape_cast %58 : vector<1x2x128xf32> to vector<2x128xf32>
    %60 = vector.shape_cast %57 : vector<2x128xf32> to vector<1x2x128xf32>
    tpu.vector_store %arg4[%c0_27, %c0_28, %c0_29], %60 {strides = array<i32>} : memref<1x2x128xf32, #tpu.memory_space<vmem>>, vector<1x2x128xf32>,
    return
  }
  func.func @transform_0(%arg0: i32) -> (i32, i32, i32, i32) {
    %c0_i32 = arith.constant 0 : i32
    %c0_i32_0 = arith.constant 0 : i32
    %c0_i32_1 = arith.constant 0 : i32
    %c0_i32_2 = arith.constant 0 : i32
    return %arg0, %c0_i32, %c0_i32_0, %c0_i32_1 : i32, i32, i32, i32
  }
  func.func @transform_1(%arg0: i32) -> (i32, i32) {
    %c0_i32 = arith.constant 0 : i32
    %c0_i32_0 = arith.constant 0 : i32
    %c0_i32_1 = arith.constant 0 : i32
    return %c0_i32, %c0_i32_0 : i32, i32
  }
  func.func @transform_2(%arg0: i32) -> (i32, i32, i32) {
    %c0_i32 = arith.constant 0 : i32
    %c0_i32_0 = arith.constant 0 : i32
    %c0_i32_1 = arith.constant 0 : i32
    return %arg0, %c0_i32, %c0_i32_0 : i32, i32, i32
  }
  func.func @transform_3(%arg0: i32) -> (i32, i32, i32) {
    %c0_i32 = arith.constant 0 : i32
    %c0_i32_0 = arith.constant 0 : i32
    %c0_i32_1 = arith.constant 0 : i32
    return %arg0, %c0_i32, %c0_i32_0 : i32, i32, i32
  }
}

module attributes {stable_mosaic.version = 11 : i64} {
  func.func @bn_relu_kernel(%arg0: i32, %arg1: memref<1x256x128xbf16, #tpu.memory_space<vmem>>, %arg2: memref<1x128xf32, #tpu.memory_space<vmem>>, %arg3: memref<1x128xf32, #tpu.memory_space<vmem>>, %arg4: memref<1x256x128xbf16, #tpu.memory_space<vmem>>) attributes {dimension_semantics = [#tpu.dimension_semantics<parallel>], iteration_bounds = array<i64: 2>, scalar_prefetch = 0 : i64, scratch_operands = 0 : i64, tpu.core_type = #tpu.core_type<tc>, window_params = [{transform_indices = @transform_0, window_bounds = array<i64: 1, 256, 128>}, {pipeline_mode = #tpu.pipeline_mode<synchronous>, transform_indices = @transform_1, window_bounds = array<i64: 1, 128>}, {pipeline_mode = #tpu.pipeline_mode<synchronous>, transform_indices = @transform_2, window_bounds = array<i64: 1, 128>}, {transform_indices = @transform_3, window_bounds = array<i64: 1, 256, 128>}]} {
    %c0 = arith.constant 0 : index
    %c0_0 = arith.constant 0 : index
    %c0_1 = arith.constant 0 : index
    %0 = vector.load %arg1[%c0, %c0_0, %c0_1] : memref<1x256x128xbf16, #tpu.memory_space<vmem>>, vector<1x256x128xbf16>
    %1 = vector.shape_cast %0 : vector<1x256x128xbf16> to vector<256x128xbf16>
    %2 = arith.extf %1 : vector<256x128xbf16> to vector<256x128xf32>
    %c0_2 = arith.constant 0 : index
    %c0_3 = arith.constant 0 : index
    %3 = vector.load %arg2[%c0_2, %c0_3] : memref<1x128xf32, #tpu.memory_space<vmem>>, vector<1x128xf32>
    %4 = vector.broadcast %3 : vector<1x128xf32> to vector<256x128xf32>
    %5 = arith.mulf %2, %4 : vector<256x128xf32>
    %c0_4 = arith.constant 0 : index
    %c0_5 = arith.constant 0 : index
    %6 = vector.load %arg3[%c0_4, %c0_5] : memref<1x128xf32, #tpu.memory_space<vmem>>, vector<1x128xf32>
    %7 = vector.broadcast %6 : vector<1x128xf32> to vector<256x128xf32>
    %8 = arith.addf %5, %7 : vector<256x128xf32>
    %cst = arith.constant 0.000000e+00 : f32
    %9 = vector.broadcast %cst : f32 to vector<256x128xf32>
    %10 = arith.maximumf %8, %9 : vector<256x128xf32>
    %11 = arith.truncf %10 : vector<256x128xf32> to vector<256x128xbf16>
    %c0_6 = arith.constant 0 : index
    %c0_7 = arith.constant 0 : index
    %c0_8 = arith.constant 0 : index
    %12 = vector.load %arg4[%c0_6, %c0_7, %c0_8] : memref<1x256x128xbf16, #tpu.memory_space<vmem>>, vector<1x256x128xbf16>
    %13 = vector.shape_cast %12 : vector<1x256x128xbf16> to vector<256x128xbf16>
    %14 = vector.shape_cast %11 : vector<256x128xbf16> to vector<1x256x128xbf16>
    tpu.vector_store %arg4[%c0_6, %c0_7, %c0_8], %14 {strides = array<i32>} : memref<1x256x128xbf16, #tpu.memory_space<vmem>>, vector<1x256x128xbf16>,
    return
  }
  func.func @transform_0(%arg0: i32) -> (i32, i32, i32) {
    %c0_i32 = arith.constant 0 : i32
    %c0_i32_0 = arith.constant 0 : i32
    %c0_i32_1 = arith.constant 0 : i32
    return %arg0, %c0_i32, %c0_i32_0 : i32, i32, i32
  }
  func.func @transform_1(%arg0: i32) -> (i32, i32) {
    %c0_i32 = arith.constant 0 : i32
    %c0_i32_0 = arith.constant 0 : i32
    %c0_i32_1 = arith.constant 0 : i32
    return %c0_i32, %c0_i32_0 : i32, i32
  }
  func.func @transform_2(%arg0: i32) -> (i32, i32) {
    %c0_i32 = arith.constant 0 : i32
    %c0_i32_0 = arith.constant 0 : i32
    %c0_i32_1 = arith.constant 0 : i32
    return %c0_i32, %c0_i32_0 : i32, i32
  }
  func.func @transform_3(%arg0: i32) -> (i32, i32, i32) {
    %c0_i32 = arith.constant 0 : i32
    %c0_i32_0 = arith.constant 0 : i32
    %c0_i32_1 = arith.constant 0 : i32
    return %arg0, %c0_i32, %c0_i32_0 : i32, i32, i32
  }
}

module attributes {stable_mosaic.version = 11 : i64} {
  func.func @bn_relu_kernel(%arg0: i32, %arg1: memref<1x256x128xbf16, #tpu.memory_space<vmem>>, %arg2: memref<1x128xf32, #tpu.memory_space<vmem>>, %arg3: memref<1x128xf32, #tpu.memory_space<vmem>>, %arg4: memref<1x256x128xf32, #tpu.memory_space<vmem>>) attributes {dimension_semantics = [#tpu.dimension_semantics<parallel>], iteration_bounds = array<i64: 2>, scalar_prefetch = 0 : i64, scratch_operands = 0 : i64, tpu.core_type = #tpu.core_type<tc>, window_params = [{transform_indices = @transform_0, window_bounds = array<i64: 1, 256, 128>}, {pipeline_mode = #tpu.pipeline_mode<synchronous>, transform_indices = @transform_1, window_bounds = array<i64: 1, 128>}, {pipeline_mode = #tpu.pipeline_mode<synchronous>, transform_indices = @transform_2, window_bounds = array<i64: 1, 128>}, {transform_indices = @transform_3, window_bounds = array<i64: 1, 256, 128>}]} {
    %c0 = arith.constant 0 : index
    %c0_0 = arith.constant 0 : index
    %c0_1 = arith.constant 0 : index
    %0 = vector.load %arg1[%c0, %c0_0, %c0_1] : memref<1x256x128xbf16, #tpu.memory_space<vmem>>, vector<1x256x128xbf16>
    %1 = vector.shape_cast %0 : vector<1x256x128xbf16> to vector<256x128xbf16>
    %2 = arith.extf %1 : vector<256x128xbf16> to vector<256x128xf32>
    %c0_2 = arith.constant 0 : index
    %c0_3 = arith.constant 0 : index
    %3 = vector.load %arg2[%c0_2, %c0_3] : memref<1x128xf32, #tpu.memory_space<vmem>>, vector<1x128xf32>
    %4 = vector.broadcast %3 : vector<1x128xf32> to vector<256x128xf32>
    %5 = arith.mulf %2, %4 : vector<256x128xf32>
    %c0_4 = arith.constant 0 : index
    %c0_5 = arith.constant 0 : index
    %6 = vector.load %arg3[%c0_4, %c0_5] : memref<1x128xf32, #tpu.memory_space<vmem>>, vector<1x128xf32>
    %7 = vector.broadcast %6 : vector<1x128xf32> to vector<256x128xf32>
    %8 = arith.addf %5, %7 : vector<256x128xf32>
    %cst = arith.constant 0.000000e+00 : f32
    %9 = vector.broadcast %cst : f32 to vector<256x128xf32>
    %10 = arith.maximumf %8, %9 : vector<256x128xf32>
    %c0_6 = arith.constant 0 : index
    %c0_7 = arith.constant 0 : index
    %c0_8 = arith.constant 0 : index
    %11 = vector.load %arg4[%c0_6, %c0_7, %c0_8] : memref<1x256x128xf32, #tpu.memory_space<vmem>>, vector<1x256x128xf32>
    %12 = vector.shape_cast %11 : vector<1x256x128xf32> to vector<256x128xf32>
    %13 = vector.shape_cast %10 : vector<256x128xf32> to vector<1x256x128xf32>
    tpu.vector_store %arg4[%c0_6, %c0_7, %c0_8], %13 {strides = array<i32>} : memref<1x256x128xf32, #tpu.memory_space<vmem>>, vector<1x256x128xf32>,
    return
  }
  func.func @transform_0(%arg0: i32) -> (i32, i32, i32) {
    %c0_i32 = arith.constant 0 : i32
    %c0_i32_0 = arith.constant 0 : i32
    %c0_i32_1 = arith.constant 0 : i32
    return %arg0, %c0_i32, %c0_i32_0 : i32, i32, i32
  }
  func.func @transform_1(%arg0: i32) -> (i32, i32) {
    %c0_i32 = arith.constant 0 : i32
    %c0_i32_0 = arith.constant 0 : i32
    %c0_i32_1 = arith.constant 0 : i32
    return %c0_i32, %c0_i32_0 : i32, i32
  }
  func.func @transform_2(%arg0: i32) -> (i32, i32) {
    %c0_i32 = arith.constant 0 : i32
    %c0_i32_0 = arith.constant 0 : i32
    %c0_i32_1 = arith.constant 0 : i32
    return %c0_i32, %c0_i32_0 : i32, i32
  }
  func.func @transform_3(%arg0: i32) -> (i32, i32, i32) {
    %c0_i32 = arith.constant 0 : i32
    %c0_i32_0 = arith.constant 0 : i32
    %c0_i32_1 = arith.constant 0 : i32
    return %arg0, %c0_i32, %c0_i32_0 : i32, i32, i32
  }
}

</mosaic_0001>

<bundles_post_ra>
// kernel: double_conv_forward.7
= control target key start
LH: loop header
LB: loop body
LE: loop exit
PB: predicated region body
PF: predicated region fallthrough
CT: control target
= control target key end

     0   :  { %s556_s12 = smov 0   ;;  %s703_s0 = inlined_call_operand.vmem [shape: bf16[2,256,128], index: 0, kind: input, shape index: {}]   ;;  %s704_s1 = inlined_call_operand.vmem [shape: f32[1,128], index: 1, kind: input, shape index: {}]   ;;  %s705_s2 = inlined_call_operand.vmem [shape: f32[1,128], index: 2, kind: input, shape index: {}]   ;;  %s706_s3 = inlined_call_operand.vmem [shape: f32[2,256,128], index: 3, kind: output, shape index: {}]  }
   0x1 LB: > { %s426_s13 = sadd.s32 4294967295, %s534_s12   ;;  %p430_p0 = scmp.ge.s32.totalorder %s534_s12, 1  ;;  %s534_s12 = sphi %s556_s12, %s13_s12  }
   0x2   : > { %p137_p1 = scmp.lt.s32.totalorder %s534_s12, 3 }
   0x4   : > { %p138_p2 = pnand %p430_p0, %p137_p1 }
   0x5   : > { %p161_p3 = scmp.lt.s32.totalorder (!%p138_p2), %s426_s13, 1 }
   0x6   : > { %141 = sbr.rel (%p138_p2) target bundleno = 55 (0x37), region = 32 }
   0xb   : > { %s708_s13 = smov (!%p161_p3, %s426_s13), 1  ;;  %v575_v0 = vld [vmem:[%s704_s1] ss:$0 sm:$0xff] }
   0xc   : > { %s437_s14 = sshll.u32 %s708_s13, 7  ;;  %v583_v5 = vld [vmem:[%s705_s2] ss:$0 sm:$0xff]  ;;  %s438_s22 = sshll.u32 %s708_s13, 8 }
   0xd   : > { %s570_s17 = scalar_lea.vmem %s703_s0, %s437_s14  ;;  %s602_s25 = scalar_lea.vmem %s706_s3, %s438_s22 }
   0xe   : > { %v440_v1 = vld [vmem:[%s570_s17] sm:$0xff]   ;;  %v503_v2 = vld [vmem:[%s570_s17 + $0x8] sm:$0xff]   ;;  %v504_v3 = vld [vmem:[%s570_s17 + $0x10] sm:$0xff]  }
   0xf   : > { %v441_v4 = vunpack.c.l.bf16 %v440_v1  ;;  %v442_v6 = vunpack.c.h.bf16 %v440_v1  ;;  %v445_v7 = vunpack.c.l.bf16 %v503_v2  ;;  %v446_v8 = vunpack.c.h.bf16 %v503_v2  ;;  %v505_v9 = vld [vmem:[%s570_s17 + $0x18] sm:$0xff]   ;;  %v506_v30 = vld [vmem:[%s570_s17 + $0x20] sm:$0xff]   ;;  %v507_v31 = vld [vmem:[%s570_s17 + $0x28] sm:$0xff]  }
  0x10   : > { %v449_v10 = vunpack.c.l.bf16 %v504_v3  ;;  %v450_v11 = vunpack.c.h.bf16 %v504_v3  ;;  %v453_v12 = vunpack.c.l.bf16 %v505_v9  ;;  %v454_v13 = vunpack.c.h.bf16 %v505_v9  ;;  %v508_v36 = vld [vmem:[%s570_s17 + $0x30] sm:$0xff]   ;;  %v509_v37 = vld [vmem:[%s570_s17 + $0x38] sm:$0xff]   ;;  %v510_v3 = vld [vmem:[%s570_s17 + $0x40] sm:$0xff]  }
  0x11   : > { %v239_v14 = vmul.f32 %v575_v0, %v441_v4  ;;  %v240_v15 = vmul.f32 %v575_v0, %v442_v6  ;;  %v241_v16 = vmul.f32 %v575_v0, %v445_v7  ;;  %v242_v17 = vmul.f32 %v575_v0, %v446_v8  ;;  %v511_v4 = vld [vmem:[%s570_s17 + $0x48] sm:$0xff]   ;;  %v512_v6 = vld [vmem:[%s570_s17 + $0x50] sm:$0xff]  }
  0x12   : > { %v243_v18 = vmul.f32 %v575_v0, %v449_v10  ;;  %v244_v19 = vmul.f32 %v575_v0, %v450_v11  ;;  %v245_v20 = vmul.f32 %v575_v0, %v453_v12  ;;  %v246_v21 = vmul.f32 %v575_v0, %v454_v13  ;;  %v513_v11 = vld [vmem:[%s570_s17 + $0x58] sm:$0xff]  }
  0x13   : > { %v275_v22 = vadd.f32 %v583_v5, %v239_v14  ;;  %v276_v23 = vadd.f32 %v583_v5, %v240_v15  ;;  %v277_v24 = vadd.f32 %v583_v5, %v241_v16  ;;  %v278_v25 = vadd.f32 %v583_v5, %v242_v17 }
  0x14   : > { %v279_v26 = vadd.f32 %v583_v5, %v243_v18  ;;  %v280_v27 = vadd.f32 %v583_v5, %v244_v19  ;;  %v281_v28 = vadd.f32 %v583_v5, %v245_v20  ;;  %v282_v29 = vadd.f32 %v583_v5, %v246_v21 }
  0x15   : > { %v307_v32 = vmax.f32 %v275_v22, 0.0  ;;  %v308_v33 = vmax.f32 %v276_v23, 0.0  ;;  %v309_v34 = vmax.f32 %v277_v24, 0.0  ;;  %v310_v35 = vmax.f32 %v278_v25, 0.0 }
  0x16   : > { %v311_v38 = vmax.f32 %v279_v26, 0.0  ;;  %v312_v39 = vmax.f32 %v280_v27, 0.0  ;;  %v313_v40 = vmax.f32 %v281_v28, 0.0  ;;  %v314_v41 = vmax.f32 %v282_v29, 0.0 }
  0x17   : > { %339 = vst [vmem:[%s602_s25] sm:$0xff] %v307_v32  ;;  %v457_v42 = vunpack.c.l.bf16 %v506_v30  ;;  %v458_v43 = vunpack.c.h.bf16 %v506_v30  ;;  %v461_v44 = vunpack.c.l.bf16 %v507_v31  ;;  %v462_v45 = vunpack.c.h.bf16 %v507_v31 }
  0x18   : > { %340 = vst [vmem:[%s602_s25 + $0x8] sm:$0xff] %v308_v33  ;;  %v465_v46 = vunpack.c.l.bf16 %v508_v36  ;;  %v466_v47 = vunpack.c.h.bf16 %v508_v36  ;;  %v469_v48 = vunpack.c.l.bf16 %v509_v37  ;;  %v470_v49 = vunpack.c.h.bf16 %v509_v37 }
  0x19   : > { %341 = vst [vmem:[%s602_s25 + $0x10] sm:$0xff] %v309_v34  ;;  %v247_v50 = vmul.f32 %v575_v0, %v457_v42  ;;  %v248_v51 = vmul.f32 %v575_v0, %v458_v43  ;;  %v249_v52 = vmul.f32 %v575_v0, %v461_v44  ;;  %v250_v53 = vmul.f32 %v575_v0, %v462_v45  ;;  %v516_v42 = vld [vmem:[%s570_s17 + $0x70] sm:$0xff]  }
  0x1a   : > { %342 = vst [vmem:[%s602_s25 + $0x18] sm:$0xff] %v310_v35  ;;  %v251_v54 = vmul.f32 %v575_v0, %v465_v46  ;;  %v252_v55 = vmul.f32 %v575_v0, %v466_v47  ;;  %v253_v56 = vmul.f32 %v575_v0, %v469_v48  ;;  %v254_v57 = vmul.f32 %v575_v0, %v470_v49  ;;  %v517_v47 = vld [vmem:[%s570_s17 + $0x78] sm:$0xff]  }
  0x1b   : > { %343 = vst [vmem:[%s602_s25 + $0x20] sm:$0xff] %v311_v38  ;;  %v283_v58 = vadd.f32 %v583_v5, %v247_v50  ;;  %v284_v59 = vadd.f32 %v583_v5, %v248_v51  ;;  %v285_v60 = vadd.f32 %v583_v5, %v249_v52  ;;  %v286_v61 = vadd.f32 %v583_v5, %v250_v53 }
  0x1c   : > { %344 = vst [vmem:[%s602_s25 + $0x28] sm:$0xff] %v312_v39  ;;  %v287_v62 = vadd.f32 %v583_v5, %v251_v54  ;;  %v288_v63 = vadd.f32 %v583_v5, %v252_v55  ;;  %v289_v1 = vadd.f32 %v583_v5, %v253_v56  ;;  %v290_v2 = vadd.f32 %v583_v5, %v254_v57 }
  0x1d   : > { %345 = vst [vmem:[%s602_s25 + $0x30] sm:$0xff] %v313_v40  ;;  %v315_v7 = vmax.f32 %v283_v58, 0.0  ;;  %v316_v8 = vmax.f32 %v284_v59, 0.0  ;;  %v317_v9 = vmax.f32 %v285_v60, 0.0  ;;  %v318_v10 = vmax.f32 %v286_v61, 0.0  ;;  %v514_v40 = vld [vmem:[%s570_s17 + $0x60] sm:$0xff]  }
  0x1e   : > { %346 = vst [vmem:[%s602_s25 + $0x38] sm:$0xff] %v314_v41  ;;  %v319_v12 = vmax.f32 %v287_v62, 0.0  ;;  %v320_v13 = vmax.f32 %v288_v63, 0.0  ;;  %v321_v14 = vmax.f32 %v289_v1, 0.0  ;;  %v322_v15 = vmax.f32 %v290_v2, 0.0  ;;  %v515_v41 = vld [vmem:[%s570_s17 + $0x68] sm:$0xff]  }
  0x1f   : > { %347 = vst [vmem:[%s602_s25 + $0x40] sm:$0xff] %v315_v7  ;;  %v473_v16 = vunpack.c.l.bf16 %v510_v3  ;;  %v474_v17 = vunpack.c.h.bf16 %v510_v3  ;;  %v477_v18 = vunpack.c.l.bf16 %v511_v4  ;;  %v478_v19 = vunpack.c.h.bf16 %v511_v4 }
  0x20   : > { %348 = vst [vmem:[%s602_s25 + $0x48] sm:$0xff] %v316_v8  ;;  %v481_v20 = vunpack.c.l.bf16 %v512_v6  ;;  %v482_v21 = vunpack.c.h.bf16 %v512_v6  ;;  %v485_v22 = vunpack.c.l.bf16 %v513_v11  ;;  %v486_v23 = vunpack.c.h.bf16 %v513_v11 }
  0x21   : > { %349 = vst [vmem:[%s602_s25 + $0x50] sm:$0xff] %v317_v9  ;;  %v255_v24 = vmul.f32 %v575_v0, %v473_v16  ;;  %v256_v25 = vmul.f32 %v575_v0, %v474_v17  ;;  %v257_v26 = vmul.f32 %v575_v0, %v477_v18  ;;  %v258_v27 = vmul.f32 %v575_v0, %v478_v19 }
  0x22   : > { %350 = vst [vmem:[%s602_s25 + $0x58] sm:$0xff] %v318_v10  ;;  %v259_v28 = vmul.f32 %v575_v0, %v481_v20  ;;  %v260_v29 = vmul.f32 %v575_v0, %v482_v21  ;;  %v261_v30 = vmul.f32 %v575_v0, %v485_v22  ;;  %v262_v31 = vmul.f32 %v575_v0, %v486_v23 }
  0x23   : > { %351 = vst [vmem:[%s602_s25 + $0x60] sm:$0xff] %v319_v12  ;;  %v291_v32 = vadd.f32 %v583_v5, %v255_v24  ;;  %v292_v33 = vadd.f32 %v583_v5, %v256_v25  ;;  %v293_v34 = vadd.f32 %v583_v5, %v257_v26  ;;  %v294_v35 = vadd.f32 %v583_v5, %v258_v27 }
  0x24   : > { %352 = vst [vmem:[%s602_s25 + $0x68] sm:$0xff] %v320_v13  ;;  %v295_v36 = vadd.f32 %v583_v5, %v259_v28  ;;  %v296_v37 = vadd.f32 %v583_v5, %v260_v29  ;;  %v297_v38 = vadd.f32 %v583_v5, %v261_v30  ;;  %v298_v39 = vadd.f32 %v583_v5, %v262_v31 }
  0x25   : > { %353 = vst [vmem:[%s602_s25 + $0x70] sm:$0xff] %v321_v14  ;;  %v323_v43 = vmax.f32 %v291_v32, 0.0  ;;  %v324_v44 = vmax.f32 %v292_v33, 0.0  ;;  %v325_v45 = vmax.f32 %v293_v34, 0.0  ;;  %v326_v46 = vmax.f32 %v294_v35, 0.0 }
  0x26   : > { %354 = vst [vmem:[%s602_s25 + $0x78] sm:$0xff] %v322_v15  ;;  %v327_v48 = vmax.f32 %v295_v36, 0.0  ;;  %v328_v49 = vmax.f32 %v296_v37, 0.0  ;;  %v329_v50 = vmax.f32 %v297_v38, 0.0  ;;  %v330_v51 = vmax.f32 %v298_v39, 0.0 }
  0x27   : > { %355 = vst [vmem:[%s602_s25 + $0x80] sm:$0xff] %v323_v43  ;;  %v489_v52 = vunpack.c.l.bf16 %v514_v40  ;;  %v490_v53 = vunpack.c.h.bf16 %v514_v40  ;;  %v493_v54 = vunpack.c.l.bf16 %v515_v41  ;;  %v494_v55 = vunpack.c.h.bf16 %v515_v41 }
  0x28   : > { %356 = vst [vmem:[%s602_s25 + $0x88] sm:$0xff] %v324_v44  ;;  %v497_v56 = vunpack.c.l.bf16 %v516_v42  ;;  %v498_v57 = vunpack.c.h.bf16 %v516_v42  ;;  %v501_v58 = vunpack.c.l.bf16 %v517_v47  ;;  %v502_v59 = vunpack.c.h.bf16 %v517_v47 }
  0x29   : > { %357 = vst [vmem:[%s602_s25 + $0x90] sm:$0xff] %v325_v45  ;;  %v263_v60 = vmul.f32 %v575_v0, %v489_v52  ;;  %v264_v61 = vmul.f32 %v575_v0, %v490_v53  ;;  %v265_v62 = vmul.f32 %v575_v0, %v493_v54  ;;  %v266_v63 = vmul.f32 %v575_v0, %v494_v55 }
  0x2a   : > { %358 = vst [vmem:[%s602_s25 + $0x98] sm:$0xff] %v326_v46  ;;  %v267_v1 = vmul.f32 %v575_v0, %v497_v56  ;;  %v268_v2 = vmul.f32 %v575_v0, %v498_v57  ;;  %v269_v3 = vmul.f32 %v575_v0, %v501_v58  ;;  %v270_v4 = vmul.f32 %v575_v0, %v502_v59 }
  0x2b   : > { %359 = vst [vmem:[%s602_s25 + $0xa0] sm:$0xff] %v327_v48  ;;  %v299_v6 = vadd.f32 %v583_v5, %v263_v60  ;;  %v300_v7 = vadd.f32 %v583_v5, %v264_v61  ;;  %v301_v8 = vadd.f32 %v583_v5, %v265_v62  ;;  %v302_v9 = vadd.f32 %v583_v5, %v266_v63 }
  0x2c   : > { %360 = vst [vmem:[%s602_s25 + $0xa8] sm:$0xff] %v328_v49  ;;  %v303_v10 = vadd.f32 %v583_v5, %v267_v1  ;;  %v304_v11 = vadd.f32 %v583_v5, %v268_v2  ;;  %v305_v14 = vadd.f32 %v583_v5, %v269_v3  ;;  %v306_v16 = vadd.f32 %v583_v5, %v270_v4 }
  0x2d   : > { %361 = vst [vmem:[%s602_s25 + $0xb0] sm:$0xff] %v329_v50  ;;  %v331_v0 = vmax.f32 %v299_v6, 0.0  ;;  %v332_v12 = vmax.f32 %v300_v7, 0.0  ;;  %v333_v13 = vmax.f32 %v301_v8, 0.0  ;;  %v334_v15 = vmax.f32 %v302_v9, 0.0 }
  0x2e   : > { %362 = vst [vmem:[%s602_s25 + $0xb8] sm:$0xff] %v330_v51  ;;  %v335_v17 = vmax.f32 %v303_v10, 0.0  ;;  %v336_v18 = vmax.f32 %v304_v11, 0.0  ;;  %v337_v19 = vmax.f32 %v305_v14, 0.0  ;;  %v338_v20 = vmax.f32 %v306_v16, 0.0 }
  0x2f   : > { %363 = vst [vmem:[%s602_s25 + $0xc0] sm:$0xff] %v331_v0 }
  0x30   : > { %364 = vst [vmem:[%s602_s25 + $0xc8] sm:$0xff] %v332_v12 }
  0x31   : > { %365 = vst [vmem:[%s602_s25 + $0xd0] sm:$0xff] %v333_v13 }
  0x32   : > { %366 = vst [vmem:[%s602_s25 + $0xd8] sm:$0xff] %v334_v15 }
  0x33   : > { %367 = vst [vmem:[%s602_s25 + $0xe0] sm:$0xff] %v335_v17 }
  0x34   : > { %368 = vst [vmem:[%s602_s25 + $0xe8] sm:$0xff] %v336_v18 }
  0x35   : > { %369 = vst [vmem:[%s602_s25 + $0xf0] sm:$0xff] %v337_v19 }
  0x36   : > { %370 = vst [vmem:[%s602_s25 + $0xf8] sm:$0xff] %v338_v20 }
  0x37 PF: > { %s13_s12 = sadd.s32 1, %s534_s12  }
  0x38   : > { %p10_p4 = scmp.ge.s32.totalorder %s13_s12, 4  }
  0x3a   :  { %12 = sbr.rel (!%p10_p4) target bundleno = 1 (0x1), region = 62 }

// kernel: double_conv_forward.5
= control target key start
LH: loop header
LB: loop body
LE: loop exit
PB: predicated region body
PF: predicated region fallthrough
CT: control target
= control target key end

     0   :  { %s683_s12 = smov 0   ;;  %s817_s0 = inlined_call_operand.vmem [shape: bf16[2,256,128], index: 0, kind: input, shape index: {}]   ;;  %s818_s1 = inlined_call_operand.vmem [shape: f32[1,128], index: 1, kind: input, shape index: {}]   ;;  %s819_s2 = inlined_call_operand.vmem [shape: f32[1,128], index: 2, kind: input, shape index: {}]   ;;  %s820_s3 = inlined_call_operand.vmem [shape: bf16[2,256,128], index: 3, kind: output, shape index: {}]  }
   0x1 LB: > { %s458_s13 = sadd.s32 4294967295, %s661_s12   ;;  %p462_p0 = scmp.ge.s32.totalorder %s661_s12, 1  ;;  %s661_s12 = sphi %s683_s12, %s13_s12  }
   0x2   : > { %p137_p1 = scmp.lt.s32.totalorder %s661_s12, 3 }
   0x4   : > { %p138_p2 = pnand %p462_p0, %p137_p1 }
   0x5   : > { %p161_p3 = scmp.lt.s32.totalorder (!%p138_p2), %s458_s13, 1 }
   0x6   : > { %141 = sbr.rel (%p138_p2) target bundleno = 57 (0x39), region = 32 }
   0xb   : > { %s822_s13 = smov (!%p161_p3, %s458_s13), 1  ;;  %v704_v0 = vld [vmem:[%s818_s1] ss:$0 sm:$0xff] }
   0xc   : > { %s469_s14 = sshll.u32 %s822_s13, 7  ;;  %v712_v6 = vld [vmem:[%s819_s2] ss:$0 sm:$0xff] }
   0xd   : > { %s699_s17 = scalar_lea.vmem %s817_s0, %s469_s14  ;;  %s738_s24 = scalar_lea.vmem %s820_s3, %s469_s14 }
   0xe   : > { %v472_v1 = vld [vmem:[%s699_s17] sm:$0xff]   ;;  %v615_v2 = vld [vmem:[%s699_s17 + $0x8] sm:$0xff]   ;;  %v616_v3 = vld [vmem:[%s699_s17 + $0x10] sm:$0xff]  }
   0xf   : > { %v473_v4 = vunpack.c.l.bf16 %v472_v1  ;;  %v474_v5 = vunpack.c.h.bf16 %v472_v1  ;;  %v477_v7 = vunpack.c.l.bf16 %v615_v2  ;;  %v478_v8 = vunpack.c.h.bf16 %v615_v2  ;;  %v617_v9 = vld [vmem:[%s699_s17 + $0x18] sm:$0xff]   ;;  %v618_v30 = vld [vmem:[%s699_s17 + $0x20] sm:$0xff]   ;;  %v619_v35 = vld [vmem:[%s699_s17 + $0x28] sm:$0xff]  }
  0x10   : > { %v481_v10 = vunpack.c.l.bf16 %v616_v3  ;;  %v482_v11 = vunpack.c.h.bf16 %v616_v3  ;;  %v485_v12 = vunpack.c.l.bf16 %v617_v9  ;;  %v486_v13 = vunpack.c.h.bf16 %v617_v9  ;;  %v620_v40 = vld [vmem:[%s699_s17 + $0x30] sm:$0xff]   ;;  %v621_v45 = vld [vmem:[%s699_s17 + $0x38] sm:$0xff]   ;;  %v622_v3 = vld [vmem:[%s699_s17 + $0x40] sm:$0xff]  }
  0x11   : > { %v239_v14 = vmul.f32 %v704_v0, %v473_v4  ;;  %v240_v15 = vmul.f32 %v704_v0, %v474_v5  ;;  %v241_v16 = vmul.f32 %v704_v0, %v477_v7  ;;  %v242_v17 = vmul.f32 %v704_v0, %v478_v8 }
  0x12   : > { %v243_v18 = vmul.f32 %v704_v0, %v481_v10  ;;  %v244_v19 = vmul.f32 %v704_v0, %v482_v11  ;;  %v245_v20 = vmul.f32 %v704_v0, %v485_v12  ;;  %v246_v21 = vmul.f32 %v704_v0, %v486_v13  ;;  %v623_v13 = vld [vmem:[%s699_s17 + $0x48] sm:$0xff]  }
  0x13   : > { %v275_v22 = vadd.f32 %v712_v6, %v239_v14  ;;  %v276_v23 = vadd.f32 %v712_v6, %v240_v15  ;;  %v277_v24 = vadd.f32 %v712_v6, %v241_v16  ;;  %v278_v25 = vadd.f32 %v712_v6, %v242_v17 }
  0x14   : > { %v279_v26 = vadd.f32 %v712_v6, %v243_v18  ;;  %v280_v27 = vadd.f32 %v712_v6, %v244_v19  ;;  %v281_v28 = vadd.f32 %v712_v6, %v245_v20  ;;  %v282_v29 = vadd.f32 %v712_v6, %v246_v21  ;;  %v624_v18 = vld [vmem:[%s699_s17 + $0x50] sm:$0xff]  }
  0x15   : > { %v307_v31 = vmax.f32 %v275_v22, 0.0  ;;  %v308_v32 = vmax.f32 %v276_v23, 0.0  ;;  %v309_v33 = vmax.f32 %v277_v24, 0.0  ;;  %v310_v34 = vmax.f32 %v278_v25, 0.0  ;;  %v625_v23 = vld [vmem:[%s699_s17 + $0x58] sm:$0xff]  }
  0x16   : > { %v311_v36 = vmax.f32 %v279_v26, 0.0  ;;  %v312_v37 = vmax.f32 %v280_v27, 0.0  ;;  %v313_v38 = vmax.f32 %v281_v28, 0.0  ;;  %v314_v39 = vmax.f32 %v282_v29, 0.0 }
  0x17   : > { %v538_v41 = vpack.c.bf16 %v308_v32, %v307_v31  ;;  %v543_v42 = vpack.c.bf16 %v310_v34, %v309_v33  ;;  %v489_v43 = vunpack.c.l.bf16 %v618_v30  ;;  %v490_v44 = vunpack.c.h.bf16 %v618_v30 }
  0x18   : > { %v548_v46 = vpack.c.bf16 %v312_v37, %v311_v36  ;;  %v553_v47 = vpack.c.bf16 %v314_v39, %v313_v38  ;;  %v493_v48 = vunpack.c.l.bf16 %v619_v35  ;;  %v494_v49 = vunpack.c.h.bf16 %v619_v35 }
  0x19   : > { %539 = vst [vmem:[%s738_s24] sm:$0xff] %v538_v41   ;;  %v247_v50 = vmul.f32 %v704_v0, %v489_v43  ;;  %v248_v51 = vmul.f32 %v704_v0, %v490_v44  ;;  %v497_v52 = vunpack.c.l.bf16 %v620_v40  ;;  %v498_v53 = vunpack.c.h.bf16 %v620_v40  ;;  %v626_v40 = vld [vmem:[%s699_s17 + $0x60] sm:$0xff]  }
  0x1a   : > { %630 = vst [vmem:[%s738_s24 + $0x8] sm:$0xff] %v543_v42   ;;  %v249_v54 = vmul.f32 %v704_v0, %v493_v48  ;;  %v250_v55 = vmul.f32 %v704_v0, %v494_v49  ;;  %v501_v56 = vunpack.c.l.bf16 %v621_v45  ;;  %v502_v57 = vunpack.c.h.bf16 %v621_v45 }
  0x1b   : > { %631 = vst [vmem:[%s738_s24 + $0x10] sm:$0xff] %v548_v46   ;;  %v283_v58 = vadd.f32 %v712_v6, %v247_v50  ;;  %v284_v59 = vadd.f32 %v712_v6, %v248_v51  ;;  %v251_v60 = vmul.f32 %v704_v0, %v497_v52  ;;  %v252_v61 = vmul.f32 %v704_v0, %v498_v53  ;;  %v627_v53 = vld [vmem:[%s699_s17 + $0x68] sm:$0xff]  }
  0x1c   : > { %632 = vst [vmem:[%s738_s24 + $0x18] sm:$0xff] %v553_v47   ;;  %v285_v62 = vadd.f32 %v712_v6, %v249_v54  ;;  %v286_v63 = vadd.f32 %v712_v6, %v250_v55  ;;  %v253_v1 = vmul.f32 %v704_v0, %v501_v56  ;;  %v254_v2 = vmul.f32 %v704_v0, %v502_v57 }
  0x1d   : > { %v315_v4 = vmax.f32 %v283_v58, 0.0  ;;  %v316_v5 = vmax.f32 %v284_v59, 0.0  ;;  %v287_v7 = vadd.f32 %v712_v6, %v251_v60  ;;  %v288_v8 = vadd.f32 %v712_v6, %v252_v61  ;;  %v628_v58 = vld [vmem:[%s699_s17 + $0x70] sm:$0xff]  }
  0x1e   : > { %v317_v9 = vmax.f32 %v285_v62, 0.0  ;;  %v318_v10 = vmax.f32 %v286_v63, 0.0  ;;  %v289_v11 = vadd.f32 %v712_v6, %v253_v1  ;;  %v290_v12 = vadd.f32 %v712_v6, %v254_v2  ;;  %v629_v63 = vld [vmem:[%s699_s17 + $0x78] sm:$0xff]  }
  0x1f   : > { %v558_v14 = vpack.c.bf16 %v316_v5, %v315_v4  ;;  %v319_v15 = vmax.f32 %v287_v7, 0.0  ;;  %v320_v16 = vmax.f32 %v288_v8, 0.0  ;;  %v505_v17 = vunpack.c.l.bf16 %v622_v3 }
  0x20   : > { %v563_v19 = vpack.c.bf16 %v318_v10, %v317_v9  ;;  %v321_v20 = vmax.f32 %v289_v11, 0.0  ;;  %v322_v21 = vmax.f32 %v290_v12, 0.0  ;;  %v506_v22 = vunpack.c.h.bf16 %v622_v3 }
  0x21   : > { %633 = vst [vmem:[%s738_s24 + $0x20] sm:$0xff] %v558_v14   ;;  %v568_v24 = vpack.c.bf16 %v320_v16, %v319_v15  ;;  %v255_v25 = vmul.f32 %v704_v0, %v505_v17  ;;  %v509_v26 = vunpack.c.l.bf16 %v623_v13  ;;  %v510_v27 = vunpack.c.h.bf16 %v623_v13 }
  0x22   : > { %634 = vst [vmem:[%s738_s24 + $0x28] sm:$0xff] %v563_v19   ;;  %v573_v28 = vpack.c.bf16 %v322_v21, %v321_v20  ;;  %v256_v29 = vmul.f32 %v704_v0, %v506_v22  ;;  %v513_v30 = vunpack.c.l.bf16 %v624_v18  ;;  %v514_v31 = vunpack.c.h.bf16 %v624_v18 }
  0x23   : > { %635 = vst [vmem:[%s738_s24 + $0x30] sm:$0xff] %v568_v24   ;;  %v291_v32 = vadd.f32 %v712_v6, %v255_v25  ;;  %v257_v33 = vmul.f32 %v704_v0, %v509_v26  ;;  %v258_v34 = vmul.f32 %v704_v0, %v510_v27  ;;  %v517_v35 = vunpack.c.l.bf16 %v625_v23 }
  0x24   : > { %636 = vst [vmem:[%s738_s24 + $0x38] sm:$0xff] %v573_v28   ;;  %v292_v36 = vadd.f32 %v712_v6, %v256_v29  ;;  %v259_v37 = vmul.f32 %v704_v0, %v513_v30  ;;  %v260_v38 = vmul.f32 %v704_v0, %v514_v31  ;;  %v518_v39 = vunpack.c.h.bf16 %v625_v23 }
  0x25   : > { %v323_v41 = vmax.f32 %v291_v32, 0.0  ;;  %v293_v42 = vadd.f32 %v712_v6, %v257_v33  ;;  %v294_v43 = vadd.f32 %v712_v6, %v258_v34  ;;  %v261_v44 = vmul.f32 %v704_v0, %v517_v35 }
  0x26   : > { %v324_v45 = vmax.f32 %v292_v36, 0.0  ;;  %v295_v46 = vadd.f32 %v712_v6, %v259_v37  ;;  %v296_v47 = vadd.f32 %v712_v6, %v260_v38  ;;  %v262_v48 = vmul.f32 %v704_v0, %v518_v39 }
  0x27   : > { %v325_v49 = vmax.f32 %v293_v42, 0.0  ;;  %v326_v50 = vmax.f32 %v294_v43, 0.0  ;;  %v297_v51 = vadd.f32 %v712_v6, %v261_v44  ;;  %v521_v52 = vunpack.c.l.bf16 %v626_v40 }
  0x28   : > { %v578_v54 = vpack.c.bf16 %v324_v45, %v323_v41  ;;  %v327_v55 = vmax.f32 %v295_v46, 0.0  ;;  %v328_v56 = vmax.f32 %v296_v47, 0.0  ;;  %v298_v57 = vadd.f32 %v712_v6, %v262_v48 }
  0x29   : > { %v583_v59 = vpack.c.bf16 %v326_v50, %v325_v49  ;;  %v329_v60 = vmax.f32 %v297_v51, 0.0  ;;  %v522_v61 = vunpack.c.h.bf16 %v626_v40  ;;  %v263_v62 = vmul.f32 %v704_v0, %v521_v52 }
  0x2a   : > { %637 = vst [vmem:[%s738_s24 + $0x40] sm:$0xff] %v578_v54   ;;  %v588_v1 = vpack.c.bf16 %v328_v56, %v327_v55  ;;  %v330_v2 = vmax.f32 %v298_v57, 0.0  ;;  %v525_v3 = vunpack.c.l.bf16 %v627_v53  ;;  %v526_v4 = vunpack.c.h.bf16 %v627_v53 }
  0x2b   : > { %638 = vst [vmem:[%s738_s24 + $0x48] sm:$0xff] %v583_v59   ;;  %v264_v5 = vmul.f32 %v704_v0, %v522_v61  ;;  %v299_v7 = vadd.f32 %v712_v6, %v263_v62  ;;  %v529_v8 = vunpack.c.l.bf16 %v628_v58  ;;  %v530_v9 = vunpack.c.h.bf16 %v628_v58 }
  0x2c   : > { %639 = vst [vmem:[%s738_s24 + $0x50] sm:$0xff] %v588_v1   ;;  %v593_v10 = vpack.c.bf16 %v330_v2, %v329_v60  ;;  %v265_v11 = vmul.f32 %v704_v0, %v525_v3  ;;  %v266_v12 = vmul.f32 %v704_v0, %v526_v4  ;;  %v533_v13 = vunpack.c.l.bf16 %v629_v63 }
  0x2d   : > { %v300_v14 = vadd.f32 %v712_v6, %v264_v5  ;;  %v331_v15 = vmax.f32 %v299_v7, 0.0  ;;  %v267_v16 = vmul.f32 %v704_v0, %v529_v8  ;;  %v268_v17 = vmul.f32 %v704_v0, %v530_v9 }
  0x2e   : > { %640 = vst [vmem:[%s738_s24 + $0x58] sm:$0xff] %v593_v10   ;;  %v301_v18 = vadd.f32 %v712_v6, %v265_v11  ;;  %v302_v19 = vadd.f32 %v712_v6, %v266_v12  ;;  %v534_v20 = vunpack.c.h.bf16 %v629_v63  ;;  %v269_v21 = vmul.f32 %v704_v0, %v533_v13 }
  0x2f   : > { %v332_v22 = vmax.f32 %v300_v14, 0.0  ;;  %v303_v23 = vadd.f32 %v712_v6, %v267_v16  ;;  %v304_v24 = vadd.f32 %v712_v6, %v268_v17 }
  0x30   : > { %v333_v25 = vmax.f32 %v301_v18, 0.0  ;;  %v334_v26 = vmax.f32 %v302_v19, 0.0  ;;  %v270_v27 = vmul.f32 %v704_v0, %v534_v20  ;;  %v305_v28 = vadd.f32 %v712_v6, %v269_v21 }
  0x31   : > { %v598_v29 = vpack.c.bf16 %v332_v22, %v331_v15  ;;  %v335_v30 = vmax.f32 %v303_v23, 0.0  ;;  %v336_v31 = vmax.f32 %v304_v24, 0.0 }
  0x32   : > { %v603_v32 = vpack.c.bf16 %v334_v26, %v333_v25  ;;  %v306_v33 = vadd.f32 %v712_v6, %v270_v27  ;;  %v337_v34 = vmax.f32 %v305_v28, 0.0 }
  0x33   : > { %641 = vst [vmem:[%s738_s24 + $0x60] sm:$0xff] %v598_v29   ;;  %v608_v35 = vpack.c.bf16 %v336_v31, %v335_v30 }
  0x34   : > { %642 = vst [vmem:[%s738_s24 + $0x68] sm:$0xff] %v603_v32   ;;  %v338_v36 = vmax.f32 %v306_v33, 0.0 }
  0x35   : > { %643 = vst [vmem:[%s738_s24 + $0x70] sm:$0xff] %v608_v35  }
  0x36   : > { %v613_v37 = vpack.c.bf16 %v338_v36, %v337_v34 }
  0x38   : > { %644 = vst [vmem:[%s738_s24 + $0x78] sm:$0xff] %v613_v37  }
  0x39 PF: > { %s13_s12 = sadd.s32 1, %s661_s12  }
  0x3a   : > { %p10_p4 = scmp.ge.s32.totalorder %s13_s12, 4  }
  0x3c   :  { %12 = sbr.rel (!%p10_p4) target bundleno = 1 (0x1), region = 62 }

// kernel: double_conv_forward.4
= control target key start
LH: loop header
LB: loop body
LE: loop exit
PB: predicated region body
PF: predicated region fallthrough
CT: control target
= control target key end

     0   :  { %s3584_s12 = smov 0   ;;  %s4671_s0 = inlined_call_operand.vmem [shape: bf16[2,18,18,128], index: 0, kind: input, shape index: {}]   ;;  %s4672_s1 = inlined_call_operand.vmem [shape: bf16[1152,128], index: 1, kind: input, shape index: {}]   ;;  %s4673_s2 = inlined_call_operand.vmem [shape: bf16[2,256,128], index: 2, kind: output, shape index: {0}]   ;;  %s4674_s3 = inlined_call_operand.vmem [shape: f32[2,2,128], index: 3, kind: output, shape index: {1}]  }
   0x1 LB: > { %s2930_s13 = sadd.s32 4294967295, %s3562_s12   ;;  %p2934_p0 = scmp.ge.s32.totalorder %s3562_s12, 1  ;;  %s3562_s12 = sphi %s3584_s12, %s14_s12  }
   0x2   : > { %p140_p1 = scmp.lt.s32.totalorder %s3562_s12, 3 }
   0x4   : > { %p141_p2 = pnand %p2934_p0, %p140_p1 }
   0x6   : > { %144 = sbr.rel (%p141_p2) target bundleno = 771 (0x303), region = 28 }
   0xb   : > { %v3353_v0 = vld [vmem:[%s4672_s1 + $0x78] sm:$0xff]  ;;  %p168_p3 = scmp.lt.s32.totalorder %s2930_s13, 1  ;;  %v3352_v1 = vld [vmem:[%s4672_s1 + $0x70] sm:$0xff]  ;;  %v3351_v2 = vld [vmem:[%s4672_s1 + $0x68] sm:$0xff]  ;;  %vm252_vm0 = vsmask.f32 3328 }
   0xc   : > { %3505 = vmatpush.bf16.msra.mxu1 %v3353_v0  ;;  %3506 = vmatpush.bf16.msra.mxu2 %v3353_v0  ;;  %vm253_vm1 = vsmask.f32 7440  ;;  %v3350_v6 = vld [vmem:[%s4672_s1 + $0x60] sm:$0xff]  ;;  %v3349_v35 = vld [vmem:[%s4672_s1 + $0x58] sm:$0xff]  ;;  %v3348_v54 = vld [vmem:[%s4672_s1 + $0x50] sm:$0xff]  ;;  %vm1105_vm3 = vcmask 1042432  }
   0xd   : > { %s4794_s13 = smov (!%p168_p3, %s2930_s13), 1  ;;  %3507 = vmatpush.bf16.msra.mxu3 %v3353_v0  ;;  %767 = vmatpush.bf16.msra.mxu0 %v3353_v0  ;;  %vm3622_vm2 = vmor %vm252_vm0, %vm253_vm1  ;;  %vm1106_vm4 = vcmask 1046532   ;;  %vm2841_vm6 = vcmask 1040384  }
   0xe   : > { %s3529_s18 = smul.u32 216, %s4794_s13  ;;  %vm3995_vm5 = vmor %vm1105_vm3, %vm1106_vm4  ;;  %s3319_s17 = sshll.u32 %s4794_s13, 7 }
   0xf   : > { %s4567_s20 = scalar_lea.vmem %s4673_s2, %s3319_s17 }
  0x10   : > { %3508 = vmatpush.bf16.msra.mxu1 %v3352_v1  ;;  %3509 = vmatpush.bf16.msra.mxu2 %v3352_v1  ;;  %s3607_s23 = scalar_lea.vmem %s4671_s0, %s3529_s18 }
  0x11   : > { %3510 = vmatpush.bf16.msra.mxu3 %v3352_v1  ;;  %768 = vmatpush.bf16.msra.mxu0 %v3352_v1  ;;  %v194_v3 = vld [vmem:[%s3607_s23 + $0x30] sm:$0xf]  ;;  %v195_v4 = vld [vmem:[%s3607_s23 + $0x34] sm:$0xf]  ;;  %v196_v5 = vld [vmem:[%s3607_s23 + $0x38] sm:$0x1] }
  0x12   : > { %v352_v7 = vshrl.u32 %v194_v3, 16  ;;  %v355_v8 = vshll.u32 %v194_v3, 16  ;;  %v361_v9 = vshll.u32 %v195_v4, 16  ;;  %v365_v10 = vshrl.u32 %v195_v4, 16  ;;  %v206_v11 = vld [vmem:[%s3607_s23 + $0x60] sm:$0xf] }
  0x13   : > { %v371_v12 = vshll.u32 %v196_v5, 16  ;;  %v207_v13 = vld [vmem:[%s3607_s23 + $0x64] sm:$0xf]  ;;  %v208_v14 = vld [vmem:[%s3607_s23 + $0x68] sm:$0x1]  ;;  %v448_v15 = vshrl.u32 %v206_v11, 16 }
  0x14   : > { %3511 = vmatpush.bf16.msra.mxu1 %v3351_v2  ;;  %3512 = vmatpush.bf16.msra.mxu2 %v3351_v2  ;;  %v354_v16 = vrot.slane %v352_v7, 4  ;;  %v357_v17 = vrot.slane %v355_v8, 5  ;;  %v363_v18 = vrot.slane %v361_v9, 5  ;;  %v367_v19 = vrot.slane %v365_v10, 4  ;;  %v218_v20 = vld [vmem:[%s3607_s23 + $0x90] sm:$0xf] }
  0x15   : > { %3513 = vmatpush.bf16.msra.mxu3 %v3351_v2  ;;  %769 = vmatpush.bf16.msra.mxu0 %v3351_v2  ;;  %v373_v21 = vrot.slane %v371_v12, 5  ;;  %v450_v22 = vrot.slane %v448_v15, 4  ;;  %v451_v23 = vshll.u32 %v206_v11, 16  ;;  %v457_v24 = vshll.u32 %v207_v13, 16  ;;  %v219_v29 = vld [vmem:[%s3607_s23 + $0x94] sm:$0xf] }
  0x16   : > { %v358_v25 = vor.u32 %v357_v17, %v354_v16  ;;  %v368_v26 = vor.u32 %v367_v19, %v363_v18  ;;  %v461_v27 = vshrl.u32 %v207_v13, 16  ;;  %v467_v28 = vshll.u32 %v208_v14, 16  ;;  %v220_v41 = vld [vmem:[%s3607_s23 + $0x98] sm:$0x1]  ;;  %v3635_v49 = vld [vmem:[%s3607_s23] sm:$0xf] }
  0x17   : > { %v453_v31 = vrot.slane %v451_v23, 5  ;;  %v459_v32 = vrot.slane %v457_v24, 5  ;;  %v544_v33 = vshrl.u32 %v218_v20, 16  ;;  %v547_v34 = vshll.u32 %v218_v20, 16  ;;  %v3645_v62 = vld [vmem:[%s3607_s23 + $0x4] sm:$0xf] }
  0x18   : > { %3514 = vmatpush.bf16.msra.mxu1 %v3350_v6  ;;  %3515 = vmatpush.bf16.msra.mxu2 %v3350_v6  ;;  %v359_v36 = vrot.slane %v358_v25, 4  ;;  %v369_v37 = vrot.slane %v368_v26, 4  ;;  %v463_v38 = vrot.slane %v461_v27, 4  ;;  %v469_v39 = vrot.slane %v467_v28, 5  ;;  %v3651_v4 = vld [vmem:[%s3607_s23 + $0x8] sm:$0x1] }
  0x19   : > { %3516 = vmatpush.bf16.msra.mxu3 %v3350_v6  ;;  %770 = vmatpush.bf16.msra.mxu0 %v3350_v6  ;;  %v454_v40 = vor.u32 %v453_v31, %v450_v22  ;;  %v546_v42 = vrot.slane %v544_v33, 4  ;;  %v549_v43 = vrot.slane %v547_v34, 5  ;;  %v553_v44 = vshll.u32 %v219_v29, 16  ;;  %v3654_v5 = vld [vmem:[%s3607_s23 + $0x3c] sm:$0xf]  ;;  %v3347_v10 = vld [vmem:[%s4672_s1 + $0x48] sm:$0xff] }
  0x1a   : > { %v364_v45 = vsel %vm3622_vm2, %v359_v36, %v363_v18  ;;  %v374_v46 = vsel %vm3622_vm2, %v369_v37, %v373_v21  ;;  %v464_v47 = vor.u32 %v463_v38, %v459_v32  ;;  %v557_v48 = vshrl.u32 %v219_v29, 16  ;;  %v3665_v15 = vld [vmem:[%s3607_s23 + $0x40] sm:$0xf]  ;;  %v3671_v19 = vld [vmem:[%s3607_s23 + $0x44] sm:$0x1]  ;;  %v3361_v37 = vld [vmem:[%s4672_s1 + $0xb8] sm:$0xff] }
  0x1b   : > { %v663_v50 = vunpack.c.l.b16 %v364_v45  ;;  %v664_v51 = vunpack.c.l.b16 %v374_v46  ;;  %v455_v52 = vrot.slane %v454_v40, 4  ;;  %v550_v53 = vor.u32 %v549_v43, %v546_v42  ;;  %v209_v25 = vld [vmem:[%s3607_s23 + $0x6c] sm:$0xf]  ;;  %v3346_v31 = vld [vmem:[%s4672_s1 + $0x40] sm:$0xff]  ;;  %v210_v40 = vld [vmem:[%s3607_s23 + $0x70] sm:$0xf] }
  0x1c   : > { %3517 = vmatpush.bf16.msra.mxu1 %v3349_v35  ;;  %3518 = vmatpush.bf16.msra.mxu2 %v3349_v35  ;;  %v465_v55 = vrot.slane %v464_v47, 4  ;;  %v555_v56 = vrot.slane %v553_v44, 5  ;;  %v559_v57 = vrot.slane %v557_v48, 4  ;;  %v563_v58 = vshll.u32 %v220_v41, 16  ;;  %v3369_v43 = vld [vmem:[%s4672_s1 + $0xf8] sm:$0xff] }
  0x1d   : > { %3519 = vmatpush.bf16.msra.mxu3 %v3349_v35  ;;  %771 = vmatpush.bf16.msra.mxu0 %v3349_v35  ;;  %v3640_v59 = vpack.c.b16 %v664_v51, %v663_v50  ;;  %v460_v60 = vsel %vm3622_vm2, %v455_v52, %v459_v32  ;;  %v551_v61 = vrot.slane %v550_v53, 4  ;;  %v256_v63 = vshrl.u32 %v3635_v49, 16  ;;  %v211_v47 = vld [vmem:[%s3607_s23 + $0x74] sm:$0x1]  ;;  %v221_v53 = vld [vmem:[%s3607_s23 + $0x9c] sm:$0xf] }
  0x1e   : > { %v470_v0 = vsel %vm3622_vm2, %v465_v55, %v469_v39  ;;  %v671_v1 = vunpack.c.l.b16 %v460_v60  ;;  %v560_v2 = vor.u32 %v559_v57, %v555_v56  ;;  %v565_v3 = vrot.slane %v563_v58, 5 }
  0x1f   : > { %v672_v6 = vunpack.c.l.b16 %v470_v0  ;;  %v556_v7 = vsel %vm3622_vm2, %v551_v61, %v555_v56  ;;  %v258_v8 = vrot.slane %v256_v63, 4  ;;  %v259_v9 = vshll.u32 %v3635_v49, 16  ;;  %v3345_v56 = vld [vmem:[%s4672_s1 + $0x38] sm:$0xff]  ;;  %v3360_v61 = vld [vmem:[%s4672_s1 + $0xb0] sm:$0xff] }
  0x20   : > { %3520 = vmatpush.bf16.msra.mxu1 %v3348_v54  ;;  %3521 = vmatpush.bf16.msra.mxu2 %v3348_v54  ;;  %v561_v11 = vrot.slane %v560_v2, 4  ;;  %v679_v12 = vunpack.c.l.b16 %v556_v7  ;;  %v265_v13 = vshll.u32 %v3645_v62, 16  ;;  %v269_v14 = vshrl.u32 %v3645_v62, 16  ;;  %v3368_v2 = vld [vmem:[%s4672_s1 + $0xf0] sm:$0xff] }
  0x21   : > { %3522 = vmatpush.bf16.msra.mxu3 %v3348_v54  ;;  %772 = vmatpush.bf16.msra.mxu0 %v3348_v54  ;;  %v3667_v16 = vpack.c.b16 %v672_v6, %v671_v1  ;;  %v261_v17 = vrot.slane %v259_v9, 5  ;;  %v275_v18 = vshll.u32 %v3651_v4, 16  ;;  %v376_v20 = vshrl.u32 %v3654_v5, 16 }
  0x22   : > { %v566_v21 = vsel %vm3622_vm2, %v561_v11, %v565_v3  ;;  %v267_v22 = vrot.slane %v265_v13, 5  ;;  %v271_v23 = vrot.slane %v269_v14, 4  ;;  %v379_v24 = vshll.u32 %v3654_v5, 16  ;;  %v3377_v11 = vld [vmem:[%s4672_s1 + $0x138] sm:$0xff] }
  0x23   : > { %4709 = vst [vmem:[#allocation2_spill] sm:$0xff] %v3667_v16  ;;  %v680_v26 = vunpack.c.l.b16 %v566_v21  ;;  %v262_v27 = vor.u32 %v261_v17, %v258_v8  ;;  %v277_v28 = vrot.slane %v275_v18, 5  ;;  %v378_v29 = vrot.slane %v376_v20, 4  ;;  %v222_v8 = vld [vmem:[%s3607_s23 + $0xa0] sm:$0xf]  ;;  %v3344_v20 = vld [vmem:[%s4672_s1 + $0x30] sm:$0xff] }
  0x24   : > { %3523 = vmatpush.bf16.msra.mxu1 %v3347_v10  ;;  %3524 = vmatpush.bf16.msra.mxu2 %v3347_v10  ;;  %v272_v32 = vor.u32 %v271_v23, %v267_v22  ;;  %v381_v33 = vrot.slane %v379_v24, 5  ;;  %v385_v34 = vshll.u32 %v3665_v15, 16  ;;  %v389_v35 = vshrl.u32 %v3665_v15, 16  ;;  %v223_v17 = vld [vmem:[%s3607_s23 + $0xa4] sm:$0x1] }
  0x25   : > { %3525 = vmatpush.bf16.msra.mxu3 %v3347_v10  ;;  %773 = vmatpush.bf16.msra.mxu0 %v3347_v10  ;;  %v3683_v36 = vpack.c.b16 %v680_v26, %v679_v12  ;;  %v263_v38 = vrot.slane %v262_v27, 4  ;;  %v395_v39 = vshll.u32 %v3671_v19, 16  ;;  %v472_v41 = vshrl.u32 %v209_v25, 16  ;;  %v3718_v18 = vld [vmem:[%s3607_s23 + $0xc] sm:$0xf] }
  0x26   : > { %v273_v42 = vrot.slane %v272_v32, 4  ;;  %v382_v44 = vor.u32 %v381_v33, %v378_v29  ;;  %v387_v45 = vrot.slane %v385_v34, 5  ;;  %v391_v46 = vrot.slane %v389_v35, 4  ;;  %v3359_v29 = vld [vmem:[%s4672_s1 + $0xa8] sm:$0xff]  ;;  %v3730_v34 = vld [vmem:[%s3607_s23 + $0x10] sm:$0xf] }
  0x27   : > { %v268_v48 = vsel %vm3622_vm2, %v263_v38, %v267_v22  ;;  %v397_v50 = vrot.slane %v395_v39, 5  ;;  %v474_v51 = vrot.slane %v472_v41, 4  ;;  %v475_v52 = vshll.u32 %v209_v25, 16 }
  0x28   : > { %3526 = vmatpush.bf16.msra.mxu1 %v3346_v31  ;;  %3527 = vmatpush.bf16.msra.mxu2 %v3346_v31  ;;  %v278_v54 = vsel %vm3622_vm2, %v273_v42, %v277_v28  ;;  %v655_v55 = vunpack.c.l.b16 %v268_v48  ;;  %v383_v57 = vrot.slane %v382_v44, 4  ;;  %v392_v58 = vor.u32 %v391_v46, %v387_v45  ;;  %v3741_v42 = vld [vmem:[%s3607_s23 + $0x14] sm:$0x1]  ;;  %v3343_v48 = vld [vmem:[%s4672_s1 + $0x28] sm:$0xff] }
  0x29   : > { %3528 = vmatpush.bf16.msra.mxu3 %v3346_v31  ;;  %774 = vmatpush.bf16.msra.mxu0 %v3346_v31  ;;  %v656_v60 = vunpack.c.l.b16 %v278_v54  ;;  %v477_v63 = vrot.slane %v475_v52, 5  ;;  %v481_v0 = vshll.u32 %v210_v40, 16  ;;  %v485_v1 = vshrl.u32 %v210_v40, 16  ;;  %v3752_v54 = vld [vmem:[%s3607_s23 + $0x48] sm:$0xf] }
  0x2a   : > { %v388_v3 = vsel %vm3622_vm2, %v383_v57, %v387_v45  ;;  %v393_v6 = vrot.slane %v392_v58, 4  ;;  %v491_v7 = vshll.u32 %v211_v47, 16  ;;  %v568_v9 = vshrl.u32 %v221_v53, 16 }
  0x2b   : > { %795 = vmatmul.bf16.vlgmr.msra.gmra.mxu1 %v3640_v59  ;;  %815 = vmatmul.bf16.vlgmr.msra.gmra.mxu2 %v3667_v16  ;;  %v687_v10 = vpack.c.b16 %v656_v60, %v655_v55  ;;  %v665_v12 = vunpack.c.l.b16 %v388_v3  ;;  %v478_v13 = vor.u32 %v477_v63, %v474_v51  ;;  %v483_v14 = vrot.slane %v481_v0, 5  ;;  %v3358_v60 = vld [vmem:[%s4672_s1 + $0xa0] sm:$0xff]  ;;  %v3375_v3 = vld [vmem:[%s4672_s1 + $0x128] sm:$0xff] }
  0x2c   : > { %1348 = vmatpush.bf16.msrb.mxu2 %v3361_v37  ;;  %835 = vmatmul.bf16.vlgmr.msra.gmra.mxu3 %v3683_v36  ;;  %v398_v21 = vsel %vm3622_vm2, %v393_v6, %v397_v50  ;;  %v487_v22 = vrot.slane %v485_v1, 4  ;;  %v493_v23 = vrot.slane %v491_v7, 5  ;;  %v570_v24 = vrot.slane %v568_v9, 4  ;;  %v3367_v37 = vld [vmem:[%s4672_s1 + $0xe8] sm:$0xff]  ;;  %v3342_v6 = vld [vmem:[%s4672_s1 + $0x20] sm:$0xff] }
  0x2d   : > { %1539 = vmatpush.bf16.msrb.mxu3 %v3369_v43  ;;  %1000 = vmatpush.bf16.msrb.mxu1 %v3345_v56  ;;  %v666_v25 = vunpack.c.l.b16 %v398_v21  ;;  %v479_v26 = vrot.slane %v478_v13, 4  ;;  %v571_v27 = vshll.u32 %v221_v53, 16  ;;  %v577_v28 = vshll.u32 %v222_v8, 16  ;;  %v3376_v43 = vld [vmem:[%s4672_s1 + $0x130] sm:$0xff]  ;;  %v3783_v21 = vld [vmem:[%s3607_s23 + $0x78] sm:$0xf] }
  0x2e   : > { %775 = vmatmul.bf16.vlgmr.msra.gmra.mxu0 %v687_v10  ;;  %v488_v31 = vor.u32 %v487_v22, %v483_v14  ;;  %v581_v32 = vshrl.u32 %v222_v8, 16  ;;  %v587_v33 = vshll.u32 %v223_v17, 16  ;;  %v280_v35 = vshrl.u32 %v3718_v18, 16  ;;  %v3771_v10 = vld [vmem:[%s3607_s23 + $0x4c] sm:$0xf] }
  0x2f   : > { %1752 = vmatpush.bf16.msrb.mxu0 %v3377_v11  ;;  %v3736_v38 = vpack.c.b16 %v666_v25, %v665_v12  ;;  %v484_v39 = vsel %vm3622_vm2, %v479_v26, %v483_v14  ;;  %v573_v40 = vrot.slane %v571_v27, 5  ;;  %v579_v41 = vrot.slane %v577_v28, 5  ;;  %v3779_v17 = vld [vmem:[%s3607_s23 + $0x50] sm:$0x1]  ;;  %v3357_v26 = vld [vmem:[%s4672_s1 + $0x98] sm:$0xff] }
  0x30   : > { %1349 = vmatpush.bf16.msrb.mxu2 %v3360_v61  ;;  %v489_v44 = vrot.slane %v488_v31, 4  ;;  %v673_v45 = vunpack.c.l.b16 %v484_v39  ;;  %v583_v46 = vrot.slane %v581_v32, 4  ;;  %v589_v47 = vrot.slane %v587_v33, 5  ;;  %v3366_v61 = vld [vmem:[%s4672_s1 + $0xe0] sm:$0xff]  ;;  %v3365_v27 = vld [vmem:[%s4672_s1 + $0xd8] sm:$0xff] }
  0x31   : > { %1540 = vmatpush.bf16.msrb.mxu3 %v3368_v2  ;;  %4710 = vst [vmem:[#allocation3_spill] sm:$0xff] %v3736_v38  ;;  %1001 = vmatpush.bf16.msrb.mxu1 %v3344_v20  ;;  %v574_v50 = vor.u32 %v573_v40, %v570_v24  ;;  %v282_v51 = vrot.slane %v280_v35, 4  ;;  %v283_v52 = vshll.u32 %v3718_v18, 16  ;;  %v289_v53 = vshll.u32 %v3730_v34, 16  ;;  %v3374_v40 = vld [vmem:[%s4672_s1 + $0x120] sm:$0xff] }
  0x32   : > { %v494_v55 = vsel %vm3622_vm2, %v489_v44, %v493_v23  ;;  %v584_v56 = vor.u32 %v583_v46, %v579_v41  ;;  %v293_v57 = vshrl.u32 %v3730_v34, 16  ;;  %v299_v58 = vshll.u32 %v3741_v42, 16  ;;  %v3805_v46 = vld [vmem:[%s3607_s23 + $0x7c] sm:$0xf] }
  0x33   : > { %v674_v63 = vunpack.c.l.b16 %v494_v55  ;;  %v575_v0 = vrot.slane %v574_v50, 4  ;;  %v285_v1 = vrot.slane %v283_v52, 5  ;;  %v291_v2 = vrot.slane %v289_v53, 5  ;;  %1753 = vmatpush.bf16.msrb.mxu0 %v3376_v43  ;;  %v224_v55 = vld [vmem:[%s3607_s23 + $0xa8] sm:$0xf] }
  0x34   : > { %1350 = vmatpush.bf16.msrb.mxu2 %v3359_v29  ;;  %v585_v7 = vrot.slane %v584_v56, 4  ;;  %v295_v8 = vrot.slane %v293_v57, 4  ;;  %v301_v9 = vrot.slane %v299_v58, 5  ;;  %v400_v11 = vshrl.u32 %v3752_v54, 16  ;;  %v3356_v56 = vld [vmem:[%s4672_s1 + $0x90] sm:$0xff] }
  0x35   : > { %1541 = vmatpush.bf16.msrb.mxu3 %v3367_v37  ;;  %1002 = vmatpush.bf16.msrb.mxu1 %v3343_v48  ;;  %v3774_v12 = vpack.c.b16 %v674_v63, %v673_v45  ;;  %v580_v13 = vsel %vm3622_vm2, %v575_v0, %v579_v41  ;;  %v286_v14 = vor.u32 %v285_v1, %v282_v51  ;;  %v403_v20 = vshll.u32 %v3752_v54, 16  ;;  %v3341_v48 = vld [vmem:[%s4672_s1 + $0x18] sm:$0xff]  ;;  %v3364_v57 = vld [vmem:[%s4672_s1 + $0xd0] sm:$0xff] }
  0x36   : > { %v590_v22 = vsel %vm3622_vm2, %v585_v7, %v589_v47  ;;  %v681_v23 = vunpack.c.l.b16 %v580_v13  ;;  %v296_v24 = vor.u32 %v295_v8, %v291_v2  ;;  %v402_v25 = vrot.slane %v400_v11, 4  ;;  %v3808_v47 = vld [vmem:[%s3607_s23 + $0x80] sm:$0x1]  ;;  %v225_v11 = vld [vmem:[%s3607_s23 + $0xac] sm:$0xf] }
  0x37   : > { %v682_v28 = vunpack.c.l.b16 %v590_v22  ;;  %v287_v29 = vrot.slane %v286_v14, 4  ;;  %1754 = vmatpush.bf16.msrb.mxu0 %v3375_v3  ;;  %v405_v31 = vrot.slane %v403_v20, 5  ;;  %v409_v32 = vshll.u32 %v3771_v10, 16  ;;  %v3340_v14 = vld [vmem:[%s4672_s1 + $0x10] sm:$0xff] }
  0x38   : > { %1351 = vmatpush.bf16.msrb.mxu2 %v3358_v60  ;;  %v297_v33 = vrot.slane %v296_v24, 4  ;;  %v413_v35 = vshrl.u32 %v3771_v10, 16  ;;  %v419_v37 = vshll.u32 %v3779_v17, 16  ;;  %v496_v39 = vshrl.u32 %v3783_v21, 16 }
  0x39   : > { %1542 = vmatpush.bf16.msrb.mxu3 %v3366_v61  ;;  %1003 = vmatpush.bf16.msrb.mxu1 %v3342_v6  ;;  %v3800_v41 = vpack.c.b16 %v682_v28, %v681_v23  ;;  %v292_v43 = vsel %vm3622_vm2, %v287_v29, %v291_v2  ;;  %v406_v44 = vor.u32 %v405_v31, %v402_v25  ;;  %v411_v45 = vrot.slane %v409_v32, 5  ;;  %v3373_v6 = vld [vmem:[%s4672_s1 + $0x118] sm:$0xff]  ;;  %v226_v25 = vld [vmem:[%s3607_s23 + $0xb0] sm:$0x1] }
  0x3a   : > { %v302_v50 = vsel %vm3622_vm2, %v297_v33, %v301_v9  ;;  %v657_v51 = vunpack.c.l.b16 %v292_v43  ;;  %v415_v52 = vrot.slane %v413_v35, 4  ;;  %v421_v53 = vrot.slane %v419_v37, 5  ;;  %v3843_v31 = vld [vmem:[%s3607_s23 + $0x18] sm:$0xf] }
  0x3b   : > { %4711 = vst [vmem:[#allocation4_spill] sm:$0xff] %v3800_v41  ;;  %800 = vmatmul.bf16.gmra.mxu1 %v3736_v38  ;;  %820 = vmatmul.bf16.gmra.mxu2 %v3774_v12  ;;  %v658_v58 = vunpack.c.l.b16 %v302_v50  ;;  %v407_v60 = vrot.slane %v406_v44, 4  ;;  %v498_v61 = vrot.slane %v496_v39, 4  ;;  %v499_v63 = vshll.u32 %v3783_v21, 16 }
  0x3c   : > { %1352 = vmatpush.bf16.msrb.mxu2 %v3357_v26  ;;  %840 = vmatmul.bf16.gmra.mxu3 %v3800_v41  ;;  %v416_v0 = vor.u32 %v415_v52, %v411_v45  ;;  %v505_v1 = vshll.u32 %v3805_v46, 16  ;;  %v509_v2 = vshrl.u32 %v3805_v46, 16  ;;  %v515_v3 = vshll.u32 %v3808_v47, 16  ;;  %v3851_v52 = vld [vmem:[%s3607_s23 + $0x1c] sm:$0xf] }
  0x3d   : > { %1543 = vmatpush.bf16.msrb.mxu3 %v3365_v27  ;;  %1755 = vmatpush.bf16.msrb.mxu0 %v3374_v40  ;;  %v3832_v7 = vpack.c.b16 %v658_v58, %v657_v51  ;;  %v412_v8 = vsel %vm3622_vm2, %v407_v60, %v411_v45  ;;  %v501_v9 = vrot.slane %v499_v63, 5  ;;  %v592_v13 = vshrl.u32 %v224_v55, 16  ;;  %v3355_v45 = vld [vmem:[%s4672_s1 + $0x88] sm:$0xff]  ;;  %v3859_v60 = vld [vmem:[%s3607_s23 + $0x20] sm:$0x1] }
  0x3e   : > { %1004 = vmatpush.bf16.msrb.mxu1 %v3341_v48  ;;  %v417_v20 = vrot.slane %v416_v0, 4  ;;  %v667_v22 = vunpack.c.l.b16 %v412_v8  ;;  %v507_v23 = vrot.slane %v505_v1, 5  ;;  %v511_v24 = vrot.slane %v509_v2, 4 }
  0x3f   : > { %780 = vmatmul.bf16.gmra.mxu0 %v3832_v7  ;;  %v502_v26 = vor.u32 %v501_v9, %v498_v61  ;;  %v517_v27 = vrot.slane %v515_v3, 5  ;;  %v594_v28 = vrot.slane %v592_v13, 4  ;;  %v595_v29 = vshll.u32 %v224_v55, 16  ;;  %v3862_v61 = vld [vmem:[%s3607_s23 + $0x54] sm:$0xf] }
  0x40   : > { %1353 = vmatpush.bf16.msrb.mxu2 %v3356_v56  ;;  %v422_v32 = vsel %vm3622_vm2, %v417_v20, %v421_v53  ;;  %v512_v33 = vor.u32 %v511_v24, %v507_v23  ;;  %v601_v35 = vshll.u32 %v225_v11, 16  ;;  %v605_v37 = vshrl.u32 %v225_v11, 16  ;;  %v3363_v11 = vld [vmem:[%s4672_s1 + $0xc8] sm:$0xff]  ;;  %v3372_v13 = vld [vmem:[%s4672_s1 + $0x110] sm:$0xff] }
  0x41   : > { %1544 = vmatpush.bf16.msrb.mxu3 %v3364_v57  ;;  %1756 = vmatpush.bf16.msrb.mxu0 %v3373_v6  ;;  %v668_v39 = vunpack.c.l.b16 %v422_v32  ;;  %v503_v40 = vrot.slane %v502_v26, 4  ;;  %v597_v43 = vrot.slane %v595_v29, 5  ;;  %v611_v44 = vshll.u32 %v226_v25, 16  ;;  %v3354_v25 = vld [vmem:[%s4672_s1 + $0x80] sm:$0xff]  ;;  %v3888_v32 = vld [vmem:[%s3607_s23 + $0x58] sm:$0xf] }
  0x42   : > { %1005 = vmatpush.bf16.msrb.mxu1 %v3340_v14  ;;  %v513_v48 = vrot.slane %v512_v33, 4  ;;  %v603_v50 = vrot.slane %v601_v35, 5  ;;  %v607_v51 = vrot.slane %v605_v37, 4  ;;  %v304_v53 = vshrl.u32 %v3843_v31, 16  ;;  %v3339_v14 = vld [vmem:[%s4672_s1 + $0x8] sm:$0xff] }
  0x43   : > { %v3854_v55 = vpack.c.b16 %v668_v39, %v667_v22  ;;  %v508_v56 = vsel %vm3622_vm2, %v503_v40, %v507_v23  ;;  %v598_v57 = vor.u32 %v597_v43, %v594_v28  ;;  %v613_v58 = vrot.slane %v611_v44, 5  ;;  %v3891_v33 = vld [vmem:[%s3607_s23 + $0x5c] sm:$0x1]  ;;  %v3896_v43 = vld [vmem:[%s3607_s23 + $0x84] sm:$0xf] }
  0x44   : > { %1354 = vmatpush.bf16.msrb.mxu2 %v3355_v45  ;;  %v518_v63 = vsel %vm3622_vm2, %v513_v48, %v517_v27  ;;  %v675_v0 = vunpack.c.l.b16 %v508_v56  ;;  %v608_v1 = vor.u32 %v607_v51, %v603_v50  ;;  %v306_v2 = vrot.slane %v304_v53, 4  ;;  %v3362_v44 = vld [vmem:[%s4672_s1 + $0xc0] sm:$0xff]  ;;  %v3371_v45 = vld [vmem:[%s4672_s1 + $0x108] sm:$0xff] }
  0x45   : > { %4712 = vst [vmem:[#allocation5_spill] sm:$0xff] %v3854_v55  ;;  %v676_v3 = vunpack.c.l.b16 %v518_v63  ;;  %v599_v6 = vrot.slane %v598_v57, 4  ;;  %v307_v8 = vshll.u32 %v3843_v31, 16  ;;  %v313_v9 = vshll.u32 %v3851_v52, 16  ;;  %1545 = vmatpush.bf16.msrb.mxu3 %v3363_v11  ;;  %1757 = vmatpush.bf16.msrb.mxu0 %v3372_v13  ;;  %v3338_v56 = vld [vmem:[%s4672_s1] sm:$0xff] }
  0x46   : > { %v609_v20 = vrot.slane %v608_v1, 4  ;;  %v317_v22 = vshrl.u32 %v3851_v52, 16  ;;  %v323_v23 = vshll.u32 %v3859_v60, 16  ;;  %v424_v24 = vshrl.u32 %v3862_v61, 16  ;;  %1006 = vmatpush.bf16.msrb.mxu1 %v3339_v14 }
  0x47   : > { %v3883_v26 = vpack.c.b16 %v676_v3, %v675_v0  ;;  %v604_v27 = vsel %vm3622_vm2, %v599_v6, %v603_v50  ;;  %v309_v28 = vrot.slane %v307_v8, 5  ;;  %v315_v29 = vrot.slane %v313_v9, 5  ;;  %v3916_v6 = vld [vmem:[%s3607_s23 + $0x88] sm:$0xf] }
  0x48   : > { %v614_v35 = vsel %vm3622_vm2, %v609_v20, %v613_v58  ;;  %v683_v37 = vunpack.c.l.b16 %v604_v27  ;;  %v319_v39 = vrot.slane %v317_v22, 4  ;;  %v325_v40 = vrot.slane %v323_v23, 5  ;;  %1355 = vmatpush.bf16.msrb.mxu2 %v3354_v25  ;;  %v3370_v20 = vld [vmem:[%s4672_s1 + $0x100] sm:$0xff] }
  0x49   : > { %v684_v48 = vunpack.c.l.b16 %v614_v35  ;;  %v310_v50 = vor.u32 %v309_v28, %v306_v2  ;;  %v426_v51 = vrot.slane %v424_v24, 4  ;;  %v427_v53 = vshll.u32 %v3862_v61, 16  ;;  %1546 = vmatpush.bf16.msrb.mxu3 %v3362_v44  ;;  %1758 = vmatpush.bf16.msrb.mxu0 %v3371_v45  ;;  %v3926_v24 = vld [vmem:[%s3607_s23 + $0x8c] sm:$0x1]  ;;  %v3930_v28 = vld [vmem:[%s3607_s23 + $0xb4] sm:$0xf] }
  0x4a   : > { %v320_v57 = vor.u32 %v319_v39, %v315_v29  ;;  %v433_v58 = vshll.u32 %v3888_v32, 16  ;;  %v437_v63 = vshrl.u32 %v3888_v32, 16  ;;  %v443_v0 = vshll.u32 %v3891_v33, 16  ;;  %4714 = vst [vmem:[#allocation7_spill] sm:$0xff] %v3930_v28  ;;  %1007 = vmatpush.bf16.msrb.mxu1 %v3338_v56 }
  0x4b   : > { %805 = vmatmul.bf16.gmra.mxu1 %v3854_v55  ;;  %825 = vmatmul.bf16.gmra.mxu2 %v3883_v26  ;;  %v3913_v1 = vpack.c.b16 %v684_v48, %v683_v37  ;;  %v311_v2 = vrot.slane %v310_v50, 4  ;;  %v429_v3 = vrot.slane %v427_v53, 5  ;;  %v520_v8 = vshrl.u32 %v3896_v43, 16 }
  0x4c   : > { %v321_v9 = vrot.slane %v320_v57, 4  ;;  %v435_v11 = vrot.slane %v433_v58, 5  ;;  %v439_v13 = vrot.slane %v437_v63, 4  ;;  %v445_v14 = vrot.slane %v443_v0, 5  ;;  %v3938_v58 = vld [vmem:[%s3607_s23 + $0xb8] sm:$0xf] }
  0x4d   : > { %4713 = vst [vmem:[#allocation6_spill] sm:$0xff] %v3913_v1  ;;  %845 = vmatmul.bf16.gmra.mxu3 %v3913_v1  ;;  %v316_v22 = vsel %vm3622_vm2, %v311_v2, %v315_v29  ;;  %v430_v23 = vor.u32 %v429_v3, %v426_v51  ;;  %v522_v25 = vrot.slane %v520_v8, 4  ;;  %v523_v27 = vshll.u32 %v3896_v43, 16  ;;  %1759 = vmatpush.bf16.msrb.mxu0 %v3370_v20  ;;  %v3946_v3 = vld [vmem:[%s3607_s23 + $0xbc] sm:$0x1] }
  0x4e   : > { %v326_v35 = vsel %vm3622_vm2, %v321_v9, %v325_v40  ;;  %v659_v37 = vunpack.c.l.b16 %v316_v22  ;;  %v440_v39 = vor.u32 %v439_v13, %v435_v11  ;;  %v529_v44 = vshll.u32 %v3916_v6, 16  ;;  %4715 = vst [vmem:[#allocation8_spill] sm:$0xff] %v3938_v58  ;;  %v3949_v8 = vld [vmem:[%s3607_s23 + $0x24] sm:$0xf]  ;;  %v3393_v9 = vld [vmem:[%s4672_s1 + $0x1b8] sm:$0xff] }
  0x4f   : > { %v660_v29 = vunpack.c.l.b16 %v326_v35  ;;  %v431_v45 = vrot.slane %v430_v23, 4  ;;  %v525_v48 = vrot.slane %v523_v27, 5  ;;  %v533_v50 = vshrl.u32 %v3916_v6, 16  ;;  %4716 = vst [vmem:[#allocation9_spill] sm:$0xff] %v3946_v3  ;;  %2140 = vmatpush.bf16.msra.mxu2 %v3393_v9 }
  0x50   : > { %v441_v51 = vrot.slane %v440_v39, 4  ;;  %v531_v53 = vrot.slane %v529_v44, 5  ;;  %v539_v57 = vshll.u32 %v3926_v24, 16  ;;  %v616_v56 = vshrl.u32 %v3930_v28, 16 }
  0x51   : > { %v3941_v40 = vpack.c.b16 %v660_v29, %v659_v37  ;;  %v436_v63 = vsel %vm3622_vm2, %v431_v45, %v435_v11  ;;  %v526_v0 = vor.u32 %v525_v48, %v522_v25  ;;  %v535_v2 = vrot.slane %v533_v50, 4  ;;  %v3962_v29 = vld [vmem:[%s3607_s23 + $0x28] sm:$0xf] }
  0x52   : > { %v446_v13 = vsel %vm3622_vm2, %v441_v51, %v445_v14  ;;  %v669_v20 = vunpack.c.l.b16 %v436_v63  ;;  %v541_v22 = vrot.slane %v539_v57, 5  ;;  %v618_v23 = vrot.slane %v616_v56, 4  ;;  %v3401_v57 = vld [vmem:[%s4672_s1 + $0x1f8] sm:$0xff] }
  0x53   : > { %785 = vmatmul.bf16.gmra.mxu0 %v3941_v40  ;;  %v670_v11 = vunpack.c.l.b16 %v446_v13  ;;  %v527_v25 = vrot.slane %v526_v0, 4  ;;  %v536_v27 = vor.u32 %v535_v2, %v531_v53  ;;  %v619_v35 = vshll.u32 %v3930_v28, 16  ;;  %v3385_v56 = vld [vmem:[%s4672_s1 + $0x178] sm:$0xff]  ;;  %2353 = vmatpush.bf16.msra.mxu3 %v3401_v57 }
  0x54   : > { %v625_v37 = vshll.u32 %v3938_v58, 16  ;;  %v629_v39 = vshrl.u32 %v3938_v58, 16  ;;  %v635_v44 = vshll.u32 %v3946_v3, 16  ;;  %v328_v14 = vshrl.u32 %v3949_v8, 16  ;;  %v3409_v63 = vld [vmem:[%s4672_s1 + $0x238] sm:$0xff]  ;;  %1949 = vmatpush.bf16.msra.mxu1 %v3385_v56 }
  0x55   : > { %v3965_v45 = vpack.c.b16 %v670_v11, %v669_v20  ;;  %v532_v48 = vsel %vm3622_vm2, %v527_v25, %v531_v53  ;;  %v537_v50 = vrot.slane %v536_v27, 4  ;;  %v621_v51 = vrot.slane %v619_v35, 5  ;;  %v3979_v20 = vld [vmem:[%s3607_s23 + $0x2c] sm:$0x1]  ;;  %2550 = vmatpush.bf16.msra.mxu0 %v3409_v63 }
  0x56   : > { %v677_v0 = vunpack.c.l.b16 %v532_v48  ;;  %v627_v2 = vrot.slane %v625_v37, 5  ;;  %v631_v9 = vrot.slane %v629_v39, 4  ;;  %v637_v13 = vrot.slane %v635_v44, 5 }
  0x57   : > { %4717 = vst [vmem:[#allocation10_spill] sm:$0xff] %v3965_v45  ;;  %v542_v53 = vsel %vm3622_vm2, %v537_v50, %v541_v22  ;;  %v622_v11 = vor.u32 %v621_v51, %v618_v23  ;;  %v330_v25 = vrot.slane %v328_v14, 4  ;;  %v331_v27 = vshll.u32 %v3949_v8, 16 }
  0x58   : > { %v678_v35 = vunpack.c.l.b16 %v542_v53  ;;  %v632_v3 = vor.u32 %v631_v9, %v627_v2  ;;  %v337_v28 = vshll.u32 %v3962_v29, 16  ;;  %v341_v48 = vshrl.u32 %v3962_v29, 16 }
  0x59   : > { %v623_v37 = vrot.slane %v622_v11, 4  ;;  %v333_v39 = vrot.slane %v331_v27, 5  ;;  %v347_v44 = vshll.u32 %v3979_v20, 16  ;;  %v1113_v11 = vrot.slane %v3651_v4, 5 }
  0x5a   : > { %v3987_v58 = vpack.c.b16 %v678_v35, %v677_v0  ;;  %v633_v22 = vrot.slane %v632_v3, 4  ;;  %v339_v23 = vrot.slane %v337_v28, 5  ;;  %v343_v14 = vrot.slane %v341_v48, 4 }
  0x5b   : > { %810 = vmatmul.bf16.gmra.mxu1 %v3965_v45  ;;  %v628_v50 = vsel %vm3622_vm2, %v623_v37, %v627_v2  ;;  %v334_v51 = vor.u32 %v333_v39, %v330_v25  ;;  %v349_v57 = vrot.slane %v347_v44, 5  ;;  %v4718_v0 = vmov 0 }
  0x5c   : > { %830 = vmatmul.bf16.gmra.mxu2 %v3987_v58  ;;  %v638_v56 = vsel %vm3622_vm2, %v633_v22, %v637_v13  ;;  %v685_v63 = vunpack.c.l.b16 %v628_v50  ;;  %v344_v9 = vor.u32 %v343_v14, %v339_v23  ;;  %v4719_v0 = vsel %vm3995_vm5, 4294967295, %v4718_v0 }
  0x5d   : > { %4720 = vst [vmem:[#allocation11_spill] sm:$0xff] %v4719_v0  ;;  %v3067_v28 = vrot.slane %v3635_v49, 9  ;;  %v686_v3 = vunpack.c.l.b16 %v638_v56  ;;  %v335_v53 = vrot.slane %v334_v51, 4  ;;  %v1110_v2 = vrot.slane %v3645_v62, 5 }
  0x5e   : > { %v345_v25 = vrot.slane %v344_v9, 4  ;;  %v3068_v27 = vrot.slane %v3718_v18, 9  ;;  %v1117_v35 = vrot.slane %v3730_v34, 5  ;;  %v1120_v13 = vrot.slane %v3741_v42, 5  ;;  %v3320_v9 = vld [vmem:[%s3607_s23] sm:$0xff] }
  0x5f   : > { %v4005_v48 = vpack.c.b16 %v686_v3, %v685_v63  ;;  %v340_v37 = vsel %vm3622_vm2, %v335_v53, %v339_v23  ;;  %v1111_v49 = vsel %vm3995_vm5, %v3067_v28, %v1110_v2  ;;  %v1112_v39 = vrot.slane %v1110_v2, 4  ;;  %v3321_v28 = vld [vmem:[%s3607_s23 + $0xc] sm:$0xff] }
  0x60   : > { %v350_v62 = vsel %vm3622_vm2, %v345_v25, %v349_v57  ;;  %v661_v4 = vunpack.c.l.b16 %v340_v37  ;;  %v1236_v44 = vunpack.c.l.b16 %v1111_v49  ;;  %v1118_v18 = vsel %vm3995_vm5, %v3068_v27, %v1117_v35  ;;  %v3392_v3 = vld [vmem:[%s4672_s1 + $0x1b0] sm:$0xff] }
  0x61   : > { %850 = vmatmul.bf16.gmra.mxu3 %v4005_v48  ;;  %v662_v34 = vunpack.c.l.b16 %v350_v62  ;;  %v1114_v42 = vsel %vm3995_vm5, %v1112_v39, %v1113_v11  ;;  %v1119_v22 = vrot.slane %v1117_v35, 4  ;;  %v1238_v14 = vunpack.c.l.b16 %v1118_v18  ;;  %2141 = vmatpush.bf16.msra.mxu2 %v3392_v3  ;;  %v3400_v53 = vld [vmem:[%s4672_s1 + $0x1f0] sm:$0xff] }
  0x62   : > { %v1237_v23 = vunpack.c.l.b16 %v1114_v42  ;;  %v3384_v2 = vld [vmem:[%s4672_s1 + $0x170] sm:$0xff]  ;;  %2354 = vmatpush.bf16.msra.mxu3 %v3400_v53  ;;  %v1124_v25 = vrot.slane %v3851_v52, 5  ;;  %v3069_v27 = vrot.slane %v3843_v31, 9  ;;  %v4059_v31 = vld [vmem:[%s3607_s23 + $0x24] sm:$0xff]  ;;  %v1134_v18 = vrot.slane %v3979_v20, 5 }
  0x63   : > { %v4018_v50 = vpack.c.b16 %v662_v34, %v661_v4  ;;  %v1121_v51 = vsel %vm3995_vm5, %v1119_v22, %v1120_v13  ;;  %v3408_v11 = vld [vmem:[%s4672_s1 + $0x230] sm:$0xff]  ;;  %1950 = vmatpush.bf16.msra.mxu1 %v3384_v2  ;;  %v1127_v13 = vrot.slane %v3859_v60, 5  ;;  %v1131_v4 = vrot.slane %v3962_v29, 5  ;;  %v3391_v42 = vld [vmem:[%s4672_s1 + $0x1a8] sm:$0xff]  ;;  %v3540_v2 = vld [vmem:[%s3607_s23 + $0x38] sm:$0x1] }
  0x64   : > { %v1268_v57 = vpack.c.b16 %v1237_v23, %v1236_v44  ;;  %v1239_v56 = vunpack.c.l.b16 %v1121_v51  ;;  %2551 = vmatpush.bf16.msra.mxu0 %v3408_v11  ;;  %v1126_v35 = vrot.slane %v1124_v25, 4  ;;  %v1125_v37 = vsel %vm3995_vm5, %v3069_v27, %v1124_v25  ;;  %v3399_v20 = vld [vmem:[%s4672_s1 + $0x1e8] sm:$0xff] }
  0x65   : > { %790 = vmatmul.bf16.gmra.mxu0 %v4018_v50  ;;  %v1240_v52 = vunpack.c.l.b16 %v1125_v37  ;;  %v3070_v60 = vrot.slane %v3949_v8, 9  ;;  %v1133_v44 = vrot.slane %v1131_v4, 4  ;;  %2142 = vmatpush.bf16.msra.mxu2 %v3391_v42  ;;  %v3383_v23 = vld [vmem:[%s4672_s1 + $0x168] sm:$0xff]  ;;  %v1141_v11 = vrot.slane %v3540_v2, 5 }
  0x66   : > { %v4023_v63 = vpack.c.b16 %v1239_v56, %v1238_v14  ;;  %v1128_v49 = vsel %vm3995_vm5, %v1126_v35, %v1127_v13  ;;  %v3407_v14 = vld [vmem:[%s4672_s1 + $0x228] sm:$0xff]  ;;  %2355 = vmatpush.bf16.msra.mxu3 %v3399_v20  ;;  %v1152_v2 = vrot.slane %v3771_v10, 5 }
  0x67   : > { %v1241_v39 = vunpack.c.l.b16 %v1128_v49  ;;  %v1132_v34 = vsel %vm3995_vm5, %v3070_v60, %v1131_v4  ;;  %v1135_v29 = vsel %vm3995_vm5, %v1133_v44, %v1134_v18  ;;  %1951 = vmatpush.bf16.msra.mxu1 %v3383_v23  ;;  %v4107_v4 = vld [vmem:[%s3607_s23 + $0x3c] sm:$0xff]  ;;  %v3072_v60 = vrot.slane %v3654_v5, 9 }
  0x68   : > { %v1242_v8 = vunpack.c.l.b16 %v1132_v34  ;;  %v1243_v22 = vunpack.c.l.b16 %v1135_v29  ;;  %2552 = vmatpush.bf16.msra.mxu0 %v3407_v14  ;;  %v1148_v18 = vrot.slane %v3671_v19, 5  ;;  %v3390_v5 = vld [vmem:[%s4672_s1 + $0x1a0] sm:$0xff] }
  0x69   : > { %v4053_v62 = vpack.c.b16 %v1241_v39, %v1240_v52  ;;  %v1145_v52 = vrot.slane %v3665_v15, 5  ;;  %2143 = vmatpush.bf16.msra.mxu2 %v3390_v5  ;;  %v3398_v23 = vld [vmem:[%s4672_s1 + $0x1e0] sm:$0xff] }
  0x6a   : > { %v4081_v51 = vpack.c.b16 %v1243_v22, %v1242_v8  ;;  %v3382_v14 = vld [vmem:[%s4672_s1 + $0x160] sm:$0xff]  ;;  %2356 = vmatpush.bf16.msra.mxu3 %v3398_v23  ;;  %v1159_v23 = vrot.slane %v3888_v32, 5 }
  0x6b   : > { %1008 = vmatmul.bf16.vlgmr.msrb.gmra.mxu1 %v3320_v9  ;;  %v4087_v9 = vld [vmem:[%s3607_s23 + $0x30] sm:$0xff]  ;;  %v1147_v44 = vrot.slane %v1145_v52, 4  ;;  %v1146_v15 = vsel %vm3995_vm5, %v3072_v60, %v1145_v52 }
  0x6c   : > { %1356 = vmatmul.bf16.vlgmr.msrb.gmra.mxu2 %v1268_v57  ;;  %v3538_v57 = vld [vmem:[%s3607_s23 + $0x34] sm:$0xf]  ;;  %v1246_v19 = vunpack.c.l.b16 %v1146_v15  ;;  %1952 = vmatpush.bf16.msra.mxu1 %v3382_v14 }
  0x6d   : > { %v1138_v56 = vrot.slane %v3538_v57, 5  ;;  %v1149_v8 = vsel %vm3995_vm5, %v1147_v44, %v1148_v18  ;;  %v4181_v14 = vld [vmem:[%s3607_s23 + $0x54] sm:$0xff] }
  0x6e   : > { %v1247_v20 = vunpack.c.l.b16 %v1149_v8  ;;  %4728 = vst [vmem:[#allocation19_spill] sm:$0xff] %v4181_v14 }
  0x6f   : > { %v1140_v53 = vrot.slane %v1138_v56, 4 }
  0x71   : > { %1547 = vmatmul.bf16.vlgmr.msrb.gmra.mxu3 %v3321_v28  ;;  %v1142_v27 = vsel %vm3995_vm5, %v1140_v53, %v1141_v11  ;;  %v3406_v53 = vld [vmem:[%s4672_s1 + $0x220] sm:$0xff] }
  0x72   : > { %v1245_v13 = vunpack.c.l.b16 %v1142_v27  ;;  %2553 = vmatpush.bf16.msra.mxu0 %v3406_v53  ;;  %v3073_v27 = vrot.slane %v3752_v54, 9  ;;  %v3074_v53 = vrot.slane %v3862_v61, 9 }
  0x74   : > { %v1153_v44 = vsel %vm3995_vm5, %v3073_v27, %v1152_v2  ;;  %v1162_v27 = vrot.slane %v3891_v33, 5  ;;  %v3389_v33 = vld [vmem:[%s4672_s1 + $0x198] sm:$0xff] }
  0x75   : > { %1760 = vmatmul.bf16.vlgmr.msrb.gmra.mxu0 %v3832_v7  ;;  %v4043_v7 = vld [vmem:[%s3607_s23 + $0x18] sm:$0xff]  ;;  %v1248_v15 = vunpack.c.l.b16 %v1153_v44  ;;  %2144 = vmatpush.bf16.msra.mxu2 %v3389_v33 }
  0x7b   : > { %1013 = vmatmul.bf16.gmra.mxu1 %v3321_v28  ;;  %v3539_v28 = vld [vmem:[%s3607_s23 + $0x30] sm:$0xf] }
  0x7c   : > { %1361 = vmatmul.bf16.gmra.mxu2 %v4023_v63  ;;  %v3071_v3 = vrot.slane %v3539_v28, 9 }
  0x7e   : > { %v1139_v25 = vsel %vm3995_vm5, %v3071_v3, %v1138_v56  ;;  %v4140_v3 = vpack.c.b16 %v1247_v20, %v1246_v19 }
  0x7f   : > { %v1244_v35 = vunpack.c.l.b16 %v1139_v25  ;;  %v4151_v25 = vld [vmem:[%s3607_s23 + $0x48] sm:$0xff] }
  0x80   : > { %4723 = vst [vmem:[#allocation14_spill] sm:$0xff] %v4140_v3 }
  0x81   : > { %1552 = vmatmul.bf16.gmra.mxu3 %v4043_v7  ;;  %v4099_v49 = vpack.c.b16 %v1245_v13, %v1244_v35  ;;  %4724 = vst [vmem:[#allocation15_spill] sm:$0xff] %v4151_v25  ;;  %v1154_v35 = vrot.slane %v1152_v2, 4  ;;  %v1155_v13 = vrot.slane %v3779_v17, 5  ;;  %v1161_v2 = vrot.slane %v1159_v23, 4 }
  0x83   : > { %v1156_v18 = vsel %vm3995_vm5, %v1154_v35, %v1155_v13  ;;  %v1163_v61 = vsel %vm3995_vm5, %v1161_v2, %v1162_v27 }
  0x84   : > { %v1249_v54 = vunpack.c.l.b16 %v1156_v18  ;;  %v1160_v18 = vsel %vm3995_vm5, %v3074_v53, %v1159_v23  ;;  %v3381_v23 = vld [vmem:[%s4672_s1 + $0x158] sm:$0xff] }
  0x85   : > { %1765 = vmatmul.bf16.gmra.mxu0 %v3941_v40  ;;  %1953 = vmatpush.bf16.msra.mxu1 %v3381_v23  ;;  %v3542_v23 = vld [vmem:[%s3607_s23 + $0x60] sm:$0xf] }
  0x86   : > { %v4175_v20 = vpack.c.b16 %v1249_v54, %v1248_v15  ;;  %v1250_v15 = vunpack.c.l.b16 %v1160_v18  ;;  %v1251_v54 = vunpack.c.l.b16 %v1163_v61  ;;  %v3541_v61 = vld [vmem:[%s3607_s23 + $0x64] sm:$0xf] }
  0x87   : > { %v1166_v33 = vrot.slane %v3541_v61, 5 }
  0x88   : > { %4727 = vst [vmem:[#allocation18_spill] sm:$0xff] %v4175_v20  ;;  %v4212_v27 = vpack.c.b16 %v1251_v54, %v1250_v15  ;;  %v3075_v15 = vrot.slane %v3542_v23, 9 }
  0x89   : > { %v1168_v54 = vrot.slane %v1166_v33, 4 }
  0x8a   : > { %4730 = vst [vmem:[#allocation21_spill] sm:$0xff] %v4212_v27 }
  0x8b   : > { %1018 = vmatmul.bf16.gmra.mxu1 %v4043_v7 }
  0x8c   : > { %1366 = vmatmul.bf16.gmra.mxu2 %v4053_v62 }
  0x91   : > { %1557 = vmatmul.bf16.gmra.mxu3 %v4059_v31 }
  0x95   : > { %1770 = vmatmul.bf16.gmra.mxu0 %v4018_v50 }
  0x9b   : > { %1023 = vmatmul.bf16.gmra.mxu1 %v4059_v31 }
  0x9c   : > { %1371 = vmatmul.bf16.gmra.mxu2 %v4081_v51 }
  0xa1   : > { %1562 = vmatmul.bf16.gmra.mxu3 %v4087_v9 }
  0xa5   : > { %1775 = vmatmul.bf16.gmra.mxu0 %v3640_v59 }
  0xa8   : > { %v4097_v37 = vpop.f32.mrf.mxu1 }
  0xab   : > { %v4102_v39 = vpop.f32.mrf.mxu0  ;;  %1028 = vmatmul.bf16.gmra.mxu1 %v4087_v9 }
  0xac   : > { %1376 = vmatmul.bf16.gmra.mxu2 %v4099_v49 }
  0xae   : > { %v4111_v34 = vpop.f32.mrf.mxu2 }
  0xaf   : > { %v4113_v29 = vpop.f32.mrf.mxu3 }
  0xb0   : > { %4721 = vst [vmem:[#allocation12_spill] sm:$0xff] %v4113_v29  ;;  %v4115_v42 = vpop.f32.mrf.mxu1 }
  0xb1   : > { %1567 = vmatmul.bf16.gmra.mxu3 %v4107_v4 }
  0xb3   : > { %v4125_v22 = vpop.f32.mrf.mxu0 }
  0xb5   : > { %1780 = vmatmul.bf16.gmra.mxu0 %v3736_v38 }
  0xb6   : > { %v4134_v57 = vpop.f32.mrf.mxu2 }
  0xb7   : > { %v4136_v56 = vpop.f32.mrf.mxu3 }
  0xb8   : > { %4722 = vst [vmem:[#allocation13_spill] sm:$0xff] %v4136_v56  ;;  %v4138_v28 = vpop.f32.mrf.mxu1 }
  0xbb   : > { %1033 = vmatmul.bf16.gmra.mxu1 %v4107_v4 }
  0xbc   : > { %v4147_v11 = vpop.f32.mrf.mxu0  ;;  %1381 = vmatmul.bf16.gmra.mxu2 %v4140_v3 }
  0xbe   : > { %v4155_v52 = vpop.f32.mrf.mxu2 }
  0xbf   : > { %v4157_v60 = vpop.f32.mrf.mxu3 }
  0xc0   : > { %4725 = vst [vmem:[#allocation16_spill] sm:$0xff] %v4157_v60  ;;  %v4159_v10 = vpop.f32.mrf.mxu1  ;;  %v3543_v60 = vld [vmem:[%s3607_s23 + $0x68] sm:$0x1] }
  0xc1   : > { %1572 = vmatmul.bf16.gmra.mxu3 %v4151_v25  ;;  %v1169_v56 = vrot.slane %v3543_v60, 5 }
  0xc4   : > { %v4167_v17 = vpop.f32.mrf.mxu0 }
  0xc5   : > { %1785 = vmatmul.bf16.gmra.mxu0 %v3854_v55 }
  0xc6   : > { %v4169_v8 = vpop.f32.mrf.mxu2 }
  0xc7   : > { %v4171_v5 = vpop.f32.mrf.mxu3 }
  0xc8   : > { %4726 = vst [vmem:[#allocation17_spill] sm:$0xff] %v4171_v5  ;;  %v4173_v19 = vpop.f32.mrf.mxu1 }
  0xcb   : > { %1038 = vmatmul.bf16.gmra.mxu1 %v4151_v25 }
  0xcc   : > { %1386 = vmatmul.bf16.gmra.mxu2 %v4175_v20 }
  0xce   : > { %v4185_v35 = vpop.f32.mrf.mxu2 }
  0xd0   : > { %v4187_v13 = vpop.f32.mrf.mxu0  ;;  %v4189_v44 = vpop.f32.mrf.mxu3 }
  0xd1   : > { %4729 = vst [vmem:[#allocation20_spill] sm:$0xff] %v4189_v44  ;;  %1577 = vmatmul.bf16.gmra.mxu3 %v4181_v14  ;;  %v4192_v32 = vpop.f32.mrf.mxu1  ;;  %v3397_v44 = vld [vmem:[%s4672_s1 + $0x1d8] sm:$0xff] }
  0xd2   : > { %2357 = vmatpush.bf16.msra.mxu3 %v3397_v44  ;;  %v4225_v44 = vld [vmem:[%s3607_s23 + $0x60] sm:$0xff] }
  0xd3   : > { %4732 = vst [vmem:[#allocation23_spill] sm:$0xff] %v4225_v44 }
  0xd5   : > { %1790 = vmatmul.bf16.gmra.mxu0 %v3965_v45  ;;  %v3405_v45 = vld [vmem:[%s4672_s1 + $0x218] sm:$0xff] }
  0xd6   : > { %v4208_v53 = vpop.f32.mrf.mxu2  ;;  %2554 = vmatpush.bf16.msra.mxu0 %v3405_v45  ;;  %v1170_v45 = vsel %vm3995_vm5, %v1168_v54, %v1169_v56 }
  0xd7   : > { %v1253_v60 = vunpack.c.l.b16 %v1170_v45  ;;  %v3545_v45 = vld [vmem:[%s3607_s23 + $0x6c] sm:$0xf] }
  0xd8   : > { %v4210_v2 = vpop.f32.mrf.mxu0  ;;  %v4217_v5 = vpop.f32.mrf.mxu3 }
  0xd9   : > { %v4214_v18 = vpop.f32.mrf.mxu1  ;;  %4731 = vst [vmem:[#allocation22_spill] sm:$0xff] %v4217_v5 }
  0xdb   : > { %1043 = vmatmul.bf16.gmra.mxu1 %v4181_v14  ;;  %v1167_v14 = vsel %vm3995_vm5, %v3075_v15, %v1166_v33  ;;  %v3544_v33 = vld [vmem:[%s3607_s23 + $0x70] sm:$0xf] }
  0xdc   : > { %1391 = vmatmul.bf16.gmra.mxu2 %v4212_v27  ;;  %v1252_v20 = vunpack.c.l.b16 %v1167_v14  ;;  %v1173_v15 = vrot.slane %v3544_v33, 5  ;;  %v4256_v14 = vld [vmem:[%s3607_s23 + $0x6c] sm:$0xff] }
  0xde   : > { %v4245_v29 = vpack.c.b16 %v1253_v60, %v1252_v20  ;;  %v3546_v20 = vld [vmem:[%s3607_s23 + $0x74] sm:$0x1] }
  0xdf   : > { %v4229_v61 = vpop.f32.mrf.mxu2  ;;  %v1176_v60 = vrot.slane %v3546_v20, 5 }
  0xe0   : > { %4733 = vst [vmem:[#allocation24_spill] sm:$0xff] %v4229_v61 }
  0xe1   : > { %1582 = vmatmul.bf16.gmra.mxu3 %v4225_v44  ;;  %v4232_v5 = vpop.f32.mrf.mxu1  ;;  %4736 = vst [vmem:[#allocation27_spill] sm:$0xff] %v4245_v29 }
  0xe2   : > { %v4238_v27 = vpop.f32.mrf.mxu0 }
  0xe4   : > { %v4240_v23 = vpop.f32.mrf.mxu3 }
  0xe5   : > { %4734 = vst [vmem:[#allocation25_spill] sm:$0xff] %v4240_v23  ;;  %1795 = vmatmul.bf16.gmra.mxu0 %v3667_v16  ;;  %v3076_v23 = vrot.slane %v3545_v45, 9  ;;  %v1175_v16 = vrot.slane %v1173_v15, 4  ;;  %v3388_v45 = vld [vmem:[%s4672_s1 + $0x190] sm:$0xff] }
  0xe6   : > { %2145 = vmatpush.bf16.msra.mxu2 %v3388_v45 }
  0xe7   : > { %v4243_v55 = vpop.f32.mrf.mxu2 }
  0xe8   : > { %4735 = vst [vmem:[#allocation26_spill] sm:$0xff] %v4243_v55 }
  0xe9   : > { %v1009_v25 = vpop.f32.mrf.mxu1 }
  0xea   : > { %v4248_v3 = vpop.f32.mrf.mxu0  ;;  %v1010_v56 = vadd.f32 %v1009_v25, %v4102_v39  ;;  %v1174_v39 = vsel %vm3995_vm5, %v3076_v23, %v1173_v15  ;;  %v1177_v25 = vsel %vm3995_vm5, %v1175_v16, %v1176_v60  ;;  %v3396_v23 = vld [vmem:[%s4672_s1 + $0x1d0] sm:$0xff] }
  0xeb   : > { %1048 = vmatmul.bf16.gmra.mxu1 %v4225_v44  ;;  %v1254_v20 = vunpack.c.l.b16 %v1174_v39  ;;  %v1255_v61 = vunpack.c.l.b16 %v1177_v25  ;;  %v3380_v16 = vld [vmem:[%s4672_s1 + $0x150] sm:$0xff]  ;;  %2358 = vmatpush.bf16.msra.mxu3 %v3396_v23 }
  0xec   : > { %v4252_v54 = vpop.f32.mrf.mxu3  ;;  %1396 = vmatmul.bf16.gmra.mxu2 %v4245_v29  ;;  %1954 = vmatpush.bf16.msra.mxu1 %v3380_v16  ;;  %v3404_v25 = vld [vmem:[%s4672_s1 + $0x210] sm:$0xff] }
  0xed   : > { %4737 = vst [vmem:[#allocation28_spill] sm:$0xff] %v4252_v54  ;;  %v4278_v60 = vpack.c.b16 %v1255_v61, %v1254_v20  ;;  %2555 = vmatpush.bf16.msra.mxu0 %v3404_v25  ;;  %v3077_v61 = vrot.slane %v3783_v21, 9 }
  0xef   : > { %v1357_v55 = vpop.f32.mrf.mxu2 }
  0xf0   : > { %v1437_v38 = vadd.f32 %v1357_v55, %v1010_v56 }
  0xf1   : > { %1587 = vmatmul.bf16.gmra.mxu3 %v4256_v14  ;;  %v1011_v33 = vpop.f32.mrf.mxu1 }
  0xf2   : > { %v1761_v54 = vpop.f32.mrf.mxu0  ;;  %v1012_v29 = vadd.f32 %v1011_v33, %v4125_v22 }
  0xf4   : > { %v1548_v44 = vpop.f32.mrf.mxu3 }
  0xf5   : > { %1800 = vmatmul.bf16.gmra.mxu0 %v3774_v12  ;;  %v1628_v55 = vadd.f32 %v1548_v44, %v1437_v38  ;;  %v1180_v38 = vrot.slane %v3805_v46, 5  ;;  %v1183_v46 = vrot.slane %v3808_v47, 5 }
  0xf7   : > { %v1359_v22 = vpop.f32.mrf.mxu2  ;;  %v4276_v15 = vadd.f32 %v1761_v54, %v1628_v55  ;;  %v1182_v20 = vrot.slane %v1180_v38, 4 }
  0xf8   : > { %v1438_v56 = vadd.f32 %v1359_v22, %v1012_v29  ;;  %v4288_v29 = vld [vmem:[%s3607_s23 + $0x78] sm:$0xff]  ;;  %v1181_v22 = vsel %vm3995_vm5, %v3077_v61, %v1180_v38  ;;  %v1187_v61 = vrot.slane %v3916_v6, 5 }
  0xf9   : > { %v1014_v33 = vpop.f32.mrf.mxu1 }
  0xfa   : > { %v1763_v44 = vpop.f32.mrf.mxu0  ;;  %v1015_v39 = vadd.f32 %v1014_v33, %v4147_v11 }
  0xfb   : > { %1053 = vmatmul.bf16.gmra.mxu1 %v4256_v14 }
  0xfc   : > { %v1550_v45 = vpop.f32.mrf.mxu3  ;;  %1401 = vmatmul.bf16.gmra.mxu2 %v4278_v60 }
  0xfd   : > { %v1629_v54 = vadd.f32 %v1550_v45, %v1438_v56  ;;  %v1184_v56 = vsel %vm3995_vm5, %v1182_v20, %v1183_v46  ;;  %v1256_v45 = vunpack.c.l.b16 %v1181_v22  ;;  %v4310_v22 = vld [vmem:[%s3607_s23 + $0x84] sm:$0xff] }
  0xfe   : > { %v1257_v47 = vunpack.c.l.b16 %v1184_v56  ;;  %v1189_v56 = vrot.slane %v1187_v61, 4 }
  0xff   : > { %v1362_v55 = vpop.f32.mrf.mxu2  ;;  %v4292_v11 = vadd.f32 %v1763_v44, %v1629_v54 }
 0x100   : > { %v1439_v23 = vadd.f32 %v1362_v55, %v1015_v39 }
 0x101   : > { %4738 = vst [vmem:[#allocation29_spill] sm:$0xff] %v4292_v11  ;;  %1592 = vmatmul.bf16.gmra.mxu3 %v4288_v29  ;;  %v1016_v16 = vpop.f32.mrf.mxu1  ;;  %v4303_v11 = vpack.c.b16 %v1257_v47, %v1256_v45 }
 0x102   : > { %v1766_v33 = vpop.f32.mrf.mxu0  ;;  %v1017_v25 = vadd.f32 %v1016_v16, %v4167_v17 }
 0x104   : > { %v1553_v21 = vpop.f32.mrf.mxu3 }
 0x105   : > { %1805 = vmatmul.bf16.gmra.mxu0 %v3883_v26  ;;  %v1630_v44 = vadd.f32 %v1553_v21, %v1439_v23  ;;  %v3078_v23 = vrot.slane %v3896_v43, 9  ;;  %v3387_v43 = vld [vmem:[%s4672_s1 + $0x188] sm:$0xff] }
 0x106   : > { %2146 = vmatpush.bf16.msra.mxu2 %v3387_v43  ;;  %v3548_v43 = vld [vmem:[%s3607_s23 + $0x90] sm:$0xf] }
 0x107   : > { %v1364_v39 = vpop.f32.mrf.mxu2  ;;  %v4301_v54 = vadd.f32 %v1766_v33, %v1630_v44  ;;  %v1190_v33 = vrot.slane %v3926_v24, 5  ;;  %v1188_v45 = vsel %vm3995_vm5, %v3078_v23, %v1187_v61  ;;  %v3395_v61 = vld [vmem:[%s4672_s1 + $0x1c8] sm:$0xff] }
 0x108   : > { %v1440_v55 = vadd.f32 %v1364_v39, %v1017_v25  ;;  %2359 = vmatpush.bf16.msra.mxu3 %v3395_v61 }
 0x109   : > { %v1019_v38 = vpop.f32.mrf.mxu1  ;;  %v1191_v47 = vsel %vm3995_vm5, %v1189_v56, %v1190_v33  ;;  %v3547_v33 = vld [vmem:[%s3607_s23 + $0x94] sm:$0xf] }
 0x10a   : > { %v1768_v20 = vpop.f32.mrf.mxu0  ;;  %v1020_v46 = vadd.f32 %v1019_v38, %v4187_v13  ;;  %v1259_v38 = vunpack.c.l.b16 %v1191_v47 }
 0x10b   : > { %1058 = vmatmul.bf16.gmra.mxu1 %v4288_v29 }
 0x10c   : > { %v1555_v17 = vpop.f32.mrf.mxu3  ;;  %1406 = vmatmul.bf16.gmra.mxu2 %v4303_v11 }
 0x10d   : > { %v1631_v16 = vadd.f32 %v1555_v17, %v1440_v55  ;;  %v1258_v55 = vunpack.c.l.b16 %v1188_v45  ;;  %v3403_v45 = vld [vmem:[%s4672_s1 + $0x208] sm:$0xff] }
 0x10e   : > { %2556 = vmatpush.bf16.msra.mxu0 %v3403_v45 }
 0x10f   : > { %v1367_v25 = vpop.f32.mrf.mxu2  ;;  %v4314_v21 = vadd.f32 %v1768_v20, %v1631_v16  ;;  %v4334_v23 = vpack.c.b16 %v1259_v38, %v1258_v55  ;;  %v3549_v38 = vld [vmem:[%s3607_s23 + $0x98] sm:$0x1] }
 0x110   : > { %v1441_v6 = vadd.f32 %v1367_v25, %v1020_v46  ;;  %v1194_v25 = vrot.slane %v3547_v33, 5 }
 0x111   : > { %1597 = vmatmul.bf16.gmra.mxu3 %v4310_v22  ;;  %v1021_v13 = vpop.f32.mrf.mxu1 }
 0x112   : > { %v1771_v44 = vpop.f32.mrf.mxu0  ;;  %v1022_v39 = vadd.f32 %v1021_v13, %v4210_v2  ;;  %v3379_v2 = vld [vmem:[%s4672_s1 + $0x148] sm:$0xff]  ;;  %v1196_v55 = vrot.slane %v1194_v25, 4 }
 0x113   : > { %1955 = vmatpush.bf16.msra.mxu1 %v3379_v2 }
 0x114   : > { %v1558_v24 = vpop.f32.mrf.mxu3 }
 0x115   : > { %1810 = vmatmul.bf16.gmra.mxu0 %v3987_v58  ;;  %v1632_v20 = vadd.f32 %v1558_v24, %v1441_v6  ;;  %v3079_v24 = vrot.slane %v3548_v43, 9 }
 0x117   : > { %v1369_v46 = vpop.f32.mrf.mxu2  ;;  %v4332_v17 = vadd.f32 %v1771_v44, %v1632_v20  ;;  %v1197_v20 = vrot.slane %v3549_v38, 5 }
 0x118   : > { %v1442_v16 = vadd.f32 %v1369_v46, %v1022_v39  ;;  %v4344_v39 = vld [vmem:[%s3607_s23 + $0x90] sm:$0xff] }
 0x119   : > { %v1024_v56 = vpop.f32.mrf.mxu1 }
 0x11a   : > { %v1773_v6 = vpop.f32.mrf.mxu0  ;;  %v1025_v13 = vadd.f32 %v1024_v56, %v4238_v27  ;;  %v1195_v56 = vsel %vm3995_vm5, %v3079_v24, %v1194_v25 }
 0x11b   : > { %1063 = vmatmul.bf16.gmra.mxu1 %v4310_v22  ;;  %v1260_v43 = vunpack.c.l.b16 %v1195_v56  ;;  %v4365_v56 = vld [vmem:[%s3607_s23 + $0x9c] sm:$0xff] }
 0x11c   : > { %v1560_v47 = vpop.f32.mrf.mxu3  ;;  %1411 = vmatmul.bf16.gmra.mxu2 %v4334_v23  ;;  %4742 = vst [vmem:[#allocation33_spill] sm:$0xff] %v4365_v56 }
 0x11d   : > { %v1633_v44 = vadd.f32 %v1560_v47, %v1442_v16  ;;  %v1198_v16 = vsel %vm3995_vm5, %v1196_v55, %v1197_v20  ;;  %v3550_v55 = vld [vmem:[%s3607_s23 + $0xa0] sm:$0xf] }
 0x11e   : > { %v1261_v38 = vunpack.c.l.b16 %v1198_v16  ;;  %v1201_v20 = vrot.slane %v3550_v55, 5 }
 0x11f   : > { %v1372_v61 = vpop.f32.mrf.mxu2  ;;  %v4348_v27 = vadd.f32 %v1773_v6, %v1633_v44 }
 0x120   : > { %v1443_v2 = vadd.f32 %v1372_v61, %v1025_v13  ;;  %v4359_v25 = vpack.c.b16 %v1261_v38, %v1260_v43 }
 0x121   : > { %4739 = vst [vmem:[#allocation30_spill] sm:$0xff] %v4348_v27  ;;  %1602 = vmatmul.bf16.gmra.mxu3 %v4344_v39  ;;  %v1026_v46 = vpop.f32.mrf.mxu1 }
 0x122   : > { %v1776_v33 = vpop.f32.mrf.mxu0  ;;  %v1027_v45 = vadd.f32 %v1026_v46, %v4248_v3  ;;  %4741 = vst [vmem:[#allocation32_spill] sm:$0xff] %v4359_v25 }
 0x124   : > { %v1563_v47 = vpop.f32.mrf.mxu3 }
 0x125   : > { %1815 = vmatmul.bf16.gmra.mxu0 %v3683_v36  ;;  %v1634_v6 = vadd.f32 %v1563_v47, %v1443_v2  ;;  %v3551_v2 = vld [vmem:[%s3607_s23 + $0x9c] sm:$0xf]  ;;  %v1203_v47 = vrot.slane %v1201_v20, 4 }
 0x126   : > { %v3080_v16 = vrot.slane %v3551_v2, 9  ;;  %v3386_v2 = vld [vmem:[%s4672_s1 + $0x180] sm:$0xff] }
 0x127   : > { %v1374_v13 = vpop.f32.mrf.mxu2  ;;  %v4357_v44 = vadd.f32 %v1776_v33, %v1634_v6  ;;  %v3552_v33 = vld [vmem:[%s3607_s23 + $0xa4] sm:$0x1]  ;;  %2147 = vmatpush.bf16.msra.mxu2 %v3386_v2 }
 0x128   : > { %v1444_v61 = vadd.f32 %v1374_v13, %v1027_v45  ;;  %v1204_v6 = vrot.slane %v3552_v33, 5 }
 0x129   : > { %4740 = vst [vmem:[#allocation31_spill] sm:$0xff] %v4357_v44  ;;  %v1029_v24 = vpop.f32.mrf.mxu1  ;;  %v1202_v44 = vsel %vm3995_vm5, %v3080_v16, %v1201_v20  ;;  %v3394_v20 = vld [vmem:[%s4672_s1 + $0x1c0] sm:$0xff] }
 0x12a   : > { %v1778_v27 = vpop.f32.mrf.mxu0  ;;  %v1030_v45 = vadd.f32 %v1029_v24, %v4097_v37  ;;  %v1262_v37 = vunpack.c.l.b16 %v1202_v44  ;;  %2360 = vmatpush.bf16.msra.mxu3 %v3394_v20  ;;  %v3555_v20 = vld [vmem:[%s3607_s23 + $0xb0] sm:$0x1] }
 0x12b   : > { %1068 = vmatmul.bf16.gmra.mxu1 %v4344_v39 }
 0x12c   : > { %v1565_v3 = vpop.f32.mrf.mxu3  ;;  %1416 = vmatmul.bf16.gmra.mxu2 %v4359_v25  ;;  %v4437_v25 = vld [vmem:[%s3607_s23 + $0xc8] sm:$0x1] }
 0x12d   : > { %v1635_v46 = vadd.f32 %v1565_v3, %v1444_v61  ;;  %v1205_v61 = vsel %vm3995_vm5, %v1203_v47, %v1204_v6 }
 0x12f   : > { %v1377_v43 = vpop.f32.mrf.mxu2  ;;  %v4370_v38 = vadd.f32 %v1778_v27, %v1635_v46  ;;  %v1263_v27 = vunpack.c.l.b16 %v1205_v61  ;;  %v3378_v46 = vld [vmem:[%s4672_s1 + $0x140] sm:$0xff] }
 0x130   : > { %v1445_v13 = vadd.f32 %v1377_v43, %v1030_v45  ;;  %1956 = vmatpush.bf16.msra.mxu1 %v3378_v46  ;;  %v1211_v46 = vrot.slane %v3555_v20, 5 }
 0x131   : > { %4743 = vst [vmem:[#allocation34_spill] sm:$0xff] %v4370_v38  ;;  %1607 = vmatmul.bf16.gmra.mxu3 %v4365_v56  ;;  %v1031_v55 = vpop.f32.mrf.mxu1  ;;  %v4390_v45 = vpack.c.b16 %v1263_v27, %v1262_v37 }
 0x132   : > { %v1781_v3 = vpop.f32.mrf.mxu0  ;;  %v1032_v16 = vadd.f32 %v1031_v55, %v4115_v42 }
 0x133   : > { %4745 = vst [vmem:[#allocation36_spill] sm:$0xff] %v4390_v45 }
 0x134   : > { %v1568_v33 = vpop.f32.mrf.mxu3 }
 0x135   : > { %1820 = vmatmul.bf16.gmra.mxu0 %v3800_v41  ;;  %v1636_v24 = vadd.f32 %v1568_v33, %v1445_v13  ;;  %v3553_v13 = vld [vmem:[%s3607_s23 + $0xac] sm:$0xf]  ;;  %v3402_v33 = vld [vmem:[%s4672_s1 + $0x200] sm:$0xff] }
 0x136   : > { %v1208_v61 = vrot.slane %v3553_v13, 5  ;;  %2557 = vmatpush.bf16.msra.mxu0 %v3402_v33 }
 0x137   : > { %v1379_v47 = vpop.f32.mrf.mxu2  ;;  %v4388_v44 = vadd.f32 %v1781_v3, %v1636_v24  ;;  %v4399_v3 = vld [vmem:[%s3607_s23 + $0xa8] sm:$0xff] }
 0x138   : > { %v1446_v6 = vadd.f32 %v1379_v47, %v1032_v16  ;;  %4746 = vst [vmem:[#allocation37_spill] sm:$0xff] %v4399_v3  ;;  %v3554_v24 = vld [vmem:[%s3607_s23 + $0xa8] sm:$0xf]  ;;  %v1210_v27 = vrot.slane %v1208_v61, 4 }
 0x139   : > { %4744 = vst [vmem:[#allocation35_spill] sm:$0xff] %v4388_v44  ;;  %v1034_v43 = vpop.f32.mrf.mxu1  ;;  %v3081_v37 = vrot.slane %v3554_v24, 9 }
 0x13a   : > { %v1783_v2 = vpop.f32.mrf.mxu0  ;;  %v1035_v16 = vadd.f32 %v1034_v43, %v4138_v28  ;;  %v1212_v33 = vsel %vm3995_vm5, %v1210_v27, %v1211_v46  ;;  %v4413_v43 = vld [vmem:[%s3607_s23 + $0xc0] sm:$0xf] }
 0x13b   : > { %1073 = vmatmul.bf16.gmra.mxu1 %v4365_v56  ;;  %v1265_v20 = vunpack.c.l.b16 %v1212_v33  ;;  %4748 = vst [vmem:[#allocation39_spill] sm:$0xff] %v4413_v43  ;;  %v1661_v27 = vshrl.u32 %v4413_v43, 16 }
 0x13c   : > { %v1570_v42 = vpop.f32.mrf.mxu3  ;;  %1421 = vmatmul.bf16.gmra.mxu2 %v4390_v45 }
 0x13d   : > { %v1637_v55 = vadd.f32 %v1570_v42, %v1446_v6  ;;  %v1209_v6 = vsel %vm3995_vm5, %v3081_v37, %v1208_v61 }
 0x13e   : > { %v1264_v45 = vunpack.c.l.b16 %v1209_v6  ;;  %v4752_v6 = vld [vmem:[#allocation8_spill] sm:$0xff] }
 0x13f   : > { %v1382_v47 = vpop.f32.mrf.mxu2  ;;  %v4404_v44 = vadd.f32 %v1783_v2, %v1637_v55  ;;  %v1215_v33 = vrot.slane %v4752_v6, 5  ;;  %v4754_v6 = vld [vmem:[#allocation9_spill] sm:$0xff] }
 0x140   : > { %v1447_v13 = vadd.f32 %v1382_v47, %v1035_v16  ;;  %v4417_v16 = vld [vmem:[%s3607_s23 + $0xc4] sm:$0xf]  ;;  %v4421_v37 = vpack.c.b16 %v1265_v20, %v1264_v45  ;;  %v1663_v45 = vrot.slane %v1661_v27, 4  ;;  %v4431_v20 = vld [vmem:[%s3607_s23 + $0xb4] sm:$0xff] }
 0x141   : > { %4747 = vst [vmem:[#allocation38_spill] sm:$0xff] %v4404_v44  ;;  %1612 = vmatmul.bf16.gmra.mxu3 %v4399_v3  ;;  %v1036_v38 = vpop.f32.mrf.mxu1 }
 0x142   : > { %v1786_v42 = vpop.f32.mrf.mxu0  ;;  %v1037_v2 = vadd.f32 %v1036_v38, %v4159_v10  ;;  %4749 = vst [vmem:[#allocation40_spill] sm:$0xff] %v4417_v16  ;;  %v1674_v10 = vshrl.u32 %v4417_v16, 16 }
 0x143   : > { %4751 = vst [vmem:[#allocation42_spill] sm:$0xff] %v4421_v37 }
 0x144   : > { %v1573_v24 = vpop.f32.mrf.mxu3  ;;  %v1676_v56 = vrot.slane %v1674_v10, 4 }
 0x145   : > { %1825 = vmatmul.bf16.gmra.mxu0 %v3913_v1  ;;  %v1638_v28 = vadd.f32 %v1573_v24, %v1447_v13  ;;  %v1664_v13 = vshll.u32 %v4413_v43, 16  ;;  %v1670_v24 = vshll.u32 %v4417_v16, 16 }
 0x147   : > { %v1384_v55 = vpop.f32.mrf.mxu2  ;;  %v4419_v47 = vadd.f32 %v1786_v42, %v1638_v28  ;;  %v4753_v28 = vld [vmem:[#allocation7_spill] sm:$0xff]  ;;  %v1666_v1 = vrot.slane %v1664_v13, 5  ;;  %v1672_v41 = vrot.slane %v1670_v24, 5  ;;  %v1680_v13 = vshll.u32 %v4437_v25, 16 }
 0x148   : > { %v1448_v61 = vadd.f32 %v1384_v55, %v1037_v2  ;;  %v3082_v2 = vrot.slane %v4753_v28, 9  ;;  %v1217_v55 = vrot.slane %v1215_v33, 4 }
 0x149   : > { %4750 = vst [vmem:[#allocation41_spill] sm:$0xff] %v4419_v47  ;;  %v1039_v46 = vpop.f32.mrf.mxu1  ;;  %v1218_v47 = vrot.slane %v4754_v6, 5 }
 0x14a   : > { %v1788_v44 = vpop.f32.mrf.mxu0  ;;  %v1040_v43 = vadd.f32 %v1039_v46, %v4173_v19  ;;  %v1216_v27 = vsel %vm3995_vm5, %v3082_v2, %v1215_v33  ;;  %v1667_v19 = vor.u32 %v1666_v1, %v1663_v45  ;;  %v1677_v46 = vor.u32 %v1676_v56, %v1672_v41 }
 0x14b   : > { %1078 = vmatmul.bf16.gmra.mxu1 %v4399_v3  ;;  %v1266_v10 = vunpack.c.l.b16 %v1216_v27  ;;  %v1682_v33 = vrot.slane %v1680_v13, 5  ;;  %v4460_v27 = vld [vmem:[%s3607_s23 + $0xc0] sm:$0xff] }
 0x14c   : > { %v1575_v38 = vpop.f32.mrf.mxu3  ;;  %1426 = vmatmul.bf16.gmra.mxu2 %v4421_v37 }
 0x14d   : > { %v1639_v42 = vadd.f32 %v1575_v38, %v1448_v61  ;;  %v1219_v38 = vsel %vm3995_vm5, %v1217_v55, %v1218_v47 }
 0x14e   : > { %v1267_v6 = vunpack.c.l.b16 %v1219_v38 }
 0x14f   : > { %v1387_v16 = vpop.f32.mrf.mxu2  ;;  %v4439_v3 = vadd.f32 %v1788_v44, %v1639_v42  ;;  %v1678_v42 = vrot.slane %v1677_v46, 4 }
 0x150   : > { %v1449_v37 = vadd.f32 %v1387_v16, %v1040_v43  ;;  %v1668_v16 = vrot.slane %v1667_v19, 4  ;;  %v4451_v1 = vpack.c.b16 %v1267_v6, %v1266_v10 }
 0x151   : > { %1617 = vmatmul.bf16.gmra.mxu3 %v4431_v20  ;;  %v1041_v61 = vpop.f32.mrf.mxu1 }
 0x152   : > { %v1791_v28 = vpop.f32.mrf.mxu0  ;;  %v1042_v43 = vadd.f32 %v1041_v61, %v4192_v32  ;;  %v1673_v55 = vsel %vm3622_vm2, %v1668_v16, %v1672_v41 }
 0x153   : > { %v1700_v38 = vunpack.c.l.b16 %v1673_v55 }
 0x154   : > { %v1578_v24 = vpop.f32.mrf.mxu3 }
 0x155   : > { %1830 = vmatmul.bf16.gmra.mxu0 %v4005_v48  ;;  %v1640_v44 = vadd.f32 %v1578_v24, %v1449_v37  ;;  %v1683_v37 = vsel %vm3622_vm2, %v1678_v42, %v1682_v33 }
 0x157   : > { %v1389_v2 = vpop.f32.mrf.mxu2  ;;  %v4449_v0 = vadd.f32 %v1791_v28, %v1640_v44  ;;  %v1701_v28 = vunpack.c.l.b16 %v1683_v37 }
 0x158   : > { %v1450_v47 = vadd.f32 %v1389_v2, %v1042_v43 }
 0x159   : > { %v1044_v56 = vpop.f32.mrf.mxu1  ;;  %v4466_v41 = vpack.c.b16 %v1701_v28, %v1700_v38 }
 0x15a   : > { %v1793_v45 = vpop.f32.mrf.mxu0  ;;  %v1045_v19 = vadd.f32 %v1044_v56, %v4214_v18 }
 0x15b   : > { %1083 = vmatmul.bf16.gmra.mxu1 %v4431_v20 }
 0x15c   : > { %v1580_v32 = vpop.f32.mrf.mxu3  ;;  %1431 = vmatmul.bf16.gmra.mxu2 %v4451_v1 }
 0x15d   : > { %v1641_v61 = vadd.f32 %v1580_v32, %v1450_v47 }
 0x15f   : > { %v1392_v46 = vpop.f32.mrf.mxu2  ;;  %v4463_v13 = vadd.f32 %v1793_v45, %v1641_v61 }
 0x160   : > { %v1451_v24 = vadd.f32 %v1392_v46, %v1045_v19 }
 0x161   : > { %1622 = vmatmul.bf16.gmra.mxu3 %v4460_v27  ;;  %v1046_v10 = vpop.f32.mrf.mxu1 }
 0x162   : > { %v1796_v6 = vpop.f32.mrf.mxu0  ;;  %v1047_v16 = vadd.f32 %v1046_v10, %v4232_v5 }
 0x164   : > { %v1583_v44 = vpop.f32.mrf.mxu3 }
 0x165   : > { %1835 = vmatmul.bf16.gmra.mxu0 %v4466_v41  ;;  %v1642_v43 = vadd.f32 %v1583_v44, %v1451_v24 }
 0x167   : > { %v1394_v42 = vpop.f32.mrf.mxu2  ;;  %v4470_v33 = vadd.f32 %v1796_v6, %v1642_v43 }
 0x168   : > { %v1452_v18 = vadd.f32 %v1394_v42, %v1047_v16 }
 0x169   : > { %v1049_v2 = vpop.f32.mrf.mxu1 }
 0x16a   : > { %v1798_v47 = vpop.f32.mrf.mxu0  ;;  %v1050_v55 = vadd.f32 %v1049_v2, %v4111_v34 }
 0x16b   : > { %1957 = vmatmul.bf16.vlgmr.msra.gmra.mxu1 %v4023_v63 }
 0x16c   : > { %v1585_v56 = vpop.f32.mrf.mxu3  ;;  %2148 = vmatmul.bf16.vlgmr.msra.gmra.mxu2 %v4043_v7 }
 0x16d   : > { %v1643_v45 = vadd.f32 %v1585_v56, %v1452_v18 }
 0x16f   : > { %v1397_v37 = vpop.f32.mrf.mxu2  ;;  %v4475_v32 = vadd.f32 %v1798_v47, %v1643_v45 }
 0x170   : > { %v1453_v61 = vadd.f32 %v1397_v37, %v1050_v55 }
 0x171   : > { %2361 = vmatmul.bf16.vlgmr.msra.gmra.mxu3 %v3941_v40  ;;  %v1051_v5 = vpop.f32.mrf.mxu1 }
 0x172   : > { %v1801_v38 = vpop.f32.mrf.mxu0  ;;  %v1052_v63 = vadd.f32 %v1051_v5, %v4134_v57 }
 0x174   : > { %v1588_v28 = vpop.f32.mrf.mxu3 }
 0x175   : > { %2558 = vmatmul.bf16.vlgmr.msra.gmra.mxu0 %v4053_v62  ;;  %v1644_v19 = vadd.f32 %v1588_v28, %v1453_v61 }
 0x177   : > { %v1399_v46 = vpop.f32.mrf.mxu2  ;;  %v4480_v24 = vadd.f32 %v1801_v38, %v1644_v19 }
 0x178   : > { %v1454_v7 = vadd.f32 %v1399_v46, %v1052_v63 }
 0x179   : > { %v1054_v10 = vpop.f32.mrf.mxu1 }
 0x17a   : > { %v1803_v34 = vpop.f32.mrf.mxu0  ;;  %v1055_v44 = vadd.f32 %v1054_v10, %v4155_v52 }
 0x17b   : > { %1962 = vmatmul.bf16.gmra.mxu1 %v4053_v62 }
 0x17c   : > { %v1590_v6 = vpop.f32.mrf.mxu3  ;;  %2153 = vmatmul.bf16.gmra.mxu2 %v4059_v31 }
 0x17d   : > { %v1645_v40 = vadd.f32 %v1590_v6, %v1454_v7 }
 0x17f   : > { %v1402_v43 = vpop.f32.mrf.mxu2  ;;  %v4485_v16 = vadd.f32 %v1803_v34, %v1645_v40  ;;  %v4755_v40 = vld [vmem:[#allocation24_spill] sm:$0xff] }
 0x180   : > { %v1455_v42 = vadd.f32 %v1402_v43, %v1055_v44 }
 0x181   : > { %2366 = vmatmul.bf16.gmra.mxu3 %v4018_v50  ;;  %v1056_v57 = vpop.f32.mrf.mxu1 }
 0x182   : > { %v1806_v18 = vpop.f32.mrf.mxu0  ;;  %v1057_v62 = vadd.f32 %v1056_v57, %v4169_v8 }
 0x184   : > { %v1593_v2 = vpop.f32.mrf.mxu3 }
 0x185   : > { %2563 = vmatmul.bf16.gmra.mxu0 %v4081_v51  ;;  %v1646_v47 = vadd.f32 %v1593_v2, %v1455_v42 }
 0x187   : > { %v1404_v56 = vpop.f32.mrf.mxu2  ;;  %v4490_v45 = vadd.f32 %v1806_v18, %v1646_v47  ;;  %v4756_v18 = vld [vmem:[#allocation3_spill] sm:$0xff] }
 0x188   : > { %v1456_v31 = vadd.f32 %v1404_v56, %v1057_v62  ;;  %v4757_v62 = vld [vmem:[#allocation14_spill] sm:$0xff] }
 0x189   : > { %v1059_v55 = vpop.f32.mrf.mxu1 }
 0x18a   : > { %v1808_v52 = vpop.f32.mrf.mxu0  ;;  %v1060_v61 = vadd.f32 %v1059_v55, %v4185_v35 }
 0x18b   : > { %1967 = vmatmul.bf16.gmra.mxu1 %v4081_v51 }
 0x18c   : > { %v1595_v37 = vpop.f32.mrf.mxu3  ;;  %2158 = vmatmul.bf16.gmra.mxu2 %v4087_v9 }
 0x18d   : > { %v1647_v50 = vadd.f32 %v1595_v37, %v1456_v31  ;;  %v4758_v31 = vld [vmem:[#allocation26_spill] sm:$0xff] }
 0x18f   : > { %v1407_v5 = vpop.f32.mrf.mxu2  ;;  %v4495_v38 = vadd.f32 %v1808_v52, %v1647_v50 }
 0x190   : > { %v1457_v28 = vadd.f32 %v1407_v5, %v1060_v61  ;;  %v4759_v5 = vld [vmem:[#allocation15_spill] sm:$0xff] }
 0x191   : > { %2371 = vmatmul.bf16.gmra.mxu3 %v3640_v59  ;;  %v1061_v8 = vpop.f32.mrf.mxu1 }
 0x192   : > { %v1811_v19 = vpop.f32.mrf.mxu0  ;;  %v1062_v51 = vadd.f32 %v1061_v8, %v4208_v53  ;;  %v4760_v8 = vld [vmem:[#allocation12_spill] sm:$0xff] }
 0x194   : > { %v1598_v63 = vpop.f32.mrf.mxu3 }
 0x195   : > { %2568 = vmatmul.bf16.gmra.mxu0 %v4099_v49  ;;  %v1648_v46 = vadd.f32 %v1598_v63, %v1457_v28 }
 0x197   : > { %v1409_v7 = vpop.f32.mrf.mxu2  ;;  %v4500_v10 = vadd.f32 %v1811_v19, %v1648_v46 }
 0x198   : > { %v1458_v9 = vadd.f32 %v1409_v7, %v1062_v51  ;;  %v4761_v7 = vld [vmem:[#allocation5_spill] sm:$0xff] }
 0x199   : > { %v1064_v34 = vpop.f32.mrf.mxu1 }
 0x19a   : > { %v1813_v35 = vpop.f32.mrf.mxu0  ;;  %v1065_v44 = vadd.f32 %v1064_v34, %v4755_v40  ;;  %v4763_v40 = vld [vmem:[#allocation13_spill] sm:$0xff] }
 0x19b   : > { %1972 = vmatmul.bf16.gmra.mxu1 %v4099_v49 }
 0x19c   : > { %v1600_v6 = vpop.f32.mrf.mxu3  ;;  %2163 = vmatmul.bf16.gmra.mxu2 %v4107_v4 }
 0x19d   : > { %v1649_v59 = vadd.f32 %v1600_v6, %v1458_v9  ;;  %v4762_v6 = vld [vmem:[#allocation18_spill] sm:$0xff] }
 0x19f   : > { %v1412_v43 = vpop.f32.mrf.mxu2  ;;  %v4505_v42 = vadd.f32 %v1813_v35, %v1649_v59 }
 0x1a0   : > { %v1459_v57 = vadd.f32 %v1412_v43, %v1065_v44 }
 0x1a1   : > { %2376 = vmatmul.bf16.gmra.mxu3 %v4756_v18  ;;  %v1066_v53 = vpop.f32.mrf.mxu1 }
 0x1a2   : > { %v1816_v2 = vpop.f32.mrf.mxu0  ;;  %v1067_v49 = vadd.f32 %v1066_v53, %v4758_v31  ;;  %v4765_v31 = vld [vmem:[#allocation16_spill] sm:$0xff] }
 0x1a4   : > { %v1603_v47 = vpop.f32.mrf.mxu3 }
 0x1a5   : > { %2573 = vmatmul.bf16.gmra.mxu0 %v4757_v62  ;;  %v1650_v56 = vadd.f32 %v1603_v47, %v1459_v57 }
 0x1a7   : > { %v1414_v55 = vpop.f32.mrf.mxu2  ;;  %v4510_v52 = vadd.f32 %v1816_v2, %v1650_v56 }
 0x1a8   : > { %v1460_v4 = vadd.f32 %v1414_v55, %v1067_v49 }
 0x1a9   : > { %v1069_v37 = vpop.f32.mrf.mxu1 }
 0x1aa   : > { %v1818_v50 = vpop.f32.mrf.mxu0  ;;  %v1070_v19 = vadd.f32 %v1069_v37, %v4760_v8  ;;  %v4767_v8 = vld [vmem:[#allocation21_spill] sm:$0xff] }
 0x1ab   : > { %1977 = vmatmul.bf16.gmra.mxu1 %v4757_v62  ;;  %v4764_v62 = vld [vmem:[#allocation19_spill] sm:$0xff] }
 0x1ac   : > { %v1605_v61 = vpop.f32.mrf.mxu3  ;;  %2168 = vmatmul.bf16.gmra.mxu2 %v4759_v5 }
 0x1ad   : > { %v1651_v28 = vadd.f32 %v1605_v61, %v1460_v4 }
 0x1af   : > { %v1417_v63 = vpop.f32.mrf.mxu2  ;;  %v4515_v46 = vadd.f32 %v1818_v50, %v1651_v28  ;;  %v4766_v50 = vld [vmem:[#allocation10_spill] sm:$0xff] }
 0x1b0   : > { %v1461_v51 = vadd.f32 %v1417_v63, %v1070_v19  ;;  %v4768_v63 = vld [vmem:[#allocation17_spill] sm:$0xff] }
 0x1b1   : > { %2381 = vmatmul.bf16.gmra.mxu3 %v4761_v7  ;;  %v1071_v9 = vpop.f32.mrf.mxu1 }
 0x1b2   : > { %v1821_v34 = vpop.f32.mrf.mxu0  ;;  %v1072_v44 = vadd.f32 %v1071_v9, %v4763_v40  ;;  %v4769_v40 = vld [vmem:[#allocation23_spill] sm:$0xff] }
 0x1b4   : > { %v1608_v35 = vpop.f32.mrf.mxu3 }
 0x1b5   : > { %2578 = vmatmul.bf16.gmra.mxu0 %v4762_v6  ;;  %v1652_v59 = vadd.f32 %v1608_v35, %v1461_v51 }
 0x1b7   : > { %v1419_v43 = vpop.f32.mrf.mxu2  ;;  %v4520_v57 = vadd.f32 %v1821_v34, %v1652_v59 }
 0x1b8   : > { %v1462_v18 = vadd.f32 %v1419_v43, %v1072_v44  ;;  %v4770_v43 = vld [vmem:[#allocation20_spill] sm:$0xff] }
 0x1b9   : > { %v1074_v53 = vpop.f32.mrf.mxu1 }
 0x1ba   : > { %v1823_v2 = vpop.f32.mrf.mxu0  ;;  %v1075_v49 = vadd.f32 %v1074_v53, %v4765_v31 }
 0x1bb   : > { %1982 = vmatmul.bf16.gmra.mxu1 %v4762_v6 }
 0x1bc   : > { %v1610_v47 = vpop.f32.mrf.mxu3  ;;  %2173 = vmatmul.bf16.gmra.mxu2 %v4764_v62  ;;  %v4771_v62 = vld [vmem:[#allocation2_spill] sm:$0xff] }
 0x1bd   : > { %v1653_v56 = vadd.f32 %v1610_v47, %v1462_v18 }
 0x1bf   : > { %v1422_v55 = vpop.f32.mrf.mxu2  ;;  %v4525_v4 = vadd.f32 %v1823_v2, %v1653_v56 }
 0x1c0   : > { %v1463_v37 = vadd.f32 %v1422_v55, %v1075_v49  ;;  %v4772_v55 = vld [vmem:[#allocation27_spill] sm:$0xff] }
 0x1c1   : > { %2386 = vmatmul.bf16.gmra.mxu3 %v4766_v50  ;;  %v1076_v61 = vpop.f32.mrf.mxu1  ;;  %v4773_v50 = vld [vmem:[#allocation22_spill] sm:$0xff] }
 0x1c2   : > { %v1826_v5 = vpop.f32.mrf.mxu0  ;;  %v1077_v51 = vadd.f32 %v1076_v61, %v4768_v63 }
 0x1c4   : > { %v1613_v28 = vpop.f32.mrf.mxu3 }
 0x1c5   : > { %2583 = vmatmul.bf16.gmra.mxu0 %v4767_v8  ;;  %v1654_v19 = vadd.f32 %v1613_v28, %v1463_v37 }
 0x1c7   : > { %v1424_v7 = vpop.f32.mrf.mxu2  ;;  %v4530_v9 = vadd.f32 %v1826_v5, %v1654_v19 }
 0x1c8   : > { %v1464_v34 = vadd.f32 %v1424_v7, %v1077_v51 }
 0x1c9   : > { %v1079_v35 = vpop.f32.mrf.mxu1 }
 0x1ca   : > { %v1828_v6 = vpop.f32.mrf.mxu0  ;;  %v1080_v18 = vadd.f32 %v1079_v35, %v4770_v43 }
 0x1cb   : > { %1987 = vmatmul.bf16.gmra.mxu1 %v4767_v8 }
 0x1cc   : > { %v1615_v59 = vpop.f32.mrf.mxu3  ;;  %2178 = vmatmul.bf16.gmra.mxu2 %v4769_v40 }
 0x1cd   : > { %v1655_v44 = vadd.f32 %v1615_v59, %v1464_v34  ;;  %v4774_v34 = vld [vmem:[#allocation25_spill] sm:$0xff] }
 0x1cf   : > { %v1427_v53 = vpop.f32.mrf.mxu2  ;;  %v4535_v2 = vadd.f32 %v1828_v6, %v1655_v44 }
 0x1d0   : > { %v1465_v47 = vadd.f32 %v1427_v53, %v1080_v18 }
 0x1d1   : > { %2391 = vmatmul.bf16.gmra.mxu3 %v4771_v62  ;;  %v1081_v56 = vpop.f32.mrf.mxu1 }
 0x1d2   : > { %v1831_v31 = vpop.f32.mrf.mxu0  ;;  %v1082_v61 = vadd.f32 %v1081_v56, %v4773_v50 }
 0x1d4   : > { %v1618_v49 = vpop.f32.mrf.mxu3 }
 0x1d5   : > { %2588 = vmatmul.bf16.gmra.mxu0 %v4772_v55  ;;  %v1656_v37 = vadd.f32 %v1618_v49, %v1465_v47  ;;  %v4775_v47 = vld [vmem:[#allocation28_spill] sm:$0xff] }
 0x1d7   : > { %v1429_v5 = vpop.f32.mrf.mxu2  ;;  %v4540_v28 = vadd.f32 %v1831_v31, %v1656_v37 }
 0x1d8   : > { %v1466_v8 = vadd.f32 %v1429_v5, %v1082_v61 }
 0x1d9   : > { %v1084_v19 = vpop.f32.mrf.mxu1 }
 0x1da   : > { %v1833_v63 = vpop.f32.mrf.mxu0  ;;  %v1085_v35 = vadd.f32 %v1084_v19, %v4774_v34 }
 0x1db   : > { %1992 = vmatmul.bf16.gmra.mxu1 %v4772_v55 }
 0x1dc   : > { %v1620_v51 = vpop.f32.mrf.mxu3  ;;  %2183 = vmatmul.bf16.gmra.mxu2 %v4256_v14 }
 0x1dd   : > { %v1657_v7 = vadd.f32 %v1620_v51, %v1466_v8 }
 0x1df   : > { %v1432_v6 = vpop.f32.mrf.mxu2  ;;  %v4545_v59 = vadd.f32 %v1833_v63, %v1657_v7  ;;  %v4776_v7 = vld [vmem:[#allocation29_spill] sm:$0xff] }
 0x1e0   : > { %v1467_v40 = vadd.f32 %v1432_v6, %v1085_v35 }
 0x1e1   : > { %2396 = vmatmul.bf16.gmra.mxu3 %v3774_v12  ;;  %v1086_v44 = vpop.f32.mrf.mxu1 }
 0x1e2   : > { %v1836_v43 = vpop.f32.mrf.mxu0  ;;  %v1087_v62 = vadd.f32 %v1086_v44, %v4775_v47 }
 0x1e4   : > { %v1623_v18 = vpop.f32.mrf.mxu3 }
 0x1e5   : > { %2593 = vmatmul.bf16.gmra.mxu0 %v4278_v60  ;;  %v1658_v53 = vadd.f32 %v1623_v18, %v1467_v40 }
 0x1e7   : > { %v1434_v56 = vpop.f32.mrf.mxu2  ;;  %v4550_v31 = vadd.f32 %v1836_v43, %v1658_v53 }
 0x1e8   : > { %v1468_v14 = vadd.f32 %v1434_v56, %v1087_v62 }
 0x1e9   : > { %v1958_v49 = vpop.f32.mrf.mxu1 }
 0x1ea   : > { %v1838_v55 = vpop.f32.mrf.mxu0  ;;  %v2038_v8 = vadd.f32 %v1958_v49, %v4276_v15 }
 0x1eb   : > { %1997 = vmatmul.bf16.gmra.mxu1 %v4278_v60 }
 0x1ec   : > { %v1625_v37 = vpop.f32.mrf.mxu3  ;;  %2188 = vmatmul.bf16.gmra.mxu2 %v4288_v29 }
 0x1ed   : > { %v1659_v12 = vadd.f32 %v1625_v37, %v1468_v14 }
 0x1ef   : > { %v2149_v50 = vpop.f32.mrf.mxu2  ;;  %v4554_v61 = vadd.f32 %v1838_v55, %v1659_v12 }
 0x1f0   : > { %v2229_v63 = vadd.f32 %v2149_v50, %v2038_v8 }
 0x1f1   : > { %2401 = vmatmul.bf16.gmra.mxu3 %v3883_v26  ;;  %v1960_v5 = vpop.f32.mrf.mxu1 }
 0x1f2   : > { %v2559_v19 = vpop.f32.mrf.mxu0  ;;  %v2039_v60 = vadd.f32 %v1960_v5, %v4776_v7 }
 0x1f4   : > { %v2362_v51 = vpop.f32.mrf.mxu3 }
 0x1f5   : > { %2598 = vmatmul.bf16.gmra.mxu0 %v4303_v11  ;;  %v2442_v35 = vadd.f32 %v2362_v51, %v2229_v63 }
 0x1f7   : > { %v2151_v34 = vpop.f32.mrf.mxu2  ;;  %v2639_v44 = vadd.f32 %v2559_v19, %v2442_v35 }
 0x1f8   : > { %v2230_v29 = vadd.f32 %v2151_v34, %v2039_v60 }
 0x1f9   : > { %v1963_v6 = vpop.f32.mrf.mxu1  ;;  %v2772_v47 = vmul.f32 %v2639_v44, %v2639_v44 }
 0x1fa   : > { %v2561_v40 = vpop.f32.mrf.mxu0  ;;  %v2040_v18 = vadd.f32 %v1963_v6, %v4301_v54 }
 0x1fb   : > { %2002 = vmatmul.bf16.gmra.mxu1 %v4303_v11 }
 0x1fc   : > { %v2364_v26 = vpop.f32.mrf.mxu3  ;;  %2193 = vmatmul.bf16.gmra.mxu2 %v4310_v22 }
 0x1fd   : > { %v2443_v15 = vadd.f32 %v2364_v26, %v2230_v29 }
 0x1ff   : > { %v2640_v43 = vadd.f32 %v2561_v40, %v2443_v15  ;;  %v2154_v53 = vpop.f32.mrf.mxu2 }
 0x200   : > { %v2231_v14 = vadd.f32 %v2154_v53, %v2040_v18 }
 0x201   : > { %v3413_v62 = vpack.c.bf16 %v2640_v43, %v2639_v44  ;;  %v2735_v56 = vadd.f32 %v2640_v43, %v2639_v44  ;;  %v2773_v11 = vmul.f32 %v2640_v43, %v2640_v43  ;;  %2406 = vmatmul.bf16.gmra.mxu3 %v3987_v58  ;;  %v1965_v22 = vpop.f32.mrf.mxu1 }
 0x202   : > { %v2564_v49 = vpop.f32.mrf.mxu0  ;;  %v2041_v50 = vadd.f32 %v1965_v22, %v4314_v21 }
 0x203   : > { %3414 = vst [vmem:[%s4567_s20] sm:$0xff] %v3413_v62   ;;  %v2804_v55 = vadd.f32 %v2773_v11, %v2772_v47  ;;  %v4778_v62 = vld [vmem:[#allocation30_spill] sm:$0xff] }
 0x204   : > { %v2367_v37 = vpop.f32.mrf.mxu3 }
 0x205   : > { %2603 = vmatmul.bf16.gmra.mxu0 %v4334_v23  ;;  %v2444_v54 = vadd.f32 %v2367_v37, %v2231_v14 }
 0x207   : > { %v2641_v12 = vadd.f32 %v2564_v49, %v2444_v54  ;;  %v2156_v5 = vpop.f32.mrf.mxu2  ;;  %v4779_v54 = vld [vmem:[#allocation33_spill] sm:$0xff] }
 0x208   : > { %v2232_v63 = vadd.f32 %v2156_v5, %v2041_v50  ;;  %v4780_v5 = vld [vmem:[#allocation31_spill] sm:$0xff] }
 0x209   : > { %v2736_v8 = vadd.f32 %v2735_v56, %v2641_v12  ;;  %v2774_v19 = vmul.f32 %v2641_v12, %v2641_v12  ;;  %v1968_v51 = vpop.f32.mrf.mxu1 }
 0x20a   : > { %v2566_v7 = vpop.f32.mrf.mxu0  ;;  %v2042_v29 = vadd.f32 %v1968_v51, %v4332_v17 }
 0x20b   : > { %v2805_v58 = vadd.f32 %v2804_v55, %v2774_v19  ;;  %2007 = vmatmul.bf16.gmra.mxu1 %v4334_v23  ;;  %v4777_v23 = vld [vmem:[#allocation32_spill] sm:$0xff] }
 0x20c   : > { %v2369_v60 = vpop.f32.mrf.mxu3  ;;  %2198 = vmatmul.bf16.gmra.mxu2 %v4344_v39 }
 0x20d   : > { %v2445_v34 = vadd.f32 %v2369_v60, %v2232_v63 }
 0x20f   : > { %v2642_v35 = vadd.f32 %v2566_v7, %v2445_v34  ;;  %v2159_v6 = vpop.f32.mrf.mxu2 }
 0x210   : > { %v2233_v26 = vadd.f32 %v2159_v6, %v2042_v29 }
 0x211   : > { %v3418_v40 = vpack.c.bf16 %v2642_v35, %v2641_v12  ;;  %v2737_v21 = vadd.f32 %v2736_v8, %v2642_v35  ;;  %v2775_v44 = vmul.f32 %v2642_v35, %v2642_v35  ;;  %2411 = vmatmul.bf16.gmra.mxu3 %v3683_v36  ;;  %v1970_v15 = vpop.f32.mrf.mxu1 }
 0x212   : > { %v2569_v43 = vpop.f32.mrf.mxu0  ;;  %v2043_v56 = vadd.f32 %v1970_v15, %v4778_v62 }
 0x213   : > { %3490 = vst [vmem:[%s4567_s20 + $0x8] sm:$0xff] %v3418_v40   ;;  %v2806_v18 = vadd.f32 %v2805_v58, %v2775_v44  ;;  %v4781_v58 = vld [vmem:[#allocation4_spill] sm:$0xff] }
 0x214   : > { %v2372_v53 = vpop.f32.mrf.mxu3  ;;  %v4782_v40 = vld [vmem:[#allocation36_spill] sm:$0xff] }
 0x215   : > { %2608 = vmatmul.bf16.gmra.mxu0 %v4777_v23  ;;  %v2446_v47 = vadd.f32 %v2372_v53, %v2233_v26  ;;  %v4783_v26 = vld [vmem:[#allocation34_spill] sm:$0xff] }
 0x217   : > { %v2643_v39 = vadd.f32 %v2569_v43, %v2446_v47  ;;  %v2161_v11 = vpop.f32.mrf.mxu2 }
 0x218   : > { %v2234_v22 = vadd.f32 %v2161_v11, %v2043_v56  ;;  %v4784_v11 = vld [vmem:[#allocation37_spill] sm:$0xff] }
 0x219   : > { %v2738_v17 = vadd.f32 %v2737_v21, %v2643_v39  ;;  %v2776_v14 = vmul.f32 %v2643_v39, %v2643_v39  ;;  %v1973_v49 = vpop.f32.mrf.mxu1 }
 0x21a   : > { %v2571_v55 = vpop.f32.mrf.mxu0  ;;  %v2044_v8 = vadd.f32 %v1973_v49, %v4780_v5 }
 0x21b   : > { %v2807_v36 = vadd.f32 %v2806_v18, %v2776_v14  ;;  %2012 = vmatmul.bf16.gmra.mxu1 %v4777_v23 }
 0x21c   : > { %v2374_v37 = vpop.f32.mrf.mxu3  ;;  %2203 = vmatmul.bf16.gmra.mxu2 %v4779_v54 }
 0x21d   : > { %v2447_v12 = vadd.f32 %v2374_v37, %v2234_v22  ;;  %v4785_v22 = vld [vmem:[#allocation35_spill] sm:$0xff] }
 0x21f   : > { %v2644_v50 = vadd.f32 %v2571_v55, %v2447_v12  ;;  %v2164_v19 = vpop.f32.mrf.mxu2  ;;  %v4786_v12 = vld [vmem:[#allocation6_spill] sm:$0xff] }
 0x220   : > { %v2235_v60 = vadd.f32 %v2164_v19, %v2044_v8 }
 0x221   : > { %v3423_v63 = vpack.c.bf16 %v2644_v50, %v2643_v39  ;;  %v2739_v51 = vadd.f32 %v2738_v17, %v2644_v50  ;;  %v2777_v7 = vmul.f32 %v2644_v50, %v2644_v50  ;;  %2416 = vmatmul.bf16.gmra.mxu3 %v4781_v58  ;;  %v1975_v34 = vpop.f32.mrf.mxu1 }
 0x222   : > { %v2574_v35 = vpop.f32.mrf.mxu0  ;;  %v2045_v15 = vadd.f32 %v1975_v34, %v4783_v26 }
 0x223   : > { %3491 = vst [vmem:[%s4567_s20 + $0x10] sm:$0xff] %v3423_v63   ;;  %v2808_v29 = vadd.f32 %v2807_v36, %v2777_v7 }
 0x224   : > { %v2377_v6 = vpop.f32.mrf.mxu3 }
 0x225   : > { %2613 = vmatmul.bf16.gmra.mxu0 %v4782_v40  ;;  %v2448_v21 = vadd.f32 %v2377_v6, %v2235_v60  ;;  %v4788_v60 = vld [vmem:[#allocation38_spill] sm:$0xff] }
 0x227   : > { %v2645_v44 = vadd.f32 %v2574_v35, %v2448_v21  ;;  %v2166_v43 = vpop.f32.mrf.mxu2 }
 0x228   : > { %v2236_v23 = vadd.f32 %v2166_v43, %v2045_v15 }
 0x229   : > { %v2740_v18 = vadd.f32 %v2739_v51, %v2645_v44  ;;  %v2778_v53 = vmul.f32 %v2645_v44, %v2645_v44  ;;  %v1978_v47 = vpop.f32.mrf.mxu1  ;;  %v4787_v51 = vld [vmem:[#allocation42_spill] sm:$0xff] }
 0x22a   : > { %v2576_v39 = vpop.f32.mrf.mxu0  ;;  %v2046_v49 = vadd.f32 %v1978_v47, %v4785_v22 }
 0x22b   : > { %v2809_v62 = vadd.f32 %v2808_v29, %v2778_v53  ;;  %2017 = vmatmul.bf16.gmra.mxu1 %v4782_v40  ;;  %v4789_v53 = vld [vmem:[#allocation41_spill] sm:$0xff] }
 0x22c   : > { %v2379_v56 = vpop.f32.mrf.mxu3  ;;  %2208 = vmatmul.bf16.gmra.mxu2 %v4784_v11 }
 0x22d   : > { %v2449_v17 = vadd.f32 %v2379_v56, %v2236_v23 }
 0x22f   : > { %v2646_v14 = vadd.f32 %v2576_v39, %v2449_v17  ;;  %v2169_v55 = vpop.f32.mrf.mxu2  ;;  %v4790_v39 = vld [vmem:[#allocation40_spill] sm:$0xff] }
 0x230   : > { %v2237_v50 = vadd.f32 %v2169_v55, %v2046_v49  ;;  %v4600_v49 = vld [vmem:[%s3607_s23 + $0xcc] sm:$0xf]  ;;  %v4603_v55 = vld [vmem:[%s3607_s23 + $0xd0] sm:$0xf] }
 0x231   : > { %v3428_v36 = vpack.c.bf16 %v2646_v14, %v2645_v44  ;;  %v2741_v37 = vadd.f32 %v2740_v18, %v2646_v14  ;;  %v2779_v54 = vmul.f32 %v2646_v14, %v2646_v14  ;;  %2421 = vmatmul.bf16.gmra.mxu3 %v4786_v12  ;;  %v1980_v5 = vpop.f32.mrf.mxu1 }
 0x232   : > { %v2579_v8 = vpop.f32.mrf.mxu0  ;;  %v2047_v34 = vadd.f32 %v1980_v5, %v4788_v60 }
 0x233   : > { %3492 = vst [vmem:[%s4567_s20 + $0x18] sm:$0xff] %v3428_v36   ;;  %v2810_v19 = vadd.f32 %v2809_v62, %v2779_v54  ;;  %v1876_v62 = vrot.slane %v4790_v39, 5 }
 0x234   : > { %v2382_v63 = vpop.f32.mrf.mxu3 }
 0x235   : > { %2618 = vmatmul.bf16.gmra.mxu0 %v4787_v51  ;;  %v2450_v7 = vadd.f32 %v2382_v63, %v2237_v50  ;;  %v1878_v12 = vrot.slane %v1876_v62, 4  ;;  %v1879_v50 = vrot.slane %v4437_v25, 5  ;;  %v2275_v63 = vshrl.u32 %v4603_v55, 16 }
 0x237   : > { %v2647_v58 = vadd.f32 %v2579_v8, %v2450_v7  ;;  %v2171_v35 = vpop.f32.mrf.mxu2  ;;  %v2262_v8 = vshrl.u32 %v4600_v49, 16 }
 0x238   : > { %v2238_v40 = vadd.f32 %v2171_v35, %v2047_v34  ;;  %v1880_v35 = vsel %vm3995_vm5, %v1878_v12, %v1879_v50 }
 0x239   : > { %v2742_v29 = vadd.f32 %v2741_v37, %v2647_v58  ;;  %v2780_v6 = vmul.f32 %v2647_v58, %v2647_v58  ;;  %v1983_v21 = vpop.f32.mrf.mxu1  ;;  %v4791_v37 = vld [vmem:[#allocation39_spill] sm:$0xff] }
 0x23a   : > { %v2581_v44 = vpop.f32.mrf.mxu0  ;;  %v2048_v23 = vadd.f32 %v1983_v21, %v4789_v53  ;;  %v3183_v54 = vrot.slane %v4791_v37, 9  ;;  %v2277_v21 = vrot.slane %v2275_v63, 4 }
 0x23b   : > { %v2811_v26 = vadd.f32 %v2810_v19, %v2780_v6  ;;  %2022 = vmatmul.bf16.gmra.mxu1 %v4787_v51  ;;  %v2265_v19 = vshll.u32 %v4600_v49, 16 }
 0x23c   : > { %v2384_v15 = vpop.f32.mrf.mxu3  ;;  %2213 = vmatmul.bf16.gmra.mxu2 %v4431_v20  ;;  %v1877_v25 = vsel %vm3995_vm5, %v3183_v54, %v1876_v62 }
 0x23d   : > { %v2451_v43 = vadd.f32 %v2384_v15, %v2238_v40  ;;  %v2267_v6 = vrot.slane %v2265_v19, 5 }
 0x23f   : > { %v2648_v18 = vadd.f32 %v2581_v44, %v2451_v43  ;;  %v2174_v47 = vpop.f32.mrf.mxu2 }
 0x240   : > { %v2239_v14 = vadd.f32 %v2174_v47, %v2048_v23  ;;  %v1898_v47 = vunpack.c.l.b16 %v1880_v35 }
 0x241   : > { %v3433_v56 = vpack.c.bf16 %v2648_v18, %v2647_v58  ;;  %v2743_v11 = vadd.f32 %v2742_v29, %v2648_v18  ;;  %v2781_v17 = vmul.f32 %v2648_v18, %v2648_v18  ;;  %2426 = vmatmul.bf16.gmra.mxu3 %v4005_v48  ;;  %v1985_v22 = vpop.f32.mrf.mxu1  ;;  %v2271_v48 = vshll.u32 %v4603_v55, 16  ;;  %v235_v18 = vld [vmem:[%s3607_s23 + $0xd4] sm:$0x1] }
 0x242   : > { %v2584_v36 = vpop.f32.mrf.mxu0  ;;  %v2049_v58 = vadd.f32 %v1985_v22, %v4439_v3  ;;  %v2264_v29 = vrot.slane %v2262_v8, 4  ;;  %v1897_v3 = vunpack.c.l.b16 %v1877_v25  ;;  %v2480_v25 = vrot.slane %v235_v18, 5 }
 0x243   : > { %3493 = vst [vmem:[%s4567_s20 + $0x20] sm:$0xff] %v3433_v56   ;;  %v2812_v20 = vadd.f32 %v2811_v26, %v2781_v17  ;;  %v2273_v40 = vrot.slane %v2271_v48, 5  ;;  %v2281_v17 = vshll.u32 %v235_v18, 16 }
 0x244   : > { %v2387_v5 = vpop.f32.mrf.mxu3  ;;  %v2268_v62 = vor.u32 %v2267_v6, %v2264_v29  ;;  %v3337_v6 = vld [vmem:[%s3607_s23 + $0xcc] sm:$0xff]  ;;  %s2938_s23 = sshll.u32 %s4794_s13, 1 }
 0x245   : > { %2623 = vmatmul.bf16.gmra.mxu0 %v4451_v1  ;;  %v2452_v51 = vadd.f32 %v2387_v5, %v2239_v14  ;;  %v2278_v56 = vor.u32 %v2277_v21, %v2273_v40  ;;  %s181_s24 = scalar_lea.vmem %s4674_s3, %s2938_s23 }
 0x246   : > { %v2269_v54 = vrot.slane %v2268_v62, 4 }
 0x247   : > { %v2649_v7 = vadd.f32 %v2584_v36, %v2452_v51  ;;  %v2176_v60 = vpop.f32.mrf.mxu2  ;;  %v1899_v36 = vpack.c.b16 %v1898_v47, %v1897_v3  ;;  %v2279_v12 = vrot.slane %v2278_v56, 4 }
 0x248   : > { %v2240_v15 = vadd.f32 %v2176_v60, %v2049_v58  ;;  %v3284_v58 = vrot.slane %v4600_v49, 9 }
 0x249   : > { %v2744_v44 = vadd.f32 %v2743_v11, %v2649_v7  ;;  %v2782_v26 = vmul.f32 %v2649_v7, %v2649_v7  ;;  %v1988_v43 = vpop.f32.mrf.mxu1 }
 0x24a   : > { %v2586_v53 = vpop.f32.mrf.mxu0  ;;  %v2050_v11 = vadd.f32 %v1988_v43, %v4449_v0  ;;  %v2274_v0 = vsel %vm3622_vm2, %v2269_v54, %v2273_v40 }
 0x24b   : > { %v2813_v23 = vadd.f32 %v2812_v20, %v2782_v26  ;;  %2027 = vmatmul.bf16.gmra.mxu1 %v4451_v1  ;;  %v2283_v20 = vrot.slane %v2281_v17, 5  ;;  %v2477_v1 = vrot.slane %v4603_v55, 5  ;;  %v2301_v21 = vunpack.c.l.b16 %v2274_v0 }
 0x24c   : > { %v2389_v39 = vpop.f32.mrf.mxu3  ;;  %2218 = vmatmul.bf16.gmra.mxu2 %v4460_v27 }
 0x24d   : > { %v2453_v14 = vadd.f32 %v2389_v39, %v2240_v15  ;;  %v2284_v55 = vsel %vm3622_vm2, %v2279_v12, %v2283_v20  ;;  %v2478_v26 = vsel %vm3995_vm5, %v3284_v58, %v2477_v1 }
 0x24f   : > { %v2650_v22 = vadd.f32 %v2586_v53, %v2453_v14  ;;  %v2179_v37 = vpop.f32.mrf.mxu2 }
 0x250   : > { %v2241_v27 = vadd.f32 %v2179_v37, %v2050_v11 }
 0x251   : > { %v3438_v50 = vpack.c.bf16 %v2650_v22, %v2649_v7  ;;  %v2745_v5 = vadd.f32 %v2744_v44, %v2650_v22  ;;  %v2783_v8 = vmul.f32 %v2650_v22, %v2650_v22  ;;  %2431 = vmatmul.bf16.gmra.mxu3 %v4466_v41  ;;  %v1990_v19 = vpop.f32.mrf.mxu1  ;;  %v2479_v7 = vrot.slane %v2477_v1, 4 }
 0x252   : > { %v2589_v48 = vpop.f32.mrf.mxu0  ;;  %v2051_v35 = vadd.f32 %v1990_v19, %v4463_v13  ;;  %v2302_v44 = vunpack.c.l.b16 %v2284_v55  ;;  %v2498_v13 = vunpack.c.l.b16 %v2478_v26 }
 0x253   : > { %3494 = vst [vmem:[%s4567_s20 + $0x28] sm:$0xff] %v3438_v50   ;;  %v2814_v63 = vadd.f32 %v2813_v23, %v2783_v8  ;;  %v2481_v30 = vsel %vm3995_vm5, %v2479_v7, %v2480_v25 }
 0x254   : > { %v2392_v51 = vpop.f32.mrf.mxu3  ;;  %v2499_v3 = vunpack.c.l.b16 %v2481_v30  ;;  %v2303_v39 = vpack.c.b16 %v2302_v44, %v2301_v21 }
 0x255   : > { %2628 = vmatmul.bf16.gmra.mxu0 %v1899_v36  ;;  %v2454_v60 = vadd.f32 %v2392_v51, %v2241_v27 }
 0x256   : > { %v2500_v14 = vpack.c.b16 %v2499_v3, %v2498_v13 }
 0x257   : > { %v2651_v41 = vadd.f32 %v2589_v48, %v2454_v60  ;;  %v2181_v29 = vpop.f32.mrf.mxu2 }
 0x258   : > { %v2242_v49 = vadd.f32 %v2181_v29, %v2051_v35 }
 0x259   : > { %v2746_v40 = vadd.f32 %v2745_v5, %v2651_v41  ;;  %v2784_v15 = vmul.f32 %v2651_v41, %v2651_v41  ;;  %v1993_v43 = vpop.f32.mrf.mxu1 }
 0x25a   : > { %v2591_v53 = vpop.f32.mrf.mxu0  ;;  %v2052_v56 = vadd.f32 %v1993_v43, %v4470_v33 }
 0x25b   : > { %v2815_v23 = vadd.f32 %v2814_v63, %v2784_v15  ;;  %2032 = vmatmul.bf16.gmra.mxu1 %v1899_v36 }
 0x25c   : > { %v2394_v18 = vpop.f32.mrf.mxu3  ;;  %2223 = vmatmul.bf16.gmra.mxu2 %v3337_v6 }
 0x25d   : > { %v2455_v47 = vadd.f32 %v2394_v18, %v2242_v49 }
 0x25f   : > { %v2652_v62 = vadd.f32 %v2591_v53, %v2455_v47  ;;  %v2184_v17 = vpop.f32.mrf.mxu2 }
 0x260   : > { %v2243_v34 = vadd.f32 %v2184_v17, %v2052_v56 }
 0x261   : > { %v3443_v22 = vpack.c.bf16 %v2652_v62, %v2651_v41  ;;  %v2747_v11 = vadd.f32 %v2746_v40, %v2652_v62  ;;  %v2785_v37 = vmul.f32 %v2652_v62, %v2652_v62  ;;  %2436 = vmatmul.bf16.gmra.mxu3 %v2303_v39  ;;  %v1995_v54 = vpop.f32.mrf.mxu1 }
 0x262   : > { %v2594_v12 = vpop.f32.mrf.mxu0  ;;  %v2053_v5 = vadd.f32 %v1995_v54, %v4475_v32 }
 0x263   : > { %3495 = vst [vmem:[%s4567_s20 + $0x30] sm:$0xff] %v3443_v22   ;;  %v2816_v36 = vadd.f32 %v2815_v23, %v2785_v37 }
 0x264   : > { %v2397_v20 = vpop.f32.mrf.mxu3 }
 0x265   : > { %2633 = vmatmul.bf16.gmra.mxu0 %v2500_v14  ;;  %v2456_v1 = vadd.f32 %v2397_v20, %v2243_v34 }
 0x267   : > { %v2653_v50 = vadd.f32 %v2594_v12, %v2456_v1  ;;  %v2186_v8 = vpop.f32.mrf.mxu2 }
 0x268   : > { %v2244_v19 = vadd.f32 %v2186_v8, %v2053_v5 }
 0x269   : > { %v2748_v27 = vadd.f32 %v2747_v11, %v2653_v50  ;;  %v2786_v33 = vmul.f32 %v2653_v50, %v2653_v50  ;;  %v1998_v48 = vpop.f32.mrf.mxu1 }
 0x26a   : > { %v2596_v63 = vpop.f32.mrf.mxu0  ;;  %v2054_v55 = vadd.f32 %v1998_v48, %v4480_v24 }
 0x26b   : > { %v2817_v51 = vadd.f32 %v2816_v36, %v2786_v33 }
 0x26c   : > { %v2399_v0 = vpop.f32.mrf.mxu3 }
 0x26d   : > { %v2457_v58 = vadd.f32 %v2399_v0, %v2244_v19 }
 0x26f   : > { %v2654_v60 = vadd.f32 %v2596_v63, %v2457_v58  ;;  %v2189_v7 = vpop.f32.mrf.mxu2 }
 0x270   : > { %v2245_v29 = vadd.f32 %v2189_v7, %v2054_v55 }
 0x271   : > { %v3448_v25 = vpack.c.bf16 %v2654_v60, %v2653_v50  ;;  %v2749_v41 = vadd.f32 %v2748_v27, %v2654_v60  ;;  %v2787_v35 = vmul.f32 %v2654_v60, %v2654_v60  ;;  %v2000_v6 = vpop.f32.mrf.mxu1 }
 0x272   : > { %v2599_v32 = vpop.f32.mrf.mxu0  ;;  %v2055_v15 = vadd.f32 %v2000_v6, %v4485_v16 }
 0x273   : > { %3496 = vst [vmem:[%s4567_s20 + $0x38] sm:$0xff] %v3448_v25   ;;  %v2818_v21 = vadd.f32 %v2817_v51, %v2787_v35 }
 0x274   : > { %v2402_v44 = vpop.f32.mrf.mxu3 }
 0x275   : > { %v2458_v26 = vadd.f32 %v2402_v44, %v2245_v29 }
 0x277   : > { %v2655_v40 = vadd.f32 %v2599_v32, %v2458_v26  ;;  %v2191_v49 = vpop.f32.mrf.mxu2 }
 0x278   : > { %v2246_v53 = vadd.f32 %v2191_v49, %v2055_v15 }
 0x279   : > { %v2750_v43 = vadd.f32 %v2749_v41, %v2655_v40  ;;  %v2788_v30 = vmul.f32 %v2655_v40, %v2655_v40  ;;  %v2003_v24 = vpop.f32.mrf.mxu1 }
 0x27a   : > { %v2601_v23 = vpop.f32.mrf.mxu0  ;;  %v2056_v39 = vadd.f32 %v2003_v24, %v4490_v45 }
 0x27b   : > { %v2819_v18 = vadd.f32 %v2818_v21, %v2788_v30 }
 0x27c   : > { %v2404_v13 = vpop.f32.mrf.mxu3 }
 0x27d   : > { %v2459_v3 = vadd.f32 %v2404_v13, %v2246_v53 }
 0x27f   : > { %v2656_v47 = vadd.f32 %v2601_v23, %v2459_v3  ;;  %v2194_v62 = vpop.f32.mrf.mxu2 }
 0x280   : > { %v2247_v22 = vadd.f32 %v2194_v62, %v2056_v39 }
 0x281   : > { %v3453_v56 = vpack.c.bf16 %v2656_v47, %v2655_v40  ;;  %v2751_v17 = vadd.f32 %v2750_v43, %v2656_v47  ;;  %v2789_v14 = vmul.f32 %v2656_v47, %v2656_v47  ;;  %v2005_v11 = vpop.f32.mrf.mxu1 }
 0x282   : > { %v2604_v16 = vpop.f32.mrf.mxu0  ;;  %v2057_v36 = vadd.f32 %v2005_v11, %v4495_v38 }
 0x283   : > { %3497 = vst [vmem:[%s4567_s20 + $0x40] sm:$0xff] %v3453_v56   ;;  %v2820_v37 = vadd.f32 %v2819_v18, %v2789_v14 }
 0x284   : > { %v2407_v34 = vpop.f32.mrf.mxu3 }
 0x285   : > { %v2460_v54 = vadd.f32 %v2407_v34, %v2247_v22 }
 0x287   : > { %v2657_v12 = vadd.f32 %v2604_v16, %v2460_v54  ;;  %v2196_v20 = vpop.f32.mrf.mxu2 }
 0x288   : > { %v2248_v5 = vadd.f32 %v2196_v20, %v2057_v36 }
 0x289   : > { %v2752_v1 = vadd.f32 %v2751_v17, %v2657_v12  ;;  %v2790_v50 = vmul.f32 %v2657_v12, %v2657_v12  ;;  %v2008_v45 = vpop.f32.mrf.mxu1 }
 0x28a   : > { %v2606_v8 = vpop.f32.mrf.mxu0  ;;  %v2058_v63 = vadd.f32 %v2008_v45, %v4500_v10 }
 0x28b   : > { %v2821_v27 = vadd.f32 %v2820_v37, %v2790_v50 }
 0x28c   : > { %v2409_v33 = vpop.f32.mrf.mxu3 }
 0x28d   : > { %v2461_v19 = vadd.f32 %v2409_v33, %v2248_v5 }
 0x28f   : > { %v2658_v48 = vadd.f32 %v2606_v8, %v2461_v19  ;;  %v2199_v51 = vpop.f32.mrf.mxu2 }
 0x290   : > { %v2249_v55 = vadd.f32 %v2199_v51, %v2058_v63 }
 0x291   : > { %v3458_v0 = vpack.c.bf16 %v2658_v48, %v2657_v12  ;;  %v2753_v58 = vadd.f32 %v2752_v1, %v2658_v48  ;;  %v2791_v60 = vmul.f32 %v2658_v48, %v2658_v48  ;;  %v2010_v7 = vpop.f32.mrf.mxu1 }
 0x292   : > { %v2609_v38 = vpop.f32.mrf.mxu0  ;;  %v2059_v6 = vadd.f32 %v2010_v7, %v4505_v42 }
 0x293   : > { %3498 = vst [vmem:[%s4567_s20 + $0x48] sm:$0xff] %v3458_v0   ;;  %v2822_v25 = vadd.f32 %v2821_v27, %v2791_v60 }
 0x294   : > { %v2412_v41 = vpop.f32.mrf.mxu3 }
 0x295   : > { %v2462_v35 = vadd.f32 %v2412_v41, %v2249_v55 }
 0x297   : > { %v2659_v29 = vadd.f32 %v2609_v38, %v2462_v35  ;;  %v2201_v32 = vpop.f32.mrf.mxu2 }
 0x298   : > { %v2250_v26 = vadd.f32 %v2201_v32, %v2059_v6 }
 0x299   : > { %v2754_v21 = vadd.f32 %v2753_v58, %v2659_v29  ;;  %v2792_v44 = vmul.f32 %v2659_v29, %v2659_v29  ;;  %v2013_v10 = vpop.f32.mrf.mxu1 }
 0x29a   : > { %v2611_v40 = vpop.f32.mrf.mxu0  ;;  %v2060_v53 = vadd.f32 %v2013_v10, %v4510_v52 }
 0x29b   : > { %v2823_v15 = vadd.f32 %v2822_v25, %v2792_v44 }
 0x29c   : > { %v2414_v49 = vpop.f32.mrf.mxu3 }
 0x29d   : > { %v2463_v43 = vadd.f32 %v2414_v49, %v2250_v26 }
 0x29f   : > { %v2660_v30 = vadd.f32 %v2611_v40, %v2463_v43  ;;  %v2204_v24 = vpop.f32.mrf.mxu2 }
 0x2a0   : > { %v2251_v3 = vadd.f32 %v2204_v24, %v2060_v53 }
 0x2a1   : > { %v3463_v23 = vpack.c.bf16 %v2660_v30, %v2659_v29  ;;  %v2755_v18 = vadd.f32 %v2754_v21, %v2660_v30  ;;  %v2793_v13 = vmul.f32 %v2660_v30, %v2660_v30  ;;  %v2015_v47 = vpop.f32.mrf.mxu1 }
 0x2a2   : > { %v2614_v42 = vpop.f32.mrf.mxu0  ;;  %v2061_v14 = vadd.f32 %v2015_v47, %v4515_v46 }
 0x2a3   : > { %3499 = vst [vmem:[%s4567_s20 + $0x50] sm:$0xff] %v3463_v23   ;;  %v2824_v39 = vadd.f32 %v2823_v15, %v2793_v13 }
 0x2a4   : > { %v2417_v62 = vpop.f32.mrf.mxu3 }
 0x2a5   : > { %v2464_v56 = vadd.f32 %v2417_v62, %v2251_v3 }
 0x2a7   : > { %v2661_v17 = vadd.f32 %v2614_v42, %v2464_v56  ;;  %v2206_v22 = vpop.f32.mrf.mxu2 }
 0x2a8   : > { %v2252_v37 = vadd.f32 %v2206_v22, %v2061_v14 }
 0x2a9   : > { %v2756_v11 = vadd.f32 %v2755_v18, %v2661_v17  ;;  %v2794_v16 = vmul.f32 %v2661_v17, %v2661_v17  ;;  %v2018_v52 = vpop.f32.mrf.mxu1 }
 0x2aa   : > { %v2616_v34 = vpop.f32.mrf.mxu0  ;;  %v2062_v1 = vadd.f32 %v2018_v52, %v4520_v57 }
 0x2ab   : > { %v2825_v54 = vadd.f32 %v2824_v39, %v2794_v16 }
 0x2ac   : > { %v2419_v12 = vpop.f32.mrf.mxu3 }
 0x2ad   : > { %v2465_v36 = vadd.f32 %v2419_v12, %v2252_v37 }
 0x2af   : > { %v2662_v20 = vadd.f32 %v2616_v34, %v2465_v36  ;;  %v2209_v50 = vpop.f32.mrf.mxu2 }
 0x2b0   : > { %v2253_v27 = vadd.f32 %v2209_v50, %v2062_v1 }
 0x2b1   : > { %v3468_v5 = vpack.c.bf16 %v2662_v20, %v2661_v17  ;;  %v2757_v45 = vadd.f32 %v2756_v11, %v2662_v20  ;;  %v2795_v8 = vmul.f32 %v2662_v20, %v2662_v20  ;;  %v2020_v33 = vpop.f32.mrf.mxu1 }
 0x2b2   : > { %v2619_v46 = vpop.f32.mrf.mxu0  ;;  %v2063_v0 = vadd.f32 %v2020_v33, %v4525_v4 }
 0x2b3   : > { %3500 = vst [vmem:[%s4567_s20 + $0x58] sm:$0xff] %v3468_v5   ;;  %v2826_v19 = vadd.f32 %v2825_v54, %v2795_v8 }
 0x2b4   : > { %v2422_v48 = vpop.f32.mrf.mxu3 }
 0x2b5   : > { %v2466_v63 = vadd.f32 %v2422_v48, %v2253_v27 }
 0x2b7   : > { %v2663_v51 = vadd.f32 %v2619_v46, %v2466_v63  ;;  %v2211_v58 = vpop.f32.mrf.mxu2 }
 0x2b8   : > { %v2254_v7 = vadd.f32 %v2211_v58, %v2063_v0 }
 0x2b9   : > { %v2758_v60 = vadd.f32 %v2757_v45, %v2663_v51  ;;  %v2796_v55 = vmul.f32 %v2663_v51, %v2663_v51  ;;  %v2023_v57 = vpop.f32.mrf.mxu1 }
 0x2ba   : > { %v2621_v38 = vpop.f32.mrf.mxu0  ;;  %v2064_v6 = vadd.f32 %v2023_v57, %v4530_v9 }
 0x2bb   : > { %v2827_v25 = vadd.f32 %v2826_v19, %v2796_v55 }
 0x2bc   : > { %v2424_v41 = vpop.f32.mrf.mxu3 }
 0x2bd   : > { %v2467_v35 = vadd.f32 %v2424_v41, %v2254_v7 }
 0x2bf   : > { %v2664_v29 = vadd.f32 %v2621_v38, %v2467_v35  ;;  %v2214_v32 = vpop.f32.mrf.mxu2 }
 0x2c0   : > { %v2255_v10 = vadd.f32 %v2214_v32, %v2064_v6 }
 0x2c1   : > { %v3473_v21 = vpack.c.bf16 %v2664_v29, %v2663_v51  ;;  %v2759_v44 = vadd.f32 %v2758_v60, %v2664_v29  ;;  %v2797_v26 = vmul.f32 %v2664_v29, %v2664_v29  ;;  %v2025_v40 = vpop.f32.mrf.mxu1 }
 0x2c2   : > { %v2624_v4 = vpop.f32.mrf.mxu0  ;;  %v2065_v53 = vadd.f32 %v2025_v40, %v4535_v2 }
 0x2c3   : > { %3501 = vst [vmem:[%s4567_s20 + $0x60] sm:$0xff] %v3473_v21   ;;  %v2828_v15 = vadd.f32 %v2827_v25, %v2797_v26 }
 0x2c4   : > { %v2427_v49 = vpop.f32.mrf.mxu3 }
 0x2c5   : > { %v2468_v43 = vadd.f32 %v2427_v49, %v2255_v10 }
 0x2c7   : > { %v2665_v30 = vadd.f32 %v2624_v4, %v2468_v43  ;;  %v2216_v24 = vpop.f32.mrf.mxu2 }
 0x2c8   : > { %v2256_v13 = vadd.f32 %v2216_v24, %v2065_v53 }
 0x2c9   : > { %v2760_v23 = vadd.f32 %v2759_v44, %v2665_v30  ;;  %v2798_v18 = vmul.f32 %v2665_v30, %v2665_v30  ;;  %v2028_v9 = vpop.f32.mrf.mxu1 }
 0x2ca   : > { %v2626_v3 = vpop.f32.mrf.mxu0  ;;  %v2066_v56 = vadd.f32 %v2028_v9, %v4540_v28 }
 0x2cb   : > { %v2829_v47 = vadd.f32 %v2828_v15, %v2798_v18 }
 0x2cc   : > { %v2429_v42 = vpop.f32.mrf.mxu3 }
 0x2cd   : > { %v2469_v39 = vadd.f32 %v2429_v42, %v2256_v13 }
 0x2cf   : > { %v2666_v62 = vadd.f32 %v2626_v3, %v2469_v39  ;;  %v2219_v17 = vpop.f32.mrf.mxu2 }
 0x2d0   : > { %v2257_v16 = vadd.f32 %v2219_v17, %v2066_v56 }
 0x2d1   : > { %v3478_v14 = vpack.c.bf16 %v2666_v62, %v2665_v30  ;;  %v2761_v22 = vadd.f32 %v2760_v23, %v2666_v62  ;;  %v2799_v11 = vmul.f32 %v2666_v62, %v2666_v62  ;;  %v2030_v37 = vpop.f32.mrf.mxu1 }
 0x2d2   : > { %v2629_v2 = vpop.f32.mrf.mxu0  ;;  %v2067_v36 = vadd.f32 %v2030_v37, %v4545_v59 }
 0x2d3   : > { %3502 = vst [vmem:[%s4567_s20 + $0x68] sm:$0xff] %v3478_v14   ;;  %v2830_v52 = vadd.f32 %v2829_v47, %v2799_v11 }
 0x2d4   : > { %v2432_v34 = vpop.f32.mrf.mxu3 }
 0x2d5   : > { %v2470_v54 = vadd.f32 %v2432_v34, %v2257_v16 }
 0x2d7   : > { %v2667_v12 = vadd.f32 %v2629_v2, %v2470_v54  ;;  %v2221_v20 = vpop.f32.mrf.mxu2 }
 0x2d8   : > { %v2258_v5 = vadd.f32 %v2221_v20, %v2067_v36 }
 0x2d9   : > { %v2762_v1 = vadd.f32 %v2761_v22, %v2667_v12  ;;  %v2800_v50 = vmul.f32 %v2667_v12, %v2667_v12  ;;  %v2033_v28 = vpop.f32.mrf.mxu1 }
 0x2da   : > { %v2631_v45 = vpop.f32.mrf.mxu0  ;;  %v2068_v19 = vadd.f32 %v2033_v28, %v4550_v31 }
 0x2db   : > { %v2831_v8 = vadd.f32 %v2830_v52, %v2800_v50 }
 0x2dc   : > { %v2434_v27 = vpop.f32.mrf.mxu3 }
 0x2dd   : > { %v2471_v33 = vadd.f32 %v2434_v27, %v2258_v5 }
 0x2df   : > { %v2668_v46 = vadd.f32 %v2631_v45, %v2471_v33  ;;  %v2224_v48 = vpop.f32.mrf.mxu2 }
 0x2e0   : > { %v2259_v58 = vadd.f32 %v2224_v48, %v2068_v19 }
 0x2e1   : > { %v3483_v63 = vpack.c.bf16 %v2668_v46, %v2667_v12  ;;  %v2763_v51 = vadd.f32 %v2762_v1, %v2668_v46  ;;  %v2801_v0 = vmul.f32 %v2668_v46, %v2668_v46  ;;  %v2035_v60 = vpop.f32.mrf.mxu1 }
 0x2e2   : > { %v2634_v55 = vpop.f32.mrf.mxu0  ;;  %v2069_v25 = vadd.f32 %v2035_v60, %v4554_v61 }
 0x2e3   : > { %3503 = vst [vmem:[%s4567_s20 + $0x70] sm:$0xff] %v3483_v63   ;;  %v2832_v59 = vadd.f32 %v2831_v8, %v2801_v0 }
 0x2e4   : > { %v2437_v7 = vpop.f32.mrf.mxu3 }
 0x2e5   : > { %v2472_v57 = vadd.f32 %v2437_v7, %v2259_v58 }
 0x2e7   : > { %v2669_v38 = vadd.f32 %v2634_v55, %v2472_v57  ;;  %v2226_v41 = vpop.f32.mrf.mxu2 }
 0x2e8   : > { %v2260_v6 = vadd.f32 %v2226_v41, %v2069_v25 }
 0x2e9   : > { %v2764_v35 = vadd.f32 %v2763_v51, %v2669_v38  ;;  %v2802_v29 = vmul.f32 %v2669_v38, %v2669_v38 }
 0x2ea   : > { %v2636_v44 = vpop.f32.mrf.mxu0 }
 0x2eb   : > { %v2833_v31 = vadd.f32 %v2832_v59, %v2802_v29 }
 0x2ec   : > { %v2439_v32 = vpop.f32.mrf.mxu3 }
 0x2ed   : > { %v2473_v21 = vadd.f32 %v2439_v32, %v2260_v6 }
 0x2ef   : > { %v2670_v26 = vadd.f32 %v2636_v44, %v2473_v21 }
 0x2f1   : > { %v3488_v10 = vpack.c.bf16 %v2670_v26, %v2669_v38  ;;  %v2765_v40 = vadd.f32 %v2764_v35, %v2670_v26  ;;  %v2803_v4 = vmul.f32 %v2670_v26, %v2670_v26 }
 0x2f3   : > { %3504 = vst [vmem:[%s4567_s20 + $0x78] sm:$0xff] %v3488_v10   ;;  %v2766_v15 = vrot.slane %v2765_v40, 4  ;;  %v2834_v49 = vadd.f32 %v2833_v31, %v2803_v4 }
 0x2f5   : > { %v2767_v43 = vadd.f32 %v2766_v15, %v2765_v40  ;;  %v2835_v30 = vrot.slane %v2834_v49, 4 }
 0x2f7   : > { %v2768_v53 = vrot.slane %v2767_v43, 2  ;;  %v2836_v61 = vadd.f32 %v2835_v30, %v2834_v49 }
 0x2f9   : > { %v2769_v24 = vadd.f32 %v2768_v53, %v2767_v43  ;;  %v2837_v23 = vrot.slane %v2836_v61, 2 }
 0x2fb   : > { %v2770_v18 = vrot.slane %v2769_v24, 1  ;;  %v2838_v13 = vadd.f32 %v2837_v23, %v2836_v61 }
 0x2fd   : > { %v2839_v9 = vrot.slane %v2838_v13, 1  ;;  %v2771_v3 = vadd.f32 %v2770_v18, %v2769_v24 }
 0x2ff   : > { %v2840_v47 = vadd.f32 %v2839_v9, %v2838_v13 }
 0x301   : > { %v2842_v42 = vsel %vm2841_vm6, %v2771_v3, %v2840_v47 }
 0x302   : > { %2843 = vst [vmem:[%s181_s24] sm:$0x3] %v2842_v42 }
 0x303 PF: > { %s14_s12 = sadd.s32 1, %s3562_s12  }
 0x304   : > { %p11_p4 = scmp.ge.s32.totalorder %s14_s12, 4  }
 0x306   :  { %13 = sbr.rel (!%p11_p4) target bundleno = 1 (0x1), region = 70 }

</bundles_post_ra>
